<compile_context>
chip_gen: v7x
topology: tpu7x:2x2x1
jax: 0.10.0
libtpu: 0.0.40
codegen_flags: <defaults>
</compile_context>

<pallas_src>
import functools

import jax
import jax.numpy as jnp
from jax.experimental import pallas as pl
from jax.experimental.pallas import tpu as pltpu

_VMEM_LIMIT = 48 * 1024 * 1024  # stay inside v7x's 64 MiB physical VMEM


def _round_up(x, m):
    return (x + m - 1) // m * m


def _row_tiles(rows, target_tiles=4, max_tile=1024):
    """Row tile / grid so every pallas_call gets >=~4 steps (v7x: both TCs busy,
    v5e/v6e: pipeline reaches steady state) and padding stays minimal."""
    tm = _round_up(max(-(-rows // target_tiles), 16), 16)
    tm = min(tm, max_tile, _round_up(rows, 16))
    grid = -(-rows // tm)
    return tm, grid, grid * tm


# ------------------------- small constant matrices --------------------------

def _group_ones(n, group):
    """[n, n] block-diagonal ones (groups of `group` consecutive lanes).
    (s*s) @ G == per-capsule sum of squared atoms, broadcast back over atoms."""
    idx = jnp.arange(n) // group
    return (idx[:, None] == idx[None, :]).astype(jnp.float32)


def _tile_matrix(a, c):
    """[a, c*a] 0/1 matrix that tiles a per-atom gate across `c` capsules."""
    j = jnp.arange(c * a)
    return (jnp.arange(a)[:, None] == (j[None, :] % a)).astype(jnp.float32)


def _tap_masks(h, w):
    """[h*w, 9] bf16 validity mask per 3x3 tap (zero-padding at image borders)."""
    hh = jnp.arange(h * w) // w
    ww = jnp.arange(h * w) % w
    cols = []
    for kh in (-1, 0, 1):
        for kw in (-1, 0, 1):
            cols.append((hh + kh >= 0) & (hh + kh < h) &
                        (ww + kw >= 0) & (ww + kw < w))
    return jnp.stack(cols, axis=1).astype(jnp.bfloat16)


# ----------------- generic capsule kernel (votes + routing + squash) --------

def _caps_kernel(x_ref, w_ref, b_ref, g_ref, o_ref, *, cin, kin, routings):
    # x_ref: [tm, cin*kin]  input rows (channels-last)
    # w_ref: [*, n_out]     bf16 weights (shared across input capsules)
    # b_ref: [1, n_out]     routing bias (broadcast over rows in-kernel)
    # g_ref: [n_out, n_out] bf16 block-diag ones (per-capsule atom sums)
    # o_ref: [tm, n_out]
    w_bf = w_ref[...]
    x = x_ref[...]
    bias = b_ref[...]
    gones = g_ref[...]

    def gdot(a):  # grouped (per-capsule) sums via bf16 MXU, f32 accumulation
        return jnp.dot(a.astype(jnp.bfloat16), gones,
                       preferred_element_type=jnp.float32)

    def squash(s):
        # TODO(synk): epsilon 1e-7 assumed to match the reference squash.
        sq = gdot(s * s)
        return (sq / (1.0 + sq)) * s * jax.lax.rsqrt(sq + 1e-7)

    if routings == 1:
        # sigmoid(0)=0.5 and the input-capsule sum are pre-folded into w_bf
        # (weights replicated/scaled wrapper-side) -> one matmul.
        s = jnp.dot(x.astype(jnp.bfloat16), w_bf,
                    preferred_element_type=jnp.float32) + bias
        o_ref[...] = squash(s).astype(o_ref.dtype)
    else:
        # TODO(synk): lane slices at multiples of kin are not 128-aligned; a
        # block-diagonal replicated weight producing a [tm, cin*n_out] votes slab
        # would avoid per-step relayouts (routings>1 is not the default path).
        votes = []
        for ci in range(cin):
            xi = x[:, ci * kin:(ci + 1) * kin].astype(jnp.bfloat16)
            votes.append(jnp.dot(xi, w_bf, preferred_element_type=jnp.float32))
        logits = [jnp.zeros_like(votes[0]) for _ in range(cin)]
        v = None
        for r in range(routings):
            s = sum(jax.nn.sigmoid(l) * vt for l, vt in zip(logits, votes)) + bias
            v = squash(s)
            if r + 1 < routings:
                logits = [l + gdot(vt * v) for l, vt in zip(logits, votes)]
        o_ref[...] = v.astype(o_ref.dtype)


def _caps_layer_call(x2d, w_bf, bias_row, gones_bf, *, cin, kin, routings,
                     out_dtype=jnp.float32):
    rows, xc = x2d.shape
    assert xc == cin * kin
    n_out = w_bf.shape[1]
    tm, grid, rows_p = _row_tiles(rows)
    if rows_p != rows:
        x2d = jnp.pad(x2d, ((0, rows_p - rows), (0, 0)))
    out = pl.pallas_call(
        functools.partial(_caps_kernel, cin=cin, kin=kin, routings=routings),
        out_shape=jax.ShapeDtypeStruct((rows_p, n_out), out_dtype),
        grid=(grid,),
        in_specs=[
            pl.BlockSpec((tm, xc), lambda i: (i, 0)),
            pl.BlockSpec((w_bf.shape[0], n_out), lambda i: (0, 0)),
            pl.BlockSpec((1, n_out), lambda i: (0, 0)),
            pl.BlockSpec((n_out, n_out), lambda i: (0, 0)),
        ],
        out_specs=pl.BlockSpec((tm, n_out), lambda i: (i, 0)),
        compiler_params=pltpu.CompilerParams(
            dimension_semantics=("parallel",),
            vmem_limit_bytes=_VMEM_LIMIT),
    )(x2d, w_bf, bias_row, gones_bf)
    return out[:rows] if rows_p != rows else out


# -------- fused 3x3 conv caps kernel (im2col-free, routings == 1) -----------

def _conv_caps_kernel(x_ref, w_ref, m_ref, b_ref, g_ref, o_ref, *, H, W, CA):
    # x_ref: [H*W, CA]    one image, channels-last pixels (CA = cin * atoms)
    # w_ref: [9*CA, ca]   bf16 per-tap weights, replicated over input capsules
    #                     and pre-scaled by the sigmoid(0)=0.5 routing coefficient
    # m_ref: [H*W, 9]     bf16 border-validity masks per tap
    # b_ref: [1, ca]      routing bias
    # g_ref: [ca, ca]     bf16 block-diag ones
    HW = H * W
    x = x_ref[...].astype(jnp.bfloat16)
    m = m_ref[...]
    acc = None
    for kh in (-1, 0, 1):
        for kw in (-1, 0, 1):
            tap = (kh + 1) * 3 + (kw + 1)
            d = kh * W + kw
            if d == 0:
                xs = x
            else:
                dd = d % HW   # rows that wrap are always masked out below
                xs = jnp.concatenate([x[dd:], x[:dd]], axis=0)
            xs = xs * m[:, tap:tap + 1]
            vt = jnp.dot(xs, w_ref[tap * CA:(tap + 1) * CA, :],
                         preferred_element_type=jnp.float32)
            acc = vt if acc is None else acc + vt
    s = acc + b_ref[...]
    sq = jnp.dot((s * s).astype(jnp.bfloat16), g_ref[...],
                 preferred_element_type=jnp.float32)
    o_ref[...] = ((sq / (1.0 + sq)) * s * jax.lax.rsqrt(sq + 1e-7)
                  ).astype(o_ref.dtype)


# ------------------------------ attention kernel ----------------------------

def _attention_kernel(g_ref, u_ref, wgx_ref, bgx_ref, wp_ref, bp_ref, o_ref):
    # TODO(synk): normalization='s' (SwitchNorm) after each 1x1 conv is treated
    # as identity (using_bn=False in the reference config).
    u = u_ref[...]
    gu = jnp.concatenate([g_ref[...].astype(jnp.bfloat16),
                          u.astype(jnp.bfloat16)], axis=-1)      # K = 2*ca = 128
    a = jnp.dot(gu, wgx_ref[...], preferred_element_type=jnp.float32)
    a = jnp.maximum(a + bgx_ref[...], 0.0)
    # psi tiling across capsules pre-folded into wp/bp (sigmoid commutes with it)
    psi = jax.nn.sigmoid(
        jnp.dot(a.astype(jnp.bfloat16), wp_ref[...],
                preferred_element_type=jnp.float32) + bp_ref[...])
    o_ref[...] = (u.astype(jnp.float32) * psi).astype(o_ref.dtype)


def pallas_attention(g2d, u2d, wgx, bgx, wp_t, bp_t):
    rows, ca = u2d.shape
    f_int = wgx.shape[1]
    tm, grid, rows_p = _row_tiles(rows)
    if rows_p != rows:
        g2d = jnp.pad(g2d, ((0, rows_p - rows), (0, 0)))
        u2d = jnp.pad(u2d, ((0, rows_p - rows), (0, 0)))
    out = pl.pallas_call(
        _attention_kernel,
        out_shape=jax.ShapeDtypeStruct((rows_p, ca), jnp.bfloat16),
        grid=(grid,),
        in_specs=[
            pl.BlockSpec((tm, ca), lambda i: (i, 0)),
            pl.BlockSpec((tm, ca), lambda i: (i, 0)),
            pl.BlockSpec((2 * ca, f_int), lambda i: (0, 0)),
            pl.BlockSpec((1, f_int), lambda i: (0, 0)),
            pl.BlockSpec((f_int, ca), lambda i: (0, 0)),
            pl.BlockSpec((1, ca), lambda i: (0, 0)),
        ],
        out_specs=pl.BlockSpec((tm, ca), lambda i: (i, 0)),
        compiler_params=pltpu.CompilerParams(
            dimension_semantics=("parallel",),
            vmem_limit_bytes=_VMEM_LIMIT),
    )(g2d, u2d, wgx, bgx, wp_t, bp_t)
    return out[:rows] if rows_p != rows else out


# --------------------------- capsule layer wrappers --------------------------

def transposed_caps_layer(x_cl, w, bias, *, num_capsule, num_atoms, routings):
    """ConvCapsuleLayer3D, transposed, kernel=2, stride=2, pad=0, constrained.
    x_cl: [B, H, W, Cin, Ain] channels-last.  Returns [B, 2H, 2W, C*A] bf16."""
    b, h, wsp, cin, ain = x_cl.shape
    ca = num_capsule * num_atoms
    n_out = 4 * ca                                  # (kh, kw, c, a) along lanes
    w_flat = w.transpose(2, 0, 1, 3).reshape(ain, n_out)
    bias_row = jnp.tile(bias.reshape(1, ca), (1, 4)).astype(jnp.float32)
    gones = _group_ones(n_out, num_atoms).astype(jnp.bfloat16)
    x2d = x_cl.reshape(b * h * wsp, cin * ain)
    if routings == 1:
        # constrained weights + one routing iter: fold the 0.5 routing coefficient
        # and the input-capsule sum into a replicated weight (K = cin*ain).
        w_call = jnp.tile(0.5 * w_flat, (cin, 1)).astype(jnp.bfloat16)
        cin_eff, kin = 1, cin * ain
    else:
        w_call = w_flat.astype(jnp.bfloat16)
        cin_eff, kin = cin, ain
    out = _caps_layer_call(x2d, w_call, bias_row, gones,
                           cin=cin_eff, kin=kin, routings=routings,
                           out_dtype=jnp.bfloat16)
    # [B*H*W, (kh,kw,CA)] -> [B, 2H, 2W, CA]
    out = out.reshape(b, h, wsp, 2, 2, ca).transpose(0, 1, 3, 2, 4, 5)
    return out.reshape(b, 2 * h, 2 * wsp, ca)


def conv_caps_layer(h_cl, w, bias, *, num_capsule, num_atoms, routings):
    """ConvCapsuleLayer3D, kernel=3, stride=1, same padding, constrained.
    h_cl: [B, H, W, Cin*A] channels-last.  Returns [B, H, W, C*A] f32."""
    b, hh, ww_, chans = h_cl.shape
    k = w.shape[0]
    a_in = w.shape[2]
    cin = chans // a_in
    ca = num_capsule * num_atoms
    bias_row = bias.reshape(1, ca).astype(jnp.float32)
    gones = _group_ones(ca, num_atoms).astype(jnp.bfloat16)
    hwn = hh * ww_

    if routings == 1 and k == 3 and hwn % 16 == 0:
        # Fused, im2col-free path: grid over images; 9 shifted-row bf16 matmuls
        # accumulated in VMEM; routing 0.5 + input-capsule sum folded into the
        # replicated per-tap weights.
        # TODO(synk): B==1 leaves one v7x TensorCore idle; a halo-tiled spatial
        # grid would restore 2-TC sharding for that case.
        w_taps = w.reshape(k * k, a_in, ca)
        w_rep = jnp.tile(0.5 * w_taps, (1, cin, 1)).reshape(
            k * k * cin * a_in, ca).astype(jnp.bfloat16)
        masks = _tap_masks(hh, ww_)
        x2d = h_cl.reshape(b * hwn, chans)
        out = pl.pallas_call(
            functools.partial(_conv_caps_kernel, H=hh, W=ww_, CA=chans),
            out_shape=jax.ShapeDtypeStruct((b * hwn, ca), jnp.float32),
            grid=(b,),
            in_specs=[
                pl.BlockSpec((hwn, chans), lambda i: (i, 0)),
                pl.BlockSpec((k * k * chans, ca), lambda i: (0, 0)),
                pl.BlockSpec((hwn, k * k), lambda i: (0, 0)),
                pl.BlockSpec((1, ca), lambda i: (0, 0)),
                pl.BlockSpec((ca, ca), lambda i: (0, 0)),
            ],
            out_specs=pl.BlockSpec((hwn, ca), lambda i: (i, 0)),
            compiler_params=pltpu.CompilerParams(
                dimension_semantics=("parallel",),
                vmem_limit_bytes=_VMEM_LIMIT),
        )(x2d, w_rep, masks, bias_row, gones)
        return out.reshape(b, hh, ww_, ca)

    # Fallback (routings > 1 or awkward shapes): host-side im2col + generic kernel.
    k2 = k * k
    p = (k - 1) // 2
    if routings == 1:
        hs = h_cl.reshape(b, hh, ww_, cin, a_in).sum(axis=3)
        hp = jnp.pad(hs, ((0, 0), (p, p), (p, p), (0, 0)))
        patches = jnp.concatenate(
            [hp[:, i:i + hh, j:j + ww_, :] for i in range(k) for j in range(k)],
            axis=-1)
        x2d = patches.reshape(b * hwn, k2 * a_in)
        w_call = (0.5 * w.reshape(k2 * a_in, ca)).astype(jnp.bfloat16)
        cin_eff, kin = 1, k2 * a_in
    else:
        hp = jnp.pad(h_cl.reshape(b, hh, ww_, cin, a_in),
                     ((0, 0), (p, p), (p, p), (0, 0), (0, 0)))
        patches = jnp.stack(
            [hp[:, i:i + hh, j:j + ww_] for i in range(k) for j in range(k)],
            axis=4)                                          # [B,H,W,Cin,K2,A]
        x2d = patches.reshape(b * hwn, cin * k2 * a_in)
        w_call = w.reshape(k2 * a_in, ca).astype(jnp.bfloat16)
        cin_eff, kin = cin, k2 * a_in
    out = _caps_layer_call(x2d, w_call, bias_row, gones,
                           cin=cin_eff, kin=kin, routings=routings,
                           out_dtype=jnp.float32)
    return out.reshape(b, hh, ww_, ca)


def attention_block(enc_cl, up_cl, params, *, num_capsule, num_atoms):
    # TODO(synk): psi (per-atom gate) is assumed to broadcast across capsules,
    # matching AttentionBlock(F_out=num_atoms) applied to a [C*A]-channel input.
    b, h, w, ca = up_cl.shape
    g2d = enc_cl.reshape(b * h * w, ca)
    u2d = up_cl.reshape(b * h * w, ca)
    tmat = _tile_matrix(num_atoms, num_capsule)
    wgx = jnp.concatenate([params['wg'], params['wx']], axis=0).astype(jnp.bfloat16)
    bgx = (params['bg'] + params['bx']).astype(jnp.float32)
    wp_t = (params['wp'] @ tmat).astype(jnp.bfloat16)       # fold psi tiling
    bp_t = (params['bp'] @ tmat).astype(jnp.float32)
    att = pallas_attention(g2d, u2d, wgx, bgx, wp_t, bp_t)
    return att.reshape(b, h, w, ca)


def attention_decoder_caps_forward(encoder_features, x, params, *,
                                   num_capsule, num_atoms,
                                   routings=(1, 1), union_type=None):
    # PyTorch layouts in: x [B, Cin, Ain, H, W]; encoder [B, C, A, 2H, 2W]
    x_cl = x.transpose(0, 3, 4, 1, 2)                                # [B,H,W,Cin,Ain]
    enc_cl = encoder_features.transpose(0, 3, 4, 1, 2)
    be, h2, w2 = enc_cl.shape[:3]
    enc_cl = enc_cl.reshape(be, h2, w2, num_capsule * num_atoms)

    up = transposed_caps_layer(x_cl, params['w1'], params['b1'],
                               num_capsule=num_capsule, num_atoms=num_atoms,
                               routings=routings[0])                 # [B,2H,2W,CA]
    att = attention_block(enc_cl, up, params,
                          num_capsule=num_capsule, num_atoms=num_atoms)
    if union_type == 'cat':
        a5 = att.reshape(be, h2, w2, num_capsule, num_atoms)
        u5 = up.reshape(be, h2, w2, num_capsule, num_atoms)
        h_cl = jnp.concatenate((a5, u5), axis=3).reshape(
            be, h2, w2, 2 * num_capsule * num_atoms)
    elif union_type == 'sum':
        h_cl = up + att
    else:
        h_cl = att
    out = conv_caps_layer(h_cl, params['w2'], params['b2'],
                          num_capsule=num_capsule, num_atoms=num_atoms,
                          routings=routings[1])                      # [B,2H,2W,CA]
    out = out.reshape(be, h2, w2, num_capsule, num_atoms)
    return out.transpose(0, 3, 4, 1, 2)                              # [B,C,A,2H,2W]


# ------------------------------ parameters ----------------------------------

def init_params(key, *, input_num_atoms, num_capsule, num_atoms, kernel_size=3):
    # TODO(synk): inner Conv3d bias of ConvCapsuleLayer3D assumed absent
    # (only the routing bias `b`, SegCaps-style constant 0.1 init, is used).
    ca = num_capsule * num_atoms
    f_int = ca // 2
    ks = jax.random.split(key, 5)
    s = 0.1
    return dict(
        w1=s * jax.random.normal(ks[0], (2, 2, input_num_atoms, ca), jnp.float32),
        b1=jnp.full((num_capsule, num_atoms), 0.1, jnp.float32),
        w2=s * jax.random.normal(ks[1], (kernel_size, kernel_size, num_atoms, ca),
                                 jnp.float32),
        b2=jnp.full((num_capsule, num_atoms), 0.1, jnp.float32),
        wg=s * jax.random.normal(ks[2], (ca, f_int), jnp.float32),
        bg=jnp.zeros((1, f_int), jnp.float32),
        wx=s * jax.random.normal(ks[3], (ca, f_int), jnp.float32),
        bx=jnp.zeros((1, f_int), jnp.float32),
        wp=s * jax.random.normal(ks[4], (f_int, num_atoms), jnp.float32),
        bp=jnp.zeros((1, num_atoms), jnp.float32),
    )


# --------------------------------- main --------------------------------------

if __name__ == "__main__":
    key = jax.random.PRNGKey(0)
    B, Cin, Ain = 2, 4, 16          # input_num_capsule=4, input_num_atoms=16
    num_capsule, num_atoms = 4, 16
    H = W = 8                       # decoder-path spatial; encoder is 2H x 2W

    kx, ke, kp = jax.random.split(key, 3)
    x = jax.random.normal(kx, (B, Cin, Ain, H, W), jnp.float32)
    encoder_features = jax.random.normal(
        ke, (B, num_capsule, num_atoms, 2 * H, 2 * W), jnp.float32)
    params = init_params(kp, input_num_atoms=Ain,
                         num_capsule=num_capsule, num_atoms=num_atoms)

    fwd = jax.jit(functools.partial(
        attention_decoder_caps_forward,
        num_capsule=num_capsule, num_atoms=num_atoms,
        routings=(1, 1), union_type=None))

    out = fwd(encoder_features, x, params)
    jax.block_until_ready(out)
    assert out.shape == (B, num_capsule, num_atoms, 2 * H, 2 * W), out.shape
    assert bool(jnp.all(jnp.isfinite(out)))
    print("KERNEL_OK")
</pallas_src>

<mosaic_0001>
module attributes {stable_mosaic.version = 11 : i64} {
  func.func @_caps_kernel(%arg0: i32, %arg1: memref<32x64xf32, #tpu.memory_space<vmem>>, %arg2: memref<64x256xbf16, #tpu.memory_space<vmem>>, %arg3: memref<1x256xf32, #tpu.memory_space<vmem>>, %arg4: memref<256x256xbf16, #tpu.memory_space<vmem>>, %arg5: memref<32x256xbf16, #tpu.memory_space<vmem>>) attributes {dimension_semantics = [#tpu.dimension_semantics<parallel>], iteration_bounds = array<i64: 4>, scalar_prefetch = 0 : i64, scratch_operands = 0 : i64, tpu.core_type = #tpu.core_type<tc>, window_params = [{transform_indices = @transform_0, window_bounds = array<i64: 32, 64>}, {pipeline_mode = #tpu.pipeline_mode<synchronous>, transform_indices = @transform_1, window_bounds = array<i64: 64, 256>}, {pipeline_mode = #tpu.pipeline_mode<synchronous>, transform_indices = @transform_2, window_bounds = array<i64: 1, 256>}, {pipeline_mode = #tpu.pipeline_mode<synchronous>, transform_indices = @transform_3, window_bounds = array<i64: 256, 256>}, {transform_indices = @transform_4, window_bounds = array<i64: 32, 256>}]} {
    %c0 = arith.constant 0 : index
    %c0_0 = arith.constant 0 : index
    %0 = vector.load %arg2[%c0, %c0_0] : memref<64x256xbf16, #tpu.memory_space<vmem>>, vector<64x256xbf16>
    %c0_1 = arith.constant 0 : index
    %c0_2 = arith.constant 0 : index
    %1 = vector.load %arg1[%c0_1, %c0_2] : memref<32x64xf32, #tpu.memory_space<vmem>>, vector<32x64xf32>
    %c0_3 = arith.constant 0 : index
    %c0_4 = arith.constant 0 : index
    %2 = vector.load %arg3[%c0_3, %c0_4] : memref<1x256xf32, #tpu.memory_space<vmem>>, vector<1x256xf32>
    %c0_5 = arith.constant 0 : index
    %c0_6 = arith.constant 0 : index
    %3 = vector.load %arg4[%c0_5, %c0_6] : memref<256x256xbf16, #tpu.memory_space<vmem>>, vector<256x256xbf16>
    %4 = arith.truncf %1 : vector<32x64xf32> to vector<32x64xbf16>
    %cst = arith.constant dense<0.000000e+00> : vector<32x256xf32>
    %5 = tpu.matmul %4, %0, %cst {dimension_numbers = #tpu.dot_dimension_numbers<[1], [0], [0], [1], [0, 0, 1, 1], [], []>} : vector<32x64xbf16>, vector<64x256xbf16>, vector<32x256xf32> -> vector<32x256xf32>
    %6 = vector.broadcast %2 : vector<1x256xf32> to vector<32x256xf32>
    %7 = arith.addf %5, %6 : vector<32x256xf32>
    %8 = arith.mulf %7, %7 : vector<32x256xf32>
    %9 = arith.truncf %8 : vector<32x256xf32> to vector<32x256xbf16>
    %cst_7 = arith.constant dense<0.000000e+00> : vector<32x256xf32>
    %10 = tpu.matmul %9, %3, %cst_7 {dimension_numbers = #tpu.dot_dimension_numbers<[1], [0], [0], [1], [0, 0, 1, 1], [], []>} : vector<32x256xbf16>, vector<256x256xbf16>, vector<32x256xf32> -> vector<32x256xf32>
    %cst_8 = arith.constant 1.000000e+00 : f32
    %11 = vector.broadcast %cst_8 : f32 to vector<32x256xf32>
    %12 = arith.addf %11, %10 : vector<32x256xf32>
    %13 = arith.divf %10, %12 : vector<32x256xf32>
    %14 = arith.mulf %13, %7 : vector<32x256xf32>
    %cst_9 = arith.constant 1.000000e-07 : f32
    %15 = vector.broadcast %cst_9 : f32 to vector<32x256xf32>
    %16 = arith.addf %10, %15 : vector<32x256xf32>
    %17 = math.rsqrt %16 : vector<32x256xf32>
    %18 = arith.mulf %14, %17 : vector<32x256xf32>
    %19 = arith.truncf %18 : vector<32x256xf32> to vector<32x256xbf16>
    %c0_10 = arith.constant 0 : index
    %c0_11 = arith.constant 0 : index
    %20 = vector.load %arg5[%c0_10, %c0_11] : memref<32x256xbf16, #tpu.memory_space<vmem>>, vector<32x256xbf16>
    tpu.vector_store %arg5[%c0_10, %c0_11], %19 {strides = array<i32>} : memref<32x256xbf16, #tpu.memory_space<vmem>>, vector<32x256xbf16>,
    return
  }
  func.func @transform_0(%arg0: i32) -> (i32, i32) {
    %c0_i32 = arith.constant 0 : i32
    %c0_i32_0 = arith.constant 0 : i32
    return %arg0, %c0_i32 : i32, i32
  }
  func.func @transform_1(%arg0: i32) -> (i32, i32) {
    %c0_i32 = arith.constant 0 : i32
    %c0_i32_0 = arith.constant 0 : i32
    %c0_i32_1 = arith.constant 0 : i32
    return %c0_i32, %c0_i32_0 : i32, i32
  }
  func.func @transform_2(%arg0: i32) -> (i32, i32) {
    %c0_i32 = arith.constant 0 : i32
    %c0_i32_0 = arith.constant 0 : i32
    %c0_i32_1 = arith.constant 0 : i32
    return %c0_i32, %c0_i32_0 : i32, i32
  }
  func.func @transform_3(%arg0: i32) -> (i32, i32) {
    %c0_i32 = arith.constant 0 : i32
    %c0_i32_0 = arith.constant 0 : i32
    %c0_i32_1 = arith.constant 0 : i32
    return %c0_i32, %c0_i32_0 : i32, i32
  }
  func.func @transform_4(%arg0: i32) -> (i32, i32) {
    %c0_i32 = arith.constant 0 : i32
    %c0_i32_0 = arith.constant 0 : i32
    return %arg0, %c0_i32 : i32, i32
  }
}

module attributes {stable_mosaic.version = 11 : i64} {
  func.func @_attention_kernel(%arg0: i32, %arg1: memref<128x64xf32, #tpu.memory_space<vmem>>, %arg2: memref<128x64xbf16, #tpu.memory_space<vmem>>, %arg3: memref<128x32xbf16, #tpu.memory_space<vmem>>, %arg4: memref<1x32xf32, #tpu.memory_space<vmem>>, %arg5: memref<32x64xbf16, #tpu.memory_space<vmem>>, %arg6: memref<1x64xf32, #tpu.memory_space<vmem>>, %arg7: memref<128x64xbf16, #tpu.memory_space<vmem>>) attributes {dimension_semantics = [#tpu.dimension_semantics<parallel>], iteration_bounds = array<i64: 4>, scalar_prefetch = 0 : i64, scratch_operands = 0 : i64, tpu.core_type = #tpu.core_type<tc>, window_params = [{transform_indices = @transform_0, window_bounds = array<i64: 128, 64>}, {transform_indices = @transform_1, window_bounds = array<i64: 128, 64>}, {pipeline_mode = #tpu.pipeline_mode<synchronous>, transform_indices = @transform_2, window_bounds = array<i64: 128, 32>}, {pipeline_mode = #tpu.pipeline_mode<synchronous>, transform_indices = @transform_3, window_bounds = array<i64: 1, 32>}, {pipeline_mode = #tpu.pipeline_mode<synchronous>, transform_indices = @transform_4, window_bounds = array<i64: 32, 64>}, {pipeline_mode = #tpu.pipeline_mode<synchronous>, transform_indices = @transform_5, window_bounds = array<i64: 1, 64>}, {transform_indices = @transform_6, window_bounds = array<i64: 128, 64>}]} {
    %c0 = arith.constant 0 : index
    %c0_0 = arith.constant 0 : index
    %0 = vector.load %arg2[%c0, %c0_0] : memref<128x64xbf16, #tpu.memory_space<vmem>>, vector<128x64xbf16>
    %c0_1 = arith.constant 0 : index
    %c0_2 = arith.constant 0 : index
    %1 = vector.load %arg1[%c0_1, %c0_2] : memref<128x64xf32, #tpu.memory_space<vmem>>, vector<128x64xf32>
    %2 = arith.truncf %1 : vector<128x64xf32> to vector<128x64xbf16>
    %3 = tpu.concatenate %2, %0 in 1 : vector<128x64xbf16>, vector<128x64xbf16> -> vector<128x128xbf16>
    %c0_3 = arith.constant 0 : index
    %c0_4 = arith.constant 0 : index
    %4 = vector.load %arg3[%c0_3, %c0_4] : memref<128x32xbf16, #tpu.memory_space<vmem>>, vector<128x32xbf16>
    %cst = arith.constant dense<0.000000e+00> : vector<128x32xf32>
    %5 = tpu.matmul %3, %4, %cst {dimension_numbers = #tpu.dot_dimension_numbers<[1], [0], [0], [1], [0, 0, 1, 1], [], []>} : vector<128x128xbf16>, vector<128x32xbf16>, vector<128x32xf32> -> vector<128x32xf32>
    %c0_5 = arith.constant 0 : index
    %c0_6 = arith.constant 0 : index
    %6 = vector.load %arg4[%c0_5, %c0_6] : memref<1x32xf32, #tpu.memory_space<vmem>>, vector<1x32xf32>
    %7 = vector.broadcast %6 : vector<1x32xf32> to vector<128x32xf32>
    %8 = arith.addf %5, %7 : vector<128x32xf32>
    %cst_7 = arith.constant 0.000000e+00 : f32
    %9 = vector.broadcast %cst_7 : f32 to vector<128x32xf32>
    %10 = arith.maximumf %8, %9 : vector<128x32xf32>
    %11 = arith.truncf %10 : vector<128x32xf32> to vector<128x32xbf16>
    %c0_8 = arith.constant 0 : index
    %c0_9 = arith.constant 0 : index
    %12 = vector.load %arg5[%c0_8, %c0_9] : memref<32x64xbf16, #tpu.memory_space<vmem>>, vector<32x64xbf16>
    %cst_10 = arith.constant dense<0.000000e+00> : vector<128x64xf32>
    %13 = tpu.matmul %11, %12, %cst_10 {dimension_numbers = #tpu.dot_dimension_numbers<[1], [0], [0], [1], [0, 0, 1, 1], [], []>} : vector<128x32xbf16>, vector<32x64xbf16>, vector<128x64xf32> -> vector<128x64xf32>
    %c0_11 = arith.constant 0 : index
    %c0_12 = arith.constant 0 : index
    %14 = vector.load %arg6[%c0_11, %c0_12] : memref<1x64xf32, #tpu.memory_space<vmem>>, vector<1x64xf32>
    %15 = vector.broadcast %14 : vector<1x64xf32> to vector<128x64xf32>
    %16 = arith.addf %13, %15 : vector<128x64xf32>
    %17 = arith.negf %16 : vector<128x64xf32>
    %18 = math.exp %17 : vector<128x64xf32>
    %cst_13 = arith.constant 1.000000e+00 : f32
    %19 = vector.broadcast %cst_13 : f32 to vector<128x64xf32>
    %20 = arith.addf %19, %18 : vector<128x64xf32>
    %21 = arith.divf %19, %20 : vector<128x64xf32>
    %22 = arith.extf %0 : vector<128x64xbf16> to vector<128x64xf32>
    %23 = arith.mulf %22, %21 : vector<128x64xf32>
    %24 = arith.truncf %23 : vector<128x64xf32> to vector<128x64xbf16>
    %c0_14 = arith.constant 0 : index
    %c0_15 = arith.constant 0 : index
    %25 = vector.load %arg7[%c0_14, %c0_15] : memref<128x64xbf16, #tpu.memory_space<vmem>>, vector<128x64xbf16>
    tpu.vector_store %arg7[%c0_14, %c0_15], %24 {strides = array<i32>} : memref<128x64xbf16, #tpu.memory_space<vmem>>, vector<128x64xbf16>,
    return
  }
  func.func @transform_0(%arg0: i32) -> (i32, i32) {
    %c0_i32 = arith.constant 0 : i32
    %c0_i32_0 = arith.constant 0 : i32
    return %arg0, %c0_i32 : i32, i32
  }
  func.func @transform_1(%arg0: i32) -> (i32, i32) {
    %c0_i32 = arith.constant 0 : i32
    %c0_i32_0 = arith.constant 0 : i32
    return %arg0, %c0_i32 : i32, i32
  }
  func.func @transform_2(%arg0: i32) -> (i32, i32) {
    %c0_i32 = arith.constant 0 : i32
    %c0_i32_0 = arith.constant 0 : i32
    %c0_i32_1 = arith.constant 0 : i32
    return %c0_i32, %c0_i32_0 : i32, i32
  }
  func.func @transform_3(%arg0: i32) -> (i32, i32) {
    %c0_i32 = arith.constant 0 : i32
    %c0_i32_0 = arith.constant 0 : i32
    %c0_i32_1 = arith.constant 0 : i32
    return %c0_i32, %c0_i32_0 : i32, i32
  }
  func.func @transform_4(%arg0: i32) -> (i32, i32) {
    %c0_i32 = arith.constant 0 : i32
    %c0_i32_0 = arith.constant 0 : i32
    %c0_i32_1 = arith.constant 0 : i32
    return %c0_i32, %c0_i32_0 : i32, i32
  }
  func.func @transform_5(%arg0: i32) -> (i32, i32) {
    %c0_i32 = arith.constant 0 : i32
    %c0_i32_0 = arith.constant 0 : i32
    %c0_i32_1 = arith.constant 0 : i32
    return %c0_i32, %c0_i32_0 : i32, i32
  }
  func.func @transform_6(%arg0: i32) -> (i32, i32) {
    %c0_i32 = arith.constant 0 : i32
    %c0_i32_0 = arith.constant 0 : i32
    return %arg0, %c0_i32 : i32, i32
  }
}

module attributes {stable_mosaic.version = 11 : i64} {
  func.func @_conv_caps_kernel(%arg0: i32, %arg1: memref<256x64xbf16, #tpu.memory_space<vmem>>, %arg2: memref<576x64xbf16, #tpu.memory_space<vmem>>, %arg3: memref<256x9xbf16, #tpu.memory_space<vmem>>, %arg4: memref<1x64xf32, #tpu.memory_space<vmem>>, %arg5: memref<64x64xbf16, #tpu.memory_space<vmem>>, %arg6: memref<256x64xf32, #tpu.memory_space<vmem>>) attributes {dimension_semantics = [#tpu.dimension_semantics<parallel>], iteration_bounds = array<i64: 2>, scalar_prefetch = 0 : i64, scratch_operands = 0 : i64, tpu.core_type = #tpu.core_type<tc>, window_params = [{transform_indices = @transform_0, window_bounds = array<i64: 256, 64>}, {pipeline_mode = #tpu.pipeline_mode<synchronous>, transform_indices = @transform_1, window_bounds = array<i64: 576, 64>}, {pipeline_mode = #tpu.pipeline_mode<synchronous>, transform_indices = @transform_2, window_bounds = array<i64: 256, 9>}, {pipeline_mode = #tpu.pipeline_mode<synchronous>, transform_indices = @transform_3, window_bounds = array<i64: 1, 64>}, {pipeline_mode = #tpu.pipeline_mode<synchronous>, transform_indices = @transform_4, window_bounds = array<i64: 64, 64>}, {transform_indices = @transform_5, window_bounds = array<i64: 256, 64>}]} {
    %c0 = arith.constant 0 : index
    %c0_0 = arith.constant 0 : index
    %0 = vector.load %arg1[%c0, %c0_0] : memref<256x64xbf16, #tpu.memory_space<vmem>>, vector<256x64xbf16>
    %c0_1 = arith.constant 0 : index
    %c0_2 = arith.constant 0 : index
    %1 = vector.load %arg3[%c0_1, %c0_2] : memref<256x9xbf16, #tpu.memory_space<vmem>>, vector<256x9xbf16>
    %2 = vector.extract_strided_slice %0 {offsets = [239, 0], sizes = [17, 64], strides = [1, 1]} : vector<256x64xbf16> to vector<17x64xbf16>
    %3 = vector.extract_strided_slice %0 {offsets = [0, 0], sizes = [239, 64], strides = [1, 1]} : vector<256x64xbf16> to vector<239x64xbf16>
    %4 = tpu.concatenate %2, %3 in 0 : vector<17x64xbf16>, vector<239x64xbf16> -> vector<256x64xbf16>
    %5 = vector.extract_strided_slice %1 {offsets = [0, 0], sizes = [256, 1], strides = [1, 1]} : vector<256x9xbf16> to vector<256x1xbf16>
    %6 = vector.broadcast %5 : vector<256x1xbf16> to vector<256x64xbf16>
    %7 = arith.mulf %4, %6 : vector<256x64xbf16>
    %c0_3 = arith.constant 0 : index
    %c0_4 = arith.constant 0 : index
    %8 = vector.load %arg2[%c0_3, %c0_4] : memref<576x64xbf16, #tpu.memory_space<vmem>>, vector<64x64xbf16>
    %cst = arith.constant dense<0.000000e+00> : vector<256x64xf32>
    %9 = tpu.matmul %7, %8, %cst {dimension_numbers = #tpu.dot_dimension_numbers<[1], [0], [0], [1], [0, 0, 1, 1], [], []>} : vector<256x64xbf16>, vector<64x64xbf16>, vector<256x64xf32> -> vector<256x64xf32>
    %10 = vector.extract_strided_slice %0 {offsets = [240, 0], sizes = [16, 64], strides = [1, 1]} : vector<256x64xbf16> to vector<16x64xbf16>
    %11 = vector.extract_strided_slice %0 {offsets = [0, 0], sizes = [240, 64], strides = [1, 1]} : vector<256x64xbf16> to vector<240x64xbf16>
    %12 = tpu.concatenate %10, %11 in 0 : vector<16x64xbf16>, vector<240x64xbf16> -> vector<256x64xbf16>
    %13 = vector.extract_strided_slice %1 {offsets = [0, 1], sizes = [256, 1], strides = [1, 1]} : vector<256x9xbf16> to vector<256x1xbf16>
    %14 = vector.broadcast %13 : vector<256x1xbf16> to vector<256x64xbf16>
    %15 = arith.mulf %12, %14 : vector<256x64xbf16>
    %c64 = arith.constant 64 : index
    %c0_5 = arith.constant 0 : index
    %16 = vector.load %arg2[%c64, %c0_5] : memref<576x64xbf16, #tpu.memory_space<vmem>>, vector<64x64xbf16>
    %cst_6 = arith.constant dense<0.000000e+00> : vector<256x64xf32>
    %17 = tpu.matmul %15, %16, %cst_6 {dimension_numbers = #tpu.dot_dimension_numbers<[1], [0], [0], [1], [0, 0, 1, 1], [], []>} : vector<256x64xbf16>, vector<64x64xbf16>, vector<256x64xf32> -> vector<256x64xf32>
    %18 = arith.addf %9, %17 : vector<256x64xf32>
    %19 = vector.extract_strided_slice %0 {offsets = [241, 0], sizes = [15, 64], strides = [1, 1]} : vector<256x64xbf16> to vector<15x64xbf16>
    %20 = vector.extract_strided_slice %0 {offsets = [0, 0], sizes = [241, 64], strides = [1, 1]} : vector<256x64xbf16> to vector<241x64xbf16>
    %21 = tpu.concatenate %19, %20 in 0 : vector<15x64xbf16>, vector<241x64xbf16> -> vector<256x64xbf16>
    %22 = vector.extract_strided_slice %1 {offsets = [0, 2], sizes = [256, 1], strides = [1, 1]} : vector<256x9xbf16> to vector<256x1xbf16>
    %23 = vector.broadcast %22 : vector<256x1xbf16> to vector<256x64xbf16>
    %24 = arith.mulf %21, %23 : vector<256x64xbf16>
    %c128 = arith.constant 128 : index
    %c0_7 = arith.constant 0 : index
    %25 = vector.load %arg2[%c128, %c0_7] : memref<576x64xbf16, #tpu.memory_space<vmem>>, vector<64x64xbf16>
    %cst_8 = arith.constant dense<0.000000e+00> : vector<256x64xf32>
    %26 = tpu.matmul %24, %25, %cst_8 {dimension_numbers = #tpu.dot_dimension_numbers<[1], [0], [0], [1], [0, 0, 1, 1], [], []>} : vector<256x64xbf16>, vector<64x64xbf16>, vector<256x64xf32> -> vector<256x64xf32>
    %27 = arith.addf %18, %26 : vector<256x64xf32>
    %28 = vector.extract_strided_slice %0 {offsets = [255, 0], sizes = [1, 64], strides = [1, 1]} : vector<256x64xbf16> to vector<1x64xbf16>
    %29 = vector.extract_strided_slice %0 {offsets = [0, 0], sizes = [255, 64], strides = [1, 1]} : vector<256x64xbf16> to vector<255x64xbf16>
    %30 = tpu.concatenate %28, %29 in 0 : vector<1x64xbf16>, vector<255x64xbf16> -> vector<256x64xbf16>
    %31 = vector.extract_strided_slice %1 {offsets = [0, 3], sizes = [256, 1], strides = [1, 1]} : vector<256x9xbf16> to vector<256x1xbf16>
    %32 = vector.broadcast %31 : vector<256x1xbf16> to vector<256x64xbf16>
    %33 = arith.mulf %30, %32 : vector<256x64xbf16>
    %c192 = arith.constant 192 : index
    %c0_9 = arith.constant 0 : index
    %34 = vector.load %arg2[%c192, %c0_9] : memref<576x64xbf16, #tpu.memory_space<vmem>>, vector<64x64xbf16>
    %cst_10 = arith.constant dense<0.000000e+00> : vector<256x64xf32>
    %35 = tpu.matmul %33, %34, %cst_10 {dimension_numbers = #tpu.dot_dimension_numbers<[1], [0], [0], [1], [0, 0, 1, 1], [], []>} : vector<256x64xbf16>, vector<64x64xbf16>, vector<256x64xf32> -> vector<256x64xf32>
    %36 = arith.addf %27, %35 : vector<256x64xf32>
    %37 = vector.extract_strided_slice %1 {offsets = [0, 4], sizes = [256, 1], strides = [1, 1]} : vector<256x9xbf16> to vector<256x1xbf16>
    %38 = vector.broadcast %37 : vector<256x1xbf16> to vector<256x64xbf16>
    %39 = arith.mulf %0, %38 : vector<256x64xbf16>
    %c256 = arith.constant 256 : index
    %c0_11 = arith.constant 0 : index
    %40 = vector.load %arg2[%c256, %c0_11] : memref<576x64xbf16, #tpu.memory_space<vmem>>, vector<64x64xbf16>
    %cst_12 = arith.constant dense<0.000000e+00> : vector<256x64xf32>
    %41 = tpu.matmul %39, %40, %cst_12 {dimension_numbers = #tpu.dot_dimension_numbers<[1], [0], [0], [1], [0, 0, 1, 1], [], []>} : vector<256x64xbf16>, vector<64x64xbf16>, vector<256x64xf32> -> vector<256x64xf32>
    %42 = arith.addf %36, %41 : vector<256x64xf32>
    %43 = vector.extract_strided_slice %0 {offsets = [1, 0], sizes = [255, 64], strides = [1, 1]} : vector<256x64xbf16> to vector<255x64xbf16>
    %44 = vector.extract_strided_slice %0 {offsets = [0, 0], sizes = [1, 64], strides = [1, 1]} : vector<256x64xbf16> to vector<1x64xbf16>
    %45 = tpu.concatenate %43, %44 in 0 : vector<255x64xbf16>, vector<1x64xbf16> -> vector<256x64xbf16>
    %46 = vector.extract_strided_slice %1 {offsets = [0, 5], sizes = [256, 1], strides = [1, 1]} : vector<256x9xbf16> to vector<256x1xbf16>
    %47 = vector.broadcast %46 : vector<256x1xbf16> to vector<256x64xbf16>
    %48 = arith.mulf %45, %47 : vector<256x64xbf16>
    %c320 = arith.constant 320 : index
    %c0_13 = arith.constant 0 : index
    %49 = vector.load %arg2[%c320, %c0_13] : memref<576x64xbf16, #tpu.memory_space<vmem>>, vector<64x64xbf16>
    %cst_14 = arith.constant dense<0.000000e+00> : vector<256x64xf32>
    %50 = tpu.matmul %48, %49, %cst_14 {dimension_numbers = #tpu.dot_dimension_numbers<[1], [0], [0], [1], [0, 0, 1, 1], [], []>} : vector<256x64xbf16>, vector<64x64xbf16>, vector<256x64xf32> -> vector<256x64xf32>
    %51 = arith.addf %42, %50 : vector<256x64xf32>
    %52 = vector.extract_strided_slice %0 {offsets = [15, 0], sizes = [241, 64], strides = [1, 1]} : vector<256x64xbf16> to vector<241x64xbf16>
    %53 = vector.extract_strided_slice %0 {offsets = [0, 0], sizes = [15, 64], strides = [1, 1]} : vector<256x64xbf16> to vector<15x64xbf16>
    %54 = tpu.concatenate %52, %53 in 0 : vector<241x64xbf16>, vector<15x64xbf16> -> vector<256x64xbf16>
    %55 = vector.extract_strided_slice %1 {offsets = [0, 6], sizes = [256, 1], strides = [1, 1]} : vector<256x9xbf16> to vector<256x1xbf16>
    %56 = vector.broadcast %55 : vector<256x1xbf16> to vector<256x64xbf16>
    %57 = arith.mulf %54, %56 : vector<256x64xbf16>
    %c384 = arith.constant 384 : index
    %c0_15 = arith.constant 0 : index
    %58 = vector.load %arg2[%c384, %c0_15] : memref<576x64xbf16, #tpu.memory_space<vmem>>, vector<64x64xbf16>
    %cst_16 = arith.constant dense<0.000000e+00> : vector<256x64xf32>
    %59 = tpu.matmul %57, %58, %cst_16 {dimension_numbers = #tpu.dot_dimension_numbers<[1], [0], [0], [1], [0, 0, 1, 1], [], []>} : vector<256x64xbf16>, vector<64x64xbf16>, vector<256x64xf32> -> vector<256x64xf32>
    %60 = arith.addf %51, %59 : vector<256x64xf32>
    %61 = vector.extract_strided_slice %0 {offsets = [16, 0], sizes = [240, 64], strides = [1, 1]} : vector<256x64xbf16> to vector<240x64xbf16>
    %62 = vector.extract_strided_slice %0 {offsets = [0, 0], sizes = [16, 64], strides = [1, 1]} : vector<256x64xbf16> to vector<16x64xbf16>
    %63 = tpu.concatenate %61, %62 in 0 : vector<240x64xbf16>, vector<16x64xbf16> -> vector<256x64xbf16>
    %64 = vector.extract_strided_slice %1 {offsets = [0, 7], sizes = [256, 1], strides = [1, 1]} : vector<256x9xbf16> to vector<256x1xbf16>
    %65 = vector.broadcast %64 : vector<256x1xbf16> to vector<256x64xbf16>
    %66 = arith.mulf %63, %65 : vector<256x64xbf16>
    %c448 = arith.constant 448 : index
    %c0_17 = arith.constant 0 : index
    %67 = vector.load %arg2[%c448, %c0_17] : memref<576x64xbf16, #tpu.memory_space<vmem>>, vector<64x64xbf16>
    %cst_18 = arith.constant dense<0.000000e+00> : vector<256x64xf32>
    %68 = tpu.matmul %66, %67, %cst_18 {dimension_numbers = #tpu.dot_dimension_numbers<[1], [0], [0], [1], [0, 0, 1, 1], [], []>} : vector<256x64xbf16>, vector<64x64xbf16>, vector<256x64xf32> -> vector<256x64xf32>
    %69 = arith.addf %60, %68 : vector<256x64xf32>
    %70 = vector.extract_strided_slice %0 {offsets = [17, 0], sizes = [239, 64], strides = [1, 1]} : vector<256x64xbf16> to vector<239x64xbf16>
    %71 = vector.extract_strided_slice %0 {offsets = [0, 0], sizes = [17, 64], strides = [1, 1]} : vector<256x64xbf16> to vector<17x64xbf16>
    %72 = tpu.concatenate %70, %71 in 0 : vector<239x64xbf16>, vector<17x64xbf16> -> vector<256x64xbf16>
    %73 = vector.extract_strided_slice %1 {offsets = [0, 8], sizes = [256, 1], strides = [1, 1]} : vector<256x9xbf16> to vector<256x1xbf16>
    %74 = vector.broadcast %73 : vector<256x1xbf16> to vector<256x64xbf16>
    %75 = arith.mulf %72, %74 : vector<256x64xbf16>
    %c512 = arith.constant 512 : index
    %c0_19 = arith.constant 0 : index
    %76 = vector.load %arg2[%c512, %c0_19] : memref<576x64xbf16, #tpu.memory_space<vmem>>, vector<64x64xbf16>
    %cst_20 = arith.constant dense<0.000000e+00> : vector<256x64xf32>
    %77 = tpu.matmul %75, %76, %cst_20 {dimension_numbers = #tpu.dot_dimension_numbers<[1], [0], [0], [1], [0, 0, 1, 1], [], []>} : vector<256x64xbf16>, vector<64x64xbf16>, vector<256x64xf32> -> vector<256x64xf32>
    %78 = arith.addf %69, %77 : vector<256x64xf32>
    %c0_21 = arith.constant 0 : index
    %c0_22 = arith.constant 0 : index
    %79 = vector.load %arg4[%c0_21, %c0_22] : memref<1x64xf32, #tpu.memory_space<vmem>>, vector<1x64xf32>
    %80 = vector.broadcast %79 : vector<1x64xf32> to vector<256x64xf32>
    %81 = arith.addf %78, %80 : vector<256x64xf32>
    %82 = arith.mulf %81, %81 : vector<256x64xf32>
    %83 = arith.truncf %82 : vector<256x64xf32> to vector<256x64xbf16>
    %c0_23 = arith.constant 0 : index
    %c0_24 = arith.constant 0 : index
    %84 = vector.load %arg5[%c0_23, %c0_24] : memref<64x64xbf16, #tpu.memory_space<vmem>>, vector<64x64xbf16>
    %cst_25 = arith.constant dense<0.000000e+00> : vector<256x64xf32>
    %85 = tpu.matmul %83, %84, %cst_25 {dimension_numbers = #tpu.dot_dimension_numbers<[1], [0], [0], [1], [0, 0, 1, 1], [], []>} : vector<256x64xbf16>, vector<64x64xbf16>, vector<256x64xf32> -> vector<256x64xf32>
    %cst_26 = arith.constant 1.000000e+00 : f32
    %86 = vector.broadcast %cst_26 : f32 to vector<256x64xf32>
    %87 = arith.addf %86, %85 : vector<256x64xf32>
    %88 = arith.divf %85, %87 : vector<256x64xf32>
    %89 = arith.mulf %88, %81 : vector<256x64xf32>
    %cst_27 = arith.constant 1.000000e-07 : f32
    %90 = vector.broadcast %cst_27 : f32 to vector<256x64xf32>
    %91 = arith.addf %85, %90 : vector<256x64xf32>
    %92 = math.rsqrt %91 : vector<256x64xf32>
    %93 = arith.mulf %89, %92 : vector<256x64xf32>
    %c0_28 = arith.constant 0 : index
    %c0_29 = arith.constant 0 : index
    %94 = vector.load %arg6[%c0_28, %c0_29] : memref<256x64xf32, #tpu.memory_space<vmem>>, vector<256x64xf32>
    tpu.vector_store %arg6[%c0_28, %c0_29], %93 {strides = array<i32>} : memref<256x64xf32, #tpu.memory_space<vmem>>, vector<256x64xf32>,
    return
  }
  func.func @transform_0(%arg0: i32) -> (i32, i32) {
    %c0_i32 = arith.constant 0 : i32
    %c0_i32_0 = arith.constant 0 : i32
    return %arg0, %c0_i32 : i32, i32
  }
  func.func @transform_1(%arg0: i32) -> (i32, i32) {
    %c0_i32 = arith.constant 0 : i32
    %c0_i32_0 = arith.constant 0 : i32
    %c0_i32_1 = arith.constant 0 : i32
    return %c0_i32, %c0_i32_0 : i32, i32
  }
  func.func @transform_2(%arg0: i32) -> (i32, i32) {
    %c0_i32 = arith.constant 0 : i32
    %c0_i32_0 = arith.constant 0 : i32
    %c0_i32_1 = arith.constant 0 : i32
    return %c0_i32, %c0_i32_0 : i32, i32
  }
  func.func @transform_3(%arg0: i32) -> (i32, i32) {
    %c0_i32 = arith.constant 0 : i32
    %c0_i32_0 = arith.constant 0 : i32
    %c0_i32_1 = arith.constant 0 : i32
    return %c0_i32, %c0_i32_0 : i32, i32
  }
  func.func @transform_4(%arg0: i32) -> (i32, i32) {
    %c0_i32 = arith.constant 0 : i32
    %c0_i32_0 = arith.constant 0 : i32
    %c0_i32_1 = arith.constant 0 : i32
    return %c0_i32, %c0_i32_0 : i32, i32
  }
  func.func @transform_5(%arg0: i32) -> (i32, i32) {
    %c0_i32 = arith.constant 0 : i32
    %c0_i32_0 = arith.constant 0 : i32
    return %arg0, %c0_i32 : i32, i32
  }
}

</mosaic_0001>

<bundles_post_ra>
// kernel: attention_decoder_caps_forward.3
= control target key start
LH: loop header
LB: loop body
LE: loop exit
PB: predicated region body
PF: predicated region fallthrough
CT: control target
= control target key end

     0   :  { %s927_s15 = smov 0   ;;  %s1122_s0 = inlined_call_operand.vmem [shape: f32[128,64], index: 0, kind: input, shape index: {}]   ;;  %s1123_s1 = inlined_call_operand.vmem [shape: bf16[64,256], index: 1, kind: input, shape index: {}]   ;;  %s1124_s2 = inlined_call_operand.vmem [shape: f32[1,256], index: 2, kind: input, shape index: {}]   ;;  %s1125_s3 = inlined_call_operand.vmem [shape: bf16[256,256], index: 3, kind: input, shape index: {}]   ;;  %s1126_s4 = inlined_call_operand.vmem [shape: bf16[128,256], index: 4, kind: output, shape index: {}]  }
   0x1 LB: > { %s729_s16 = sadd.s32 4294967295, %s899_s15   ;;  %p733_p0 = scmp.ge.s32.totalorder %s899_s15, 1  ;;  %s899_s15 = sphi %s927_s15, %s14_s15  }
   0x2   : > { %p163_p1 = scmp.lt.s32.totalorder %s899_s15, 5 }
   0x4   : > { %p164_p2 = pnand %p733_p0, %p163_p1 }
   0x5   : > { %v801_v0 = vld [vmem:[%s1123_s1 + $0x4] ss:$8 sps:$4 sm:$0xff] (!%p164_p2)   ;;  %s734_s19 = sshll.u32 (!%p164_p2), %s729_s16, 2  ;;  %v803_v1 = vld [vmem:[%s1123_s1] ss:$8 sps:$4 sm:$0xff] (!%p164_p2)   ;;  %v901_v2 = vmov (!%p164_p2), 0   ;;  %v252_v47 = vlaneseq (!%p164_p2) }
   0x6   : > { %167 = sbr.rel (%p164_p2) target bundleno = 492 (0x1ec), region = 36  ;;  %341 = vmatprep.mubr.bf16.mxu0 (!%p164_p2), %v901_v2  ;;  %p191_p3 = scmp.lt.s32.totalorder (!%p164_p2), %s734_s19, 15  ;;  %309 = vmatprep.subr.bf16.mxu0 (!%p164_p2), %v801_v0  ;;  %v804_v3 = vld [vmem:[%s1123_s1 + $0x14] ss:$8 sps:$4 sm:$0xff] (!%p164_p2)   ;;  %v806_v4 = vld [vmem:[%s1123_s1 + $0x10] ss:$8 sps:$4 sm:$0xff] (!%p164_p2)  }
   0x7   : > { %310 = vmatpush1.bf16.msra.mxu0 (!%p164_p2), %v803_v1  ;;  %v807_v5 = vld [vmem:[%s1123_s1 + $0x24] ss:$8 sps:$4 sm:$0xff] (!%p164_p2)   ;;  %v815_v7 = vld [vmem:[%s1125_s3] ss:$8 sps:$4 sm:$0xff] (!%p164_p2)   ;;  %v810_v9 = vld [vmem:[%s1123_s1 + $0x34] ss:$8 sps:$4 sm:$0xff] (!%p164_p2)  }
   0x8   : > { %311 = vmatprep.subr.bf16.mxu0 (!%p164_p2), %v804_v3  ;;  %v813_v6 = vld [vmem:[%s1125_s3 + $0x4] ss:$8 sps:$4 sm:$0xff] (!%p164_p2)   ;;  %v809_v8 = vld [vmem:[%s1123_s1 + $0x20] ss:$8 sps:$4 sm:$0xff] (!%p164_p2)   ;;  %v816_v10 = vld [vmem:[%s1125_s3 + $0x14] ss:$8 sps:$4 sm:$0xff] (!%p164_p2)  }
   0x9   : > { %534 = vmatprep.subr.bf16.mxu1 (!%p164_p2), %v813_v6  ;;  %v818_v11 = vld [vmem:[%s1125_s3 + $0x10] ss:$8 sps:$4 sm:$0xff] (!%p164_p2)   ;;  %v819_v13 = vld [vmem:[%s1125_s3 + $0x24] ss:$8 sps:$4 sm:$0xff] (!%p164_p2)   ;;  %v821_v16 = vld [vmem:[%s1125_s3 + $0x20] ss:$8 sps:$4 sm:$0xff] (!%p164_p2)  }
   0xa   : > { %535 = vmatpush1.bf16.msra.mxu1 (!%p164_p2), %v815_v7  ;;  %v812_v12 = vld [vmem:[%s1123_s1 + $0x30] ss:$8 sps:$4 sm:$0xff] (!%p164_p2)   ;;  %v822_v18 = vld [vmem:[%s1125_s3 + $0x34] ss:$8 sps:$4 sm:$0xff] (!%p164_p2)   ;;  %vm302_vm0 = vcmask (!%p164_p2), 523264   ;;  %v253_v48 = vshrl.u32 (!%p164_p2), %v252_v47, 7 }
   0xb   : > { %312 = vmatpush1.bf16.msra.mxu0 (!%p164_p2), %v806_v4  ;;  %536 = vmatprep.subr.bf16.mxu1 (!%p164_p2), %v816_v10  ;;  %v824_v19 = vld [vmem:[%s1125_s3 + $0x30] ss:$8 sps:$4 sm:$0xff] (!%p164_p2)   ;;  %v825_v20 = vld [vmem:[%s1125_s3 + $0x44] ss:$8 sps:$4 sm:$0xff] (!%p164_p2)   ;;  %v827_v23 = vld [vmem:[%s1125_s3 + $0x40] ss:$8 sps:$4 sm:$0xff] (!%p164_p2)  }
   0xc   : > { %313 = vmatprep.subr.bf16.mxu0 (!%p164_p2), %v807_v5  ;;  %v828_v25 = vld [vmem:[%s1125_s3 + $0x54] ss:$8 sps:$4 sm:$0xff] (!%p164_p2)   ;;  %v830_v26 = vld [vmem:[%s1125_s3 + $0x50] ss:$8 sps:$4 sm:$0xff] (!%p164_p2)   ;;  %v831_v27 = vld [vmem:[%s1125_s3 + $0x64] ss:$8 sps:$4 sm:$0xff] (!%p164_p2)  }
   0xd   : > { %s1128_s19 = smov (!%p191_p3, %s734_s19), 15  ;;  %v833_v28 = vld [vmem:[%s1125_s3 + $0x60] ss:$8 sps:$4 sm:$0xff]   ;;  %v834_v29 = vld [vmem:[%s1125_s3 + $0x74] ss:$8 sps:$4 sm:$0xff]   ;;  %v258_v49 = vsub.s32 1, %v253_v48 }
   0xe   : > { %s735_s28 = sshll.u32 %s1128_s19, 3  ;;  %537 = vmatpush1.bf16.msra.mxu1 %v818_v11  ;;  %v836_v30 = vld [vmem:[%s1125_s3 + $0x70] ss:$8 sps:$4 sm:$0xff]   ;;  %v837_v31 = vld [vmem:[%s1125_s3 + $0x84] ss:$8 sps:$4 sm:$0xff]   ;;  %v254_v51 = vsub.s32 0, %v253_v48 }
   0xf   : > { %s194_s13 = scalar_lea.vmem %s1122_s0, %s735_s28  ;;  %314 = vmatpush1.bf16.msra.mxu0 %v809_v8  ;;  %538 = vmatprep.subr.bf16.mxu1 %v819_v13  ;;  %v839_v32 = vld [vmem:[%s1125_s3 + $0x80] ss:$8 sps:$4 sm:$0xff]   ;;  %v840_v33 = vld [vmem:[%s1125_s3 + $0x94] ss:$8 sps:$4 sm:$0xff]   ;;  %v842_v34 = vld [vmem:[%s1125_s3 + $0x90] ss:$8 sps:$4 sm:$0xff]   ;;  %s1108_s11 = scalar_lea.vmem %s1126_s4, %s735_s28 }
  0x10   : > { %v212_v14 = vld [vmem:[%s194_s13] sm:$0xff]  ;;  %v213_v15 = vld [vmem:[%s194_s13 + $0x8] sm:$0xff]  ;;  %315 = vmatprep.subr.bf16.mxu0 %v810_v9  ;;  %v214_v21 = vld [vmem:[%s194_s13 + $0x10] sm:$0xff] }
  0x11   : > { %v249_v17 = vpack.c.bf16 %v213_v15, %v212_v14  ;;  %v215_v22 = vld [vmem:[%s194_s13 + $0x18] sm:$0xff]  ;;  %v843_v35 = vld [vmem:[%s1125_s3 + $0xa4] ss:$8 sps:$4 sm:$0xff]   ;;  %v845_v36 = vld [vmem:[%s1125_s3 + $0xa0] ss:$8 sps:$4 sm:$0xff]  }
  0x12   : > { %539 = vmatpush1.bf16.msra.mxu1 %v821_v16  ;;  %v250_v24 = vpack.c.bf16 %v215_v22, %v214_v21  ;;  %v846_v37 = vld [vmem:[%s1125_s3 + $0xb4] ss:$8 sps:$4 sm:$0xff]   ;;  %v848_v38 = vld [vmem:[%s1125_s3 + $0xb0] ss:$8 sps:$4 sm:$0xff]   ;;  %v849_v39 = vld [vmem:[%s1125_s3 + $0xc4] ss:$8 sps:$4 sm:$0xff]  }
  0x13   : > { %316 = vmatpush1.bf16.msra.mxu0 %v812_v12  ;;  %540 = vmatprep.subr.bf16.mxu1 %v822_v18  ;;  %v851_v40 = vld [vmem:[%s1125_s3 + $0xc0] ss:$8 sps:$4 sm:$0xff]   ;;  %v852_v41 = vld [vmem:[%s1125_s3 + $0xd4] ss:$8 sps:$4 sm:$0xff]   ;;  %v854_v42 = vld [vmem:[%s1125_s3 + $0xd0] ss:$8 sps:$4 sm:$0xff]  }
  0x14   : > { %v855_v43 = vld [vmem:[%s1125_s3 + $0xe4] ss:$8 sps:$4 sm:$0xff]   ;;  %v857_v44 = vld [vmem:[%s1125_s3 + $0xe0] ss:$8 sps:$4 sm:$0xff]   ;;  %v858_v45 = vld [vmem:[%s1125_s3 + $0xf4] ss:$8 sps:$4 sm:$0xff]  }
  0x15   : > { %v860_v46 = vld [vmem:[%s1125_s3 + $0xf0] ss:$8 sps:$4 sm:$0xff]   ;;  %v216_v50 = vld [vmem:[%s1124_s2] sm:$0x3] }
  0x16   : > { %747 = vmatmul.mubr.msk.bf16.vlgmr.msra.gmra.mrb[0].mxu0 %vm302_vm0, %v249_v17  ;;  %541 = vmatpush1.bf16.msra.mxu1 %v824_v19  ;;  %v259_v52 = vrot.slane %v216_v50, %v258_v49  ;;  %v255_v53 = vrot.slane %v216_v50, %v254_v51 }
  0x17   : > { %351 = vmatprep.mubr.bf16.mxu0 %v901_v2  ;;  %542 = vmatprep.subr.bf16.mxu1 %v825_v20 }
  0x1a   : > { %543 = vmatpush1.bf16.msra.mxu1 %v827_v23 }
  0x1b   : > { %544 = vmatprep.subr.bf16.mxu1 %v828_v25 }
  0x1e   : > { %748 = vmatmul.mubr.msk.bf16.gmra.mrb[4].mxu0 %vm302_vm0, %v250_v24  ;;  %545 = vmatpush1.bf16.msra.mxu1 %v830_v26 }
  0x1f   : > { %546 = vmatprep.subr.bf16.mxu1 %v831_v27 }
  0x22   : > { %547 = vmatpush1.bf16.msra.mxu1 %v833_v28 }
  0x23   : > { %548 = vmatprep.subr.bf16.mxu1 %v834_v29 }
  0x26   : > { %549 = vmatpush1.bf16.msra.mxu1 %v836_v30 }
  0x27   : > { %550 = vmatprep.subr.bf16.mxu1 %v837_v31 }
  0x2a   : > { %551 = vmatpush1.bf16.msra.mxu1 %v839_v32 }
  0x2b   : > { %552 = vmatprep.subr.bf16.mxu1 %v840_v33 }
  0x2e   : > { %553 = vmatpush1.bf16.msra.mxu1 %v842_v34 }
  0x2f   : > { %554 = vmatprep.subr.bf16.mxu1 %v843_v35 }
  0x32   : > { %555 = vmatpush1.bf16.msra.mxu1 %v845_v36 }
  0x33   : > { %556 = vmatprep.subr.bf16.mxu1 %v846_v37 }
  0x36   : > { %557 = vmatpush1.bf16.msra.mxu1 %v848_v38 }
  0x37   : > { %558 = vmatprep.subr.bf16.mxu1 %v849_v39 }
  0x3a   : > { %559 = vmatpush1.bf16.msra.mxu1 %v851_v40 }
  0x3b   : > { %560 = vmatprep.subr.bf16.mxu1 %v852_v41 }
  0x3e   : > { %561 = vmatpush1.bf16.msra.mxu1 %v854_v42 }
  0x3f   : > { %562 = vmatprep.subr.bf16.mxu1 %v855_v43 }
  0x42   : > { %563 = vmatpush1.bf16.msra.mxu1 %v857_v44 }
  0x43   : > { %564 = vmatprep.subr.bf16.mxu1 %v858_v45 }
  0x46   : > { %565 = vmatpush1.bf16.msra.mxu1 %v860_v46 }
  0xe9   : > { %v343_v54 = vpop.f32.mrb[0].mxu0 }
  0xea   : > { %v345_v55 = vpop.f32.mrb[1].mxu0  ;;  %v1070_v58 = vadd.f32 %v343_v54, %v255_v53 }
  0xeb   : > { %v1068_v56 = vadd.f32 %v345_v55, %v259_v52  ;;  %v347_v57 = vpop.f32.mrb[2].mxu0 }
  0xec   : > { %v1072_v59 = vadd.f32 %v347_v57, %v255_v53  ;;  %v349_v60 = vpop.f32.mrb[3].mxu0  ;;  %v362_v1 = vmul.f32 %v1070_v58, %v1070_v58 }
  0xed   : > { %v1074_v61 = vadd.f32 %v349_v60, %v259_v52  ;;  %v363_v63 = vmul.f32 %v1068_v56, %v1068_v56 }
  0xee   : > { %v364_v62 = vmul.f32 %v1072_v59, %v1072_v59 }
  0xef   : > { %v365_v0 = vmul.f32 %v1074_v61, %v1074_v61 }
  0xf0   : > { %v370_v5 = vpack.c.bf16 %v364_v62, %v362_v1 }
  0xf1   : > { %v353_v2 = vpop.f32.mrb[4].mxu0  ;;  %v371_v3 = vpack.c.bf16 %v365_v0, %v363_v63 }
  0xf2   : > { %v355_v4 = vpop.f32.mrb[5].mxu0  ;;  %v1086_v8 = vadd.f32 %v353_v2, %v255_v53 }
  0xf3   : > { %v1084_v6 = vadd.f32 %v355_v4, %v259_v52  ;;  %v357_v7 = vpop.f32.mrb[6].mxu0  ;;  %566 = vmatprep.mubr.bf16.mxu1 %v371_v3 }
  0xf4   : > { %v1088_v9 = vadd.f32 %v357_v7, %v255_v53  ;;  %v359_v10 = vpop.f32.mrb[7].mxu0  ;;  %567 = vmatmul.mubr.bf16.vlgmr.msra.gmra.mrb[0].mxu1 %v370_v5  ;;  %v366_v15 = vmul.f32 %v1086_v8, %v1086_v8 }
  0xf5   : > { %v1090_v11 = vadd.f32 %v359_v10, %v259_v52  ;;  %v367_v13 = vmul.f32 %v1084_v6, %v1084_v6 }
  0xf6   : > { %v368_v12 = vmul.f32 %v1088_v9, %v1088_v9 }
  0xf7   : > { %v369_v14 = vmul.f32 %v1090_v11, %v1090_v11 }
  0xf8   : > { %v372_v17 = vpack.c.bf16 %v368_v12, %v366_v15 }
  0xf9   : > { %v373_v16 = vpack.c.bf16 %v369_v14, %v367_v13 }
  0xfb   : > { %576 = vmatprep.mubr.bf16.mxu1 %v373_v16 }
  0xfc   : > { %577 = vmatmul.mubr.bf16.gmra.mrb[4].mxu1 %v372_v17 }
 0x1c7   : > { %v568_v18 = vpop.f32.mrb[0].mxu1 }
 0x1c8   : > { %v587_v19 = vadd.f32 1.0, %v568_v18  ;;  %v570_v20 = vpop.f32.mrb[1].mxu1  ;;  %v619_v21 = vadd.f32 1e-07, %v568_v18 }
 0x1c9   : > { %v588_v22 = vadd.f32 1.0, %v570_v20  ;;  %v572_v23 = vpop.f32.mrb[2].mxu1  ;;  %v620_v26 = vadd.f32 1e-07, %v570_v20 }
 0x1ca   : > { %861 = vrcp.f32 %v587_v19  ;;  %v589_v24 = vadd.f32 1.0, %v572_v23  ;;  %v574_v25 = vpop.f32.mrb[3].mxu1  ;;  %v621_v28 = vadd.f32 1e-07, %v572_v23 }
 0x1cb   : > { %863 = vrcp.f32 %v588_v22  ;;  %v590_v27 = vadd.f32 1.0, %v574_v25  ;;  %v622_v29 = vadd.f32 1e-07, %v574_v25 }
 0x1cc   : > { %865 = vrsqrt.f32 %v619_v21 }
 0x1cd   : > { %867 = vrcp.f32 %v589_v24 }
 0x1ce   : > { %869 = vrsqrt.f32 %v620_v26 }
 0x1cf   : > { %v578_v30 = vpop.f32.mrb[4].mxu1  ;;  %871 = vrcp.f32 %v590_v27 }
 0x1d0   : > { %v591_v31 = vadd.f32 1.0, %v578_v30  ;;  %v580_v32 = vpop.f32.mrb[5].mxu1  ;;  %873 = vrsqrt.f32 %v621_v28  ;;  %v623_v33 = vadd.f32 1e-07, %v578_v30 }
 0x1d1   : > { %v592_v34 = vadd.f32 1.0, %v580_v32  ;;  %v582_v35 = vpop.f32.mrb[6].mxu1  ;;  %v624_v38 = vadd.f32 1e-07, %v580_v32 }
 0x1d2   : > { %875 = vrcp.f32 %v591_v31  ;;  %v593_v36 = vadd.f32 1.0, %v582_v35  ;;  %v584_v37 = vpop.f32.mrb[7].mxu1  ;;  %v625_v43 = vadd.f32 1e-07, %v582_v35 }
 0x1d3   : > { %877 = vrsqrt.f32 %v622_v29  ;;  %v594_v40 = vadd.f32 1.0, %v584_v37  ;;  %v626_v48 = vadd.f32 1e-07, %v584_v37 }
 0x1d4   : > { %v862_v39 = vpop.eup %861  ;;  %879 = vrcp.f32 %v592_v34 }
 0x1d5   : > { %v596_v41 = vmul.f32 %v862_v39, %v568_v18  ;;  %881 = vrsqrt.f32 %v623_v33  ;;  %v864_v42 = vpop.eup %863 }
 0x1d6   : > { %883 = vrcp.f32 %v593_v36  ;;  %v866_v44 = vpop.eup %865  ;;  %v598_v46 = vmul.f32 %v864_v42, %v570_v20 }
 0x1d7   : > { %v611_v45 = vmul.f32 %v596_v41, %v1070_v58  ;;  %885 = vrsqrt.f32 %v624_v38  ;;  %v868_v47 = vpop.eup %867 }
 0x1d8   : > { %887 = vrcp.f32 %v594_v40  ;;  %v870_v49 = vpop.eup %869  ;;  %v612_v51 = vmul.f32 %v598_v46, %v1068_v56  ;;  %v600_v52 = vmul.f32 %v868_v47, %v572_v23 }
 0x1d9   : > { %v635_v50 = vmul.f32 %v866_v44, %v611_v45  ;;  %v872_v53 = vpop.eup %871  ;;  %889 = vrsqrt.f32 %v625_v43 }
 0x1da   : > { %v874_v54 = vpop.eup %873  ;;  %v636_v55 = vmul.f32 %v870_v49, %v612_v51  ;;  %v613_v57 = vmul.f32 %v600_v52, %v1072_v59  ;;  %v602_v60 = vmul.f32 %v872_v53, %v574_v25  ;;  %891 = vrsqrt.f32 %v626_v48 }
 0x1dc   : > { %v876_v62 = vpop.eup %875  ;;  %v788_v63 = vpack.c.bf16 %v636_v55, %v635_v50  ;;  %v637_v56 = vmul.f32 %v874_v54, %v613_v57  ;;  %v614_v0 = vmul.f32 %v602_v60, %v1074_v61 }
 0x1dd   : > { %v878_v58 = vpop.eup %877  ;;  %v604_v1 = vmul.f32 %v876_v62, %v578_v30 }
 0x1de   : > { %v880_v2 = vpop.eup %879  ;;  %667 = vst [vmem:[%s1108_s11] sm:$0xff] %v788_v63  ;;  %v638_v59 = vmul.f32 %v878_v58, %v614_v0 }
 0x1df   : > { %v882_v3 = vpop.eup %881  ;;  %v615_v4 = vmul.f32 %v604_v1, %v1086_v8  ;;  %v606_v5 = vmul.f32 %v880_v2, %v580_v32 }
 0x1e0   : > { %v884_v7 = vpop.eup %883  ;;  %v789_v12 = vpack.c.bf16 %v638_v59, %v637_v56 }
 0x1e1   : > { %v886_v10 = vpop.eup %885  ;;  %v639_v13 = vmul.f32 %v882_v3, %v615_v4  ;;  %v616_v14 = vmul.f32 %v606_v5, %v1084_v6  ;;  %v608_v15 = vmul.f32 %v884_v7, %v582_v35 }
 0x1e2   : > { %v888_v16 = vpop.eup %887  ;;  %668 = vst [vmem:[%s1108_s11 + $0x8] sm:$0xff] %v789_v12 }
 0x1e3   : > { %v640_v61 = vmul.f32 %v886_v10, %v616_v14  ;;  %v617_v17 = vmul.f32 %v608_v15, %v1088_v9  ;;  %v610_v18 = vmul.f32 %v888_v16, %v584_v37  ;;  %v890_v19 = vpop.eup %889 }
 0x1e4   : > { %v892_v22 = vpop.eup %891 }
 0x1e5   : > { %v790_v20 = vpack.c.bf16 %v640_v61, %v639_v13  ;;  %v641_v21 = vmul.f32 %v890_v19, %v617_v17  ;;  %v618_v8 = vmul.f32 %v610_v18, %v1090_v11 }
 0x1e7   : > { %669 = vst [vmem:[%s1108_s11 + $0x10] sm:$0xff] %v790_v20  ;;  %v642_v23 = vmul.f32 %v892_v22, %v618_v8 }
 0x1e9   : > { %v791_v24 = vpack.c.bf16 %v642_v23, %v641_v21 }
 0x1eb   : > { %670 = vst [vmem:[%s1108_s11 + $0x18] sm:$0xff] %v791_v24 }
 0x1ec PF: > { %s14_s15 = sadd.s32 1, %s899_s15  }
 0x1ed   : > { %p11_p4 = scmp.ge.s32.totalorder %s14_s15, 6  }
 0x1ef   :  { %13 = sbr.rel (!%p11_p4) target bundleno = 1 (0x1), region = 66 }

// kernel: attention_decoder_caps_forward.4
= control target key start
LH: loop header
LB: loop body
LE: loop exit
PB: predicated region body
PF: predicated region fallthrough
CT: control target
= control target key end

     0   :  { %s1331_s21 = smov 0   ;;  %s1521_s0 = inlined_call_operand.vmem [shape: f32[512,64], index: 0, kind: input, shape index: {}]   ;;  %s1522_s1 = inlined_call_operand.vmem [shape: bf16[512,64], index: 1, kind: input, shape index: {}]   ;;  %s1523_s2 = inlined_call_operand.vmem [shape: bf16[128,32], index: 2, kind: input, shape index: {}]   ;;  %s1524_s3 = inlined_call_operand.vmem [shape: f32[1,32], index: 3, kind: input, shape index: {}]   ;;  %s1525_s4 = inlined_call_operand.vmem [shape: bf16[32,64], index: 4, kind: input, shape index: {}]   ;;  %s1526_s5 = inlined_call_operand.vmem [shape: f32[1,64], index: 5, kind: input, shape index: {}]   ;;  %s1527_s6 = inlined_call_operand.vmem [shape: bf16[512,64], index: 6, kind: output, shape index: {}]  }
   0x1 LB: > { %s1021_s22 = sadd.s32 4294967295, %s1293_s21   ;;  %p1025_p0 = scmp.ge.s32.totalorder %s1293_s21, 1  ;;  %s1293_s21 = sphi %s1331_s21, %s16_s21  }
   0x2   : > { %p224_p1 = scmp.lt.s32.totalorder %s1293_s21, 5 }
   0x4   : > { %p225_p2 = pnand %p1025_p0, %p224_p1 }
   0x5   : > { %s1026_s23 = sshll.u32 (!%p225_p2), %s1021_s22, 4  ;;  %v1205_v0 = vld [vmem:[%s1523_s2] sm:$0xff] (!%p225_p2)   ;;  %v1206_v1 = vld [vmem:[%s1523_s2 + $0x8] sm:$0xff] (!%p225_p2)   ;;  %v1207_v2 = vld [vmem:[%s1523_s2 + $0x10] sm:$0xff] (!%p225_p2)   ;;  %s1295_s12 = smov (!%p225_p2), 64   ;;  %vm374_vm0 = vcmask (!%p225_p2), 523264  }
   0x6   : > { %228 = sbr.rel (%p225_p2) target bundleno = 632 (0x278), region = 44  ;;  %p260_p3 = scmp.lt.s32.totalorder (!%p225_p2), %s1026_s23, 63  ;;  %1136 = vmatprep.subr.bf16.mxu0 (!%p225_p2), %v1205_v0  ;;  %v1208_v7 = vld [vmem:[%s1523_s2 + $0x18] sm:$0xff] (!%p225_p2)   ;;  %v1209_v10 = vld [vmem:[%s1523_s2 + $0x20] sm:$0xff] (!%p225_p2)   ;;  %v1210_v13 = vld [vmem:[%s1523_s2 + $0x28] sm:$0xff] (!%p225_p2)   ;;  %vm622_vm1 = vcmask (!%p225_p2), 261120  }
   0x7   : > { %1137 = vmatpush3.bf16.msra.mxu0 (!%p225_p2), %v1205_v0  ;;  %v1211_v14 = vld [vmem:[%s1523_s2 + $0x30] sm:$0xff] (!%p225_p2)   ;;  %v1212_v15 = vld [vmem:[%s1523_s2 + $0x38] sm:$0xff] (!%p225_p2)   ;;  %v1213_v56 = vld [vmem:[%s1525_s4] sm:$0xff] (!%p225_p2)   ;;  %vm936_vm2 = vcmask (!%p225_p2), 519168  }
   0x8   : > { %1138 = vmatprep.subr.bf16.mxu0 (!%p225_p2), %v1206_v1  ;;  %1168 = vmatprep.subr.bf16.mxu1 (!%p225_p2), %v1213_v56  ;;  %v1214_v57 = vld [vmem:[%s1525_s4 + $0x8] sm:$0xff] (!%p225_p2)   ;;  %v1040_v58 = vld [vmem:[%s1524_s3] ss:$0 sm:$0xff] (!%p225_p2) }
   0x9   : > { %1169 = vmatpush3.bf16.msra.mxu1 (!%p225_p2), %v1213_v56 }
   0xa   : > { %1170 = vmatprep.subr.bf16.mxu1 (!%p225_p2), %v1214_v57 }
   0xb   : > { %1139 = vmatpush3.bf16.msra.mxu0 (!%p225_p2), %v1206_v1 }
   0xc   : > { %1140 = vmatprep.subr.bf16.mxu0 (!%p225_p2), %v1207_v2 }
   0xd   : > { %s1529_s23 = smov (!%p260_p3, %s1026_s23), 63  ;;  %1171 = vmatpush3.bf16.msra.mxu1 %v1214_v57 }
   0xe   : > { %s1029_s28 = sshll.u32 %s1529_s23, 2  ;;  %s1027_s22 = sshll.u32 %s1529_s23, 3 }
   0xf   : > { %s269_s9 = scalar_lea.vmem %s1522_s1, %s1029_s28  ;;  %1141 = vmatpush3.bf16.msra.mxu0 %v1207_v2  ;;  %s1399_s26 = scalar_lea.vmem %s1521_s0, %s1027_s22 }
  0x10   : > { %v1356_v3 = vld [vmem:[%s269_s9] sm:$0xff]   ;;  %v1358_v4 = vld [vmem:[%s269_s9 + $0x8] sm:$0xff]   ;;  %v1360_v5 = vld [vmem:[%s269_s9 + $0x10] sm:$0xff]   ;;  %1142 = vmatprep.subr.bf16.mxu0 %v1208_v7  ;;  %s1472_s14 = scalar_lea.vmem %s1527_s6, %s1029_s28 }
  0x11   : > { %v1362_v6 = vld [vmem:[%s269_s9 + $0x18] sm:$0xff]   ;;  %358 = vrot.lane.b32.xlu0 %v1356_v3, %s1295_s12  ;;  %362 = vrot.lane.b32.xlu1 %v1360_v5, %s1295_s12  ;;  %v1369_v8 = vld [vmem:[%s269_s9 + $0x20] sm:$0xff]  }
  0x12   : > { %v1371_v9 = vld [vmem:[%s269_s9 + $0x28] sm:$0xff]   ;;  %v1377_v11 = vld [vmem:[%s269_s9 + $0x30] sm:$0xff]   ;;  %v1380_v12 = vld [vmem:[%s269_s9 + $0x38] sm:$0xff]  }
  0x13   : > { %1143 = vmatpush3.bf16.msra.mxu0 %v1208_v7  ;;  %v294_v16 = vld [vmem:[%s1399_s26] sm:$0xff]  ;;  %v295_v17 = vld [vmem:[%s1399_s26 + $0x8] sm:$0xff]  ;;  %v296_v21 = vld [vmem:[%s1399_s26 + $0x10] sm:$0xff] }
  0x14   : > { %1144 = vmatprep.subr.bf16.mxu0 %v1209_v10  ;;  %v310_v18 = vpack.c.bf16 %v295_v17, %v294_v16  ;;  %v298_v19 = vld [vmem:[%s1399_s26 + $0x20] sm:$0xff]  ;;  %v299_v20 = vld [vmem:[%s1399_s26 + $0x28] sm:$0xff]  ;;  %v297_v22 = vld [vmem:[%s1399_s26 + $0x18] sm:$0xff] }
  0x15   : > { %360 = vrot.lane.b32.xlu0 %v1358_v4, %s1295_s12  ;;  %364 = vrot.lane.b32.xlu1 %v1362_v6, %s1295_s12  ;;  %v312_v24 = vpack.c.bf16 %v299_v20, %v298_v19  ;;  %v311_v26 = vpack.c.bf16 %v297_v22, %v296_v21  ;;  %v300_v30 = vld [vmem:[%s1399_s26 + $0x30] sm:$0xff]  ;;  %v301_v31 = vld [vmem:[%s1399_s26 + $0x38] sm:$0xff] }
  0x16   : > { %v302_v33 = vld [vmem:[%s1399_s26 + $0x40] sm:$0xff]  ;;  %v303_v34 = vld [vmem:[%s1399_s26 + $0x48] sm:$0xff]  ;;  %v313_v35 = vpack.c.bf16 %v301_v31, %v300_v30  ;;  %v304_v41 = vld [vmem:[%s1399_s26 + $0x50] sm:$0xff] }
  0x17   : > { %1145 = vmatpush3.bf16.msra.mxu0 %v1209_v10  ;;  %v314_v37 = vpack.c.bf16 %v303_v34, %v302_v33  ;;  %v305_v42 = vld [vmem:[%s1399_s26 + $0x58] sm:$0xff]  ;;  %v306_v43 = vld [vmem:[%s1399_s26 + $0x60] sm:$0xff]  ;;  %v307_v44 = vld [vmem:[%s1399_s26 + $0x68] sm:$0xff] }
  0x18   : > { %1146 = vmatprep.subr.bf16.mxu0 %v1210_v13  ;;  %v315_v45 = vpack.c.bf16 %v305_v42, %v304_v41  ;;  %v316_v47 = vpack.c.bf16 %v307_v44, %v306_v43  ;;  %v308_v51 = vld [vmem:[%s1399_s26 + $0x70] sm:$0xff]  ;;  %v309_v52 = vld [vmem:[%s1399_s26 + $0x78] sm:$0xff] }
  0x19   : > { %366 = vrot.lane.b32.xlu0 %v1369_v8, %s1295_s12  ;;  %368 = vrot.lane.b32.xlu1 %v1371_v9, %s1295_s12  ;;  %v317_v53 = vpack.c.bf16 %v309_v52, %v308_v51 }
  0x1b   : > { %1147 = vmatpush3.bf16.msra.mxu0 %v1210_v13 }
  0x1c   : > { %1148 = vmatprep.subr.bf16.mxu0 %v1211_v14 }
  0x1d   : > { %370 = vrot.lane.b32.xlu0 %v1377_v11, %s1295_s12  ;;  %372 = vrot.lane.b32.xlu1 %v1380_v12, %s1295_s12 }
  0x1f   : > { %1149 = vmatpush3.bf16.msra.mxu0 %v1211_v14 }
  0x20   : > { %1150 = vmatprep.subr.bf16.mxu0 %v1212_v15 }
  0x23   : > { %1151 = vmatpush3.bf16.msra.mxu0 %v1212_v15 }
  0x83   : > { %v359_v23 = vpop.permute.xlu0 %358  ;;  %v363_v27 = vpop.permute.xlu1 %362 }
  0x84   : > { %v377_v25 = vsel %vm374_vm0, %v310_v18, %v359_v23  ;;  %v385_v29 = vsel %vm374_vm0, %v312_v24, %v363_v27 }
  0x85   : > { %1152 = vmatprep.mubr.bf16.mxu0 %v377_v25 }
  0x87   : > { %v361_v28 = vpop.permute.xlu0 %360  ;;  %v365_v36 = vpop.permute.xlu1 %364 }
  0x88   : > { %v381_v32 = vsel %vm374_vm0, %v311_v26, %v361_v28  ;;  %v389_v39 = vsel %vm374_vm0, %v313_v35, %v365_v36 }
  0x89   : > { %1153 = vmatmul.mubr.bf16.vlgmr.msra.gmra.mrb[0].mxu0 %v381_v32 }
  0x8a   : > { %1156 = vmatprep.mubr.bf16.mxu0 %v385_v29 }
  0x8b   : > { %v367_v38 = vpop.permute.xlu0 %366  ;;  %v369_v46 = vpop.permute.xlu1 %368 }
  0x8c   : > { %v393_v40 = vsel %vm374_vm0, %v314_v37, %v367_v38  ;;  %v397_v49 = vsel %vm374_vm0, %v315_v45, %v369_v46 }
  0x8f   : > { %v371_v48 = vpop.permute.xlu0 %370  ;;  %v373_v54 = vpop.permute.xlu1 %372 }
  0x90   : > { %v401_v50 = vsel %vm374_vm0, %v316_v47, %v371_v48  ;;  %v405_v55 = vsel %vm374_vm0, %v317_v53, %v373_v54 }
  0x91   : > { %1157 = vmatmul.mubr.bf16.gmra.mrb[4].mxu0 %v389_v39 }
  0x92   : > { %1160 = vmatprep.mubr.bf16.mxu0 %v393_v40 }
  0x99   : > { %1161 = vmatmul.mubr.bf16.gmra.mrb[8].mxu0 %v397_v49 }
  0x9a   : > { %1164 = vmatprep.mubr.bf16.mxu0 %v401_v50 }
  0xa1   : > { %1165 = vmatmul.mubr.bf16.gmra.mrb[12].mxu0 %v405_v55 }
 0x15c   : > { %v1154_v59 = vpop.f32.mrb[0].mxu0 }
 0x15d   : > { %v521_v60 = vadd.f32 %v1154_v59, %v1040_v58  ;;  %v512_v61 = vpop.f32.mrb[1].mxu0 }
 0x15e   : > { %v513_v62 = vadd.f32 %v1040_v58, %v512_v61  ;;  %v1155_v63 = vpop.f32.mrb[2].mxu0 }
 0x15f   : > { %v524_v0 = vadd.f32 %v1155_v63, %v1040_v58  ;;  %v515_v1 = vpop.f32.mrb[3].mxu0  ;;  %v577_v7 = vmax.f32 %v521_v60, 0.0  ;;  %v1445_v60 = vld [vmem:[%s1526_s5] ss:$0 sm:$0xff] }
 0x160   : > { %v516_v2 = vadd.f32 %v1040_v58, %v515_v1  ;;  %v575_v13 = vmax.f32 %v513_v62, 0.0 }
 0x161   : > { %v578_v10 = vmax.f32 %v524_v0, 0.0 }
 0x162   : > { %v576_v14 = vmax.f32 %v516_v2, 0.0 }
 0x163   : > { %v592_v15 = vpack.c.bf16 %v578_v10, %v577_v7 }
 0x164   : > { %v1158_v16 = vpop.f32.mrb[4].mxu0  ;;  %v591_v17 = vpack.c.bf16 %v576_v14, %v575_v13 }
 0x165   : > { %v537_v18 = vadd.f32 %v1158_v16, %v1040_v58  ;;  %v528_v19 = vpop.f32.mrb[5].mxu0 }
 0x166   : > { %v529_v20 = vadd.f32 %v1040_v58, %v528_v19  ;;  %v1159_v21 = vpop.f32.mrb[6].mxu0  ;;  %1172 = vmatprep.mubr.msk.bf16.mxu1 %vm622_vm1, %v591_v17 }
 0x167   : > { %v540_v22 = vadd.f32 %v1159_v21, %v1040_v58  ;;  %v531_v23 = vpop.f32.mrb[7].mxu0  ;;  %1173 = vmatmul.mubr.msk.bf16.vlgmr.msra.gmra.mrb[0].mxu1 %vm622_vm1, %v592_v15  ;;  %v581_v25 = vmax.f32 %v537_v18, 0.0 }
 0x168   : > { %v532_v24 = vadd.f32 %v1040_v58, %v531_v23  ;;  %v579_v27 = vmax.f32 %v529_v20, 0.0 }
 0x169   : > { %v582_v26 = vmax.f32 %v540_v22, 0.0 }
 0x16a   : > { %v580_v28 = vmax.f32 %v532_v24, 0.0 }
 0x16b   : > { %v594_v29 = vpack.c.bf16 %v582_v26, %v581_v25 }
 0x16c   : > { %v593_v30 = vpack.c.bf16 %v580_v28, %v579_v27  ;;  %v1162_v31 = vpop.f32.mrb[8].mxu0 }
 0x16d   : > { %v553_v32 = vadd.f32 %v1162_v31, %v1040_v58  ;;  %v544_v33 = vpop.f32.mrb[9].mxu0 }
 0x16e   : > { %v545_v34 = vadd.f32 %v1040_v58, %v544_v33  ;;  %v1163_v35 = vpop.f32.mrb[10].mxu0  ;;  %1176 = vmatprep.mubr.msk.bf16.mxu1 %vm622_vm1, %v593_v30 }
 0x16f   : > { %v556_v36 = vadd.f32 %v1163_v35, %v1040_v58  ;;  %v547_v37 = vpop.f32.mrb[11].mxu0  ;;  %1177 = vmatmul.mubr.msk.bf16.gmra.mrb[4].mxu1 %vm622_vm1, %v594_v29  ;;  %v585_v39 = vmax.f32 %v553_v32, 0.0 }
 0x170   : > { %v548_v38 = vadd.f32 %v1040_v58, %v547_v37  ;;  %v583_v41 = vmax.f32 %v545_v34, 0.0 }
 0x171   : > { %v586_v40 = vmax.f32 %v556_v36, 0.0 }
 0x172   : > { %v584_v42 = vmax.f32 %v548_v38, 0.0 }
 0x173   : > { %v596_v43 = vpack.c.bf16 %v586_v40, %v585_v39 }
 0x174   : > { %v595_v44 = vpack.c.bf16 %v584_v42, %v583_v41  ;;  %v1166_v45 = vpop.f32.mrb[12].mxu0 }
 0x175   : > { %v569_v46 = vadd.f32 %v1166_v45, %v1040_v58  ;;  %v560_v47 = vpop.f32.mrb[13].mxu0 }
 0x176   : > { %v561_v48 = vadd.f32 %v1040_v58, %v560_v47  ;;  %v1167_v49 = vpop.f32.mrb[14].mxu0  ;;  %1180 = vmatprep.mubr.msk.bf16.mxu1 %vm622_vm1, %v595_v44 }
 0x177   : > { %v572_v50 = vadd.f32 %v1167_v49, %v1040_v58  ;;  %v563_v51 = vpop.f32.mrb[15].mxu0  ;;  %1181 = vmatmul.mubr.msk.bf16.gmra.mrb[8].mxu1 %vm622_vm1, %v596_v43  ;;  %v589_v53 = vmax.f32 %v569_v46, 0.0 }
 0x178   : > { %v564_v52 = vadd.f32 %v1040_v58, %v563_v51  ;;  %v587_v55 = vmax.f32 %v561_v48, 0.0 }
 0x179   : > { %v590_v54 = vmax.f32 %v572_v50, 0.0  ;;  %v840_v50 = vunpack.c.l.bf16 %v1356_v3 }
 0x17a   : > { %v588_v56 = vmax.f32 %v564_v52, 0.0 }
 0x17b   : > { %v598_v57 = vpack.c.bf16 %v590_v54, %v589_v53  ;;  %v842_v54 = vunpack.c.l.bf16 %v1358_v4 }
 0x17c   : > { %v597_v59 = vpack.c.bf16 %v588_v56, %v587_v55 }
 0x17e   : > { %1184 = vmatprep.mubr.msk.bf16.mxu1 %vm622_vm1, %v597_v59 }
 0x17f   : > { %1185 = vmatmul.mubr.msk.bf16.gmra.mrb[12].mxu1 %vm622_vm1, %v598_v57 }
 0x23a   : > { %v1174_v61 = vpop.f32.mrb[0].mxu1 }
 0x23b   : > { %v690_v62 = vadd.f32 %v1174_v61, %v1445_v60  ;;  %v681_v63 = vpop.f32.mrb[1].mxu1  ;;  %v843_v61 = vunpack.c.h.bf16 %v1358_v4 }
 0x23c   : > { %v682_v58 = vadd.f32 %v1445_v60, %v681_v63  ;;  %v1175_v0 = vpop.f32.mrb[2].mxu1 }
 0x23d   : > { %v1062_v1 = vmul.f32 -1.442695, %v690_v62  ;;  %v693_v2 = vadd.f32 %v1175_v0, %v1445_v60  ;;  %v684_v7 = vpop.f32.mrb[3].mxu1 }
 0x23e   : > { %v1060_v10 = vmul.f32 -1.442695, %v682_v58  ;;  %v685_v13 = vadd.f32 %v1445_v60, %v684_v7 }
 0x23f   : > { %1223 = vpow2.f32 %v1062_v1  ;;  %v1063_v14 = vmul.f32 -1.442695, %v693_v2 }
 0x240   : > { %1225 = vpow2.f32 %v1060_v10  ;;  %v1061_v15 = vmul.f32 -1.442695, %v685_v13  ;;  %v841_v13 = vunpack.c.h.bf16 %v1356_v3 }
 0x241   : > { %1227 = vpow2.f32 %v1063_v14 }
 0x242   : > { %1229 = vpow2.f32 %v1061_v15  ;;  %v1178_v16 = vpop.f32.mrb[4].mxu1 }
 0x243   : > { %v706_v17 = vadd.f32 %v1178_v16, %v1445_v60  ;;  %v697_v18 = vpop.f32.mrb[5].mxu1 }
 0x244   : > { %v698_v19 = vadd.f32 %v1445_v60, %v697_v18  ;;  %v1179_v20 = vpop.f32.mrb[6].mxu1 }
 0x245   : > { %v1066_v21 = vmul.f32 -1.442695, %v706_v17  ;;  %v709_v22 = vadd.f32 %v1179_v20, %v1445_v60  ;;  %v700_v23 = vpop.f32.mrb[7].mxu1 }
 0x246   : > { %v1064_v24 = vmul.f32 -1.442695, %v698_v19  ;;  %v701_v25 = vadd.f32 %v1445_v60, %v700_v23 }
 0x247   : > { %1231 = vpow2.f32 %v1066_v21  ;;  %v1067_v26 = vmul.f32 -1.442695, %v709_v22 }
 0x248   : > { %1233 = vpow2.f32 %v1064_v24  ;;  %v1065_v27 = vmul.f32 -1.442695, %v701_v25 }
 0x249   : > { %v1224_v28 = vpop.eup %1223  ;;  %1235 = vpow2.f32 %v1067_v26  ;;  %v846_v26 = vunpack.c.l.bf16 %v1362_v6 }
 0x24a   : > { %v1226_v29 = vpop.eup %1225  ;;  %v794_v30 = vadd.f32 1.0, %v1224_v28  ;;  %1237 = vpow2.f32 %v1065_v27  ;;  %v1182_v31 = vpop.f32.mrb[8].mxu1 }
 0x24b   : > { %v1228_v32 = vpop.eup %1227  ;;  %v792_v33 = vadd.f32 1.0, %v1226_v29  ;;  %v722_v34 = vadd.f32 %v1182_v31, %v1445_v60  ;;  %v713_v35 = vpop.f32.mrb[9].mxu1 }
 0x24c   : > { %v1230_v36 = vpop.eup %1229  ;;  %1239 = vrcp.f32 %v794_v30  ;;  %v795_v37 = vadd.f32 1.0, %v1228_v32  ;;  %v714_v38 = vadd.f32 %v1445_v60, %v713_v35  ;;  %v1183_v39 = vpop.f32.mrb[10].mxu1  ;;  %v844_v30 = vunpack.c.l.bf16 %v1360_v5 }
 0x24d   : > { %1241 = vrcp.f32 %v792_v33  ;;  %v793_v40 = vadd.f32 1.0, %v1230_v36  ;;  %v1070_v41 = vmul.f32 -1.442695, %v722_v34  ;;  %v725_v42 = vadd.f32 %v1183_v39, %v1445_v60  ;;  %v716_v43 = vpop.f32.mrb[11].mxu1 }
 0x24e   : > { %1243 = vrcp.f32 %v795_v37  ;;  %v1068_v44 = vmul.f32 -1.442695, %v714_v38  ;;  %v717_v45 = vadd.f32 %v1445_v60, %v716_v43  ;;  %v847_v34 = vunpack.c.h.bf16 %v1362_v6 }
 0x24f   : > { %1245 = vrcp.f32 %v793_v40  ;;  %v1071_v46 = vmul.f32 -1.442695, %v725_v42  ;;  %v845_v37 = vunpack.c.h.bf16 %v1360_v5 }
 0x250   : > { %1247 = vpow2.f32 %v1070_v41  ;;  %v1069_v47 = vmul.f32 -1.442695, %v717_v45 }
 0x251   : > { %v1232_v48 = vpop.eup %1231  ;;  %1249 = vpow2.f32 %v1068_v44 }
 0x252   : > { %v1234_v49 = vpop.eup %1233  ;;  %v798_v51 = vadd.f32 1.0, %v1232_v48  ;;  %1251 = vpow2.f32 %v1071_v46  ;;  %v1186_v52 = vpop.f32.mrb[12].mxu1 }
 0x253   : > { %v1236_v53 = vpop.eup %1235  ;;  %v796_v55 = vadd.f32 1.0, %v1234_v49  ;;  %1253 = vpow2.f32 %v1069_v47  ;;  %v738_v56 = vadd.f32 %v1186_v52, %v1445_v60  ;;  %v729_v57 = vpop.f32.mrb[13].mxu1 }
 0x254   : > { %v1238_v59 = vpop.eup %1237  ;;  %1255 = vrcp.f32 %v798_v51  ;;  %v799_v62 = vadd.f32 1.0, %v1236_v53  ;;  %v730_v63 = vadd.f32 %v1445_v60, %v729_v57  ;;  %v1187_v58 = vpop.f32.mrb[14].mxu1  ;;  %v850_v51 = vunpack.c.l.bf16 %v1371_v9 }
 0x255   : > { %1257 = vrcp.f32 %v796_v55  ;;  %v797_v0 = vadd.f32 1.0, %v1238_v59  ;;  %v1074_v1 = vmul.f32 -1.442695, %v738_v56  ;;  %v741_v2 = vadd.f32 %v1187_v58, %v1445_v60  ;;  %v732_v7 = vpop.f32.mrb[15].mxu1 }
 0x256   : > { %v1240_v10 = vpop.eup %1239  ;;  %1259 = vrcp.f32 %v799_v62  ;;  %v1072_v14 = vmul.f32 -1.442695, %v730_v63  ;;  %v733_v15 = vadd.f32 %v1445_v60, %v732_v7  ;;  %v848_v55 = vunpack.c.l.bf16 %v1369_v8 }
 0x257   : > { %v1242_v4 = vpop.eup %1241  ;;  %v858_v16 = vmul.f32 %v1240_v10, %v842_v54  ;;  %1261 = vrcp.f32 %v797_v0  ;;  %v1075_v17 = vmul.f32 -1.442695, %v741_v2  ;;  %v851_v57 = vunpack.c.h.bf16 %v1371_v9 }
 0x258   : > { %v1244_v18 = vpop.eup %1243  ;;  %v856_v19 = vmul.f32 %v1242_v4, %v840_v50  ;;  %1263 = vpow2.f32 %v1074_v1  ;;  %v1073_v3 = vmul.f32 -1.442695, %v733_v15  ;;  %v849_v62 = vunpack.c.h.bf16 %v1369_v8 }
 0x259   : > { %v1246_v20 = vpop.eup %1245  ;;  %v1096_v21 = vpack.c.bf16 %v858_v16, %v858_v16  ;;  %v859_v60 = vmul.f32 %v1244_v18, %v843_v61  ;;  %1265 = vpow2.f32 %v1072_v14  ;;  %v854_v14 = vunpack.c.l.bf16 %v1380_v12 }
 0x25a   : > { %v1248_v22 = vpop.eup %1247  ;;  %v1094_v23 = vpack.c.bf16 %v856_v19, %v856_v19  ;;  %v857_v24 = vmul.f32 %v1246_v20, %v841_v13  ;;  %1267 = vpow2.f32 %v1075_v17  ;;  %v852_v8 = vunpack.c.l.bf16 %v1377_v11 }
 0x25b   : > { %v1250_v25 = vpop.eup %1249  ;;  %939 = vst.msk [vmem:[%s1472_s14 + $0x8] sm:$0xf] %vm936_vm2, %v1096_v21  ;;  %v1097_v27 = vpack.c.bf16 %v859_v60, %v859_v60  ;;  %v802_v28 = vadd.f32 1.0, %v1248_v22  ;;  %1269 = vpow2.f32 %v1073_v3  ;;  %v855_v16 = vunpack.c.h.bf16 %v1380_v12 }
 0x25c   : > { %v1252_v29 = vpop.eup %1251  ;;  %937 = vst.msk [vmem:[%s1472_s14] sm:$0xf] %vm936_vm2, %v1094_v23  ;;  %v1095_v31 = vpack.c.bf16 %v857_v24, %v857_v24  ;;  %v800_v32 = vadd.f32 1.0, %v1250_v25  ;;  %v853_v18 = vunpack.c.h.bf16 %v1377_v11 }
 0x25d   : > { %v1254_v33 = vpop.eup %1253  ;;  %940 = vst.msk [vmem:[%s1472_s14 + $0xc] sm:$0xf] %vm936_vm2, %v1097_v27  ;;  %1271 = vrcp.f32 %v802_v28  ;;  %v803_v35 = vadd.f32 1.0, %v1252_v29 }
 0x25e   : > { %v1256_v36 = vpop.eup %1255  ;;  %938 = vst.msk [vmem:[%s1472_s14 + $0x4] sm:$0xf] %vm936_vm2, %v1095_v31  ;;  %1273 = vrcp.f32 %v800_v32  ;;  %v801_v38 = vadd.f32 1.0, %v1254_v33 }
 0x25f   : > { %v1258_v39 = vpop.eup %1257  ;;  %v862_v40 = vmul.f32 %v1256_v36, %v846_v26  ;;  %1275 = vrcp.f32 %v803_v35 }
 0x260   : > { %v1260_v41 = vpop.eup %1259  ;;  %v860_v42 = vmul.f32 %v1258_v39, %v844_v30  ;;  %1277 = vrcp.f32 %v801_v38 }
 0x261   : > { %v1262_v6 = vpop.eup %1261  ;;  %v1100_v43 = vpack.c.bf16 %v862_v40, %v862_v40  ;;  %v863_v44 = vmul.f32 %v1260_v41, %v847_v34 }
 0x262   : > { %v1264_v45 = vpop.eup %1263  ;;  %v1098_v46 = vpack.c.bf16 %v860_v42, %v860_v42  ;;  %v861_v47 = vmul.f32 %v1262_v6, %v845_v37 }
 0x263   : > { %v1266_v5 = vpop.eup %1265  ;;  %943 = vst.msk [vmem:[%s1472_s14 + $0x18] sm:$0xf] %vm936_vm2, %v1100_v43  ;;  %v1101_v48 = vpack.c.bf16 %v863_v44, %v863_v44  ;;  %v806_v49 = vadd.f32 1.0, %v1264_v45 }
 0x264   : > { %v1268_v50 = vpop.eup %1267  ;;  %941 = vst.msk [vmem:[%s1472_s14 + $0x10] sm:$0xf] %vm936_vm2, %v1098_v46  ;;  %v1099_v52 = vpack.c.bf16 %v861_v47, %v861_v47  ;;  %v804_v53 = vadd.f32 1.0, %v1266_v5 }
 0x265   : > { %v1270_v54 = vpop.eup %1269  ;;  %944 = vst.msk [vmem:[%s1472_s14 + $0x1c] sm:$0xf] %vm936_vm2, %v1101_v48  ;;  %1279 = vrcp.f32 %v806_v49  ;;  %v807_v56 = vadd.f32 1.0, %v1268_v50 }
 0x266   : > { %942 = vst.msk [vmem:[%s1472_s14 + $0x14] sm:$0xf] %vm936_vm2, %v1099_v52  ;;  %1281 = vrcp.f32 %v804_v53  ;;  %v805_v59 = vadd.f32 1.0, %v1270_v54 }
 0x267   : > { %v1272_v61 = vpop.eup %1271  ;;  %1283 = vrcp.f32 %v807_v56 }
 0x268   : > { %v1274_v63 = vpop.eup %1273  ;;  %v866_v58 = vmul.f32 %v1272_v61, %v850_v51  ;;  %1285 = vrcp.f32 %v805_v59 }
 0x269   : > { %v1276_v0 = vpop.eup %1275  ;;  %v864_v1 = vmul.f32 %v1274_v63, %v848_v55 }
 0x26a   : > { %v1278_v2 = vpop.eup %1277  ;;  %v1104_v7 = vpack.c.bf16 %v866_v58, %v866_v58  ;;  %v867_v9 = vmul.f32 %v1276_v0, %v851_v57 }
 0x26b   : > { %v1102_v10 = vpack.c.bf16 %v864_v1, %v864_v1  ;;  %v865_v13 = vmul.f32 %v1278_v2, %v849_v62 }
 0x26c   : > { %947 = vst.msk [vmem:[%s1472_s14 + $0x28] sm:$0xf] %vm936_vm2, %v1104_v7  ;;  %v1105_v15 = vpack.c.bf16 %v867_v9, %v867_v9 }
 0x26d   : > { %945 = vst.msk [vmem:[%s1472_s14 + $0x20] sm:$0xf] %vm936_vm2, %v1102_v10  ;;  %v1103_v4 = vpack.c.bf16 %v865_v13, %v865_v13 }
 0x26e   : > { %948 = vst.msk [vmem:[%s1472_s14 + $0x2c] sm:$0xf] %vm936_vm2, %v1105_v15 }
 0x26f   : > { %v1280_v17 = vpop.eup %1279  ;;  %946 = vst.msk [vmem:[%s1472_s14 + $0x24] sm:$0xf] %vm936_vm2, %v1103_v4 }
 0x270   : > { %v1282_v19 = vpop.eup %1281  ;;  %v870_v3 = vmul.f32 %v1280_v17, %v854_v14 }
 0x271   : > { %v1284_v20 = vpop.eup %1283  ;;  %v868_v21 = vmul.f32 %v1282_v19, %v852_v8 }
 0x272   : > { %v1286_v60 = vpop.eup %1285  ;;  %v1108_v22 = vpack.c.bf16 %v870_v3, %v870_v3  ;;  %v871_v23 = vmul.f32 %v1284_v20, %v855_v16 }
 0x273   : > { %v1106_v24 = vpack.c.bf16 %v868_v21, %v868_v21  ;;  %v869_v25 = vmul.f32 %v1286_v60, %v853_v18 }
 0x274   : > { %951 = vst.msk [vmem:[%s1472_s14 + $0x38] sm:$0xf] %vm936_vm2, %v1108_v22  ;;  %v1109_v12 = vpack.c.bf16 %v871_v23, %v871_v23 }
 0x275   : > { %949 = vst.msk [vmem:[%s1472_s14 + $0x30] sm:$0xf] %vm936_vm2, %v1106_v24  ;;  %v1107_v26 = vpack.c.bf16 %v869_v25, %v869_v25 }
 0x276   : > { %952 = vst.msk [vmem:[%s1472_s14 + $0x3c] sm:$0xf] %vm936_vm2, %v1109_v12 }
 0x277   : > { %950 = vst.msk [vmem:[%s1472_s14 + $0x34] sm:$0xf] %vm936_vm2, %v1107_v26 }
 0x278 PF: > { %s16_s21 = sadd.s32 1, %s1293_s21  }
 0x279   : > { %p13_p4 = scmp.ge.s32.totalorder %s16_s21, 6  }
 0x27b   :  { %15 = sbr.rel (!%p13_p4) target bundleno = 1 (0x1), region = 77 }

// kernel: attention_decoder_caps_forward.5
= control target key start
LH: loop header
LB: loop body
LE: loop exit
PB: predicated region body
PF: predicated region fallthrough
CT: control target
= control target key end

     0   :  { %s9723_s18 = smov 0   ;;  %s12326_s0 = inlined_call_operand.vmem [shape: bf16[512,64], index: 0, kind: input, shape index: {}]   ;;  %s12327_s1 = inlined_call_operand.vmem [shape: bf16[576,64], index: 1, kind: input, shape index: {}]   ;;  %s12328_s2 = inlined_call_operand.vmem [shape: bf16[256,9], index: 2, kind: input, shape index: {}]   ;;  %s12329_s3 = inlined_call_operand.vmem [shape: f32[1,64], index: 3, kind: input, shape index: {}]   ;;  %s12330_s4 = inlined_call_operand.vmem [shape: bf16[64,64], index: 4, kind: input, shape index: {}]   ;;  %s12331_s5 = inlined_call_operand.vmem [shape: f32[512,64], index: 5, kind: output, shape index: {}]  }
   0x1 LB: > { %s8043_s19 = sadd.s32 4294967295, %s9681_s18   ;;  %p8047_p0 = scmp.ge.s32.totalorder %s9681_s18, 1  ;;  %s9681_s18 = sphi %s9723_s18, %s15_s18  }
   0x2   : > { %p188_p1 = scmp.lt.s32.totalorder %s9681_s18, 3 }
   0x4   : > { %p189_p2 = pnand %p8047_p0, %p188_p1 }
   0x6   : > { %192 = sbr.rel (%p189_p2) target bundleno = 1303 (0x517), region = 40 }
   0xd   : > { %v9734_v0 = vld [vmem:[%s12328_s2 + $0x8] sm:$0xf]  ;;  %v9739_v1 = vld [vmem:[%s12328_s2] sm:$0xf]  ;;  %v9683_v2 = vmov 0   ;;  %v9684_v35 = vmov 1  }
   0xe   : > { %9309 = vset.pattern.permute.xlu1 %v9683_v2  ;;  %9308 = vset.pattern.permute.xlu0 %v9683_v2  ;;  %v9746_v3 = vld [vmem:[%s12328_s2 + $0xc] sm:$0xf]  ;;  %v9751_v4 = vld [vmem:[%s12328_s2 + $0x4] sm:$0xf]  ;;  %v9758_v5 = vld [vmem:[%s12328_s2 + $0x14] sm:$0xf] }
   0xf   : > { %558 = vperm.xlu1 %9309, %v9734_v0   ;;  %534 = vperm.xlu0 %9308, %v9739_v1   ;;  %v9763_v6 = vld [vmem:[%s12328_s2 + $0x10] sm:$0xf]  ;;  %v9770_v7 = vld [vmem:[%s12328_s2 + $0x1c] sm:$0xf]  ;;  %v9775_v8 = vld [vmem:[%s12328_s2 + $0x18] sm:$0xf] }
  0x10   : > { %v9780_v9 = vld [vmem:[%s12328_s2 + $0x24] sm:$0xf]  ;;  %v9787_v10 = vld [vmem:[%s12328_s2 + $0x20] sm:$0xf]  ;;  %v9794_v11 = vld [vmem:[%s12328_s2 + $0x2c] sm:$0xf] }
  0x11   : > { %v9799_v12 = vld [vmem:[%s12328_s2 + $0x28] sm:$0xf]  ;;  %v9806_v13 = vld [vmem:[%s12328_s2 + $0x34] sm:$0xf]  ;;  %v9811_v14 = vld [vmem:[%s12328_s2 + $0x30] sm:$0xf] }
  0x12   : > { %v9818_v15 = vld [vmem:[%s12328_s2 + $0x3c] sm:$0xf]  ;;  %v9823_v16 = vld [vmem:[%s12328_s2 + $0x38] sm:$0xf]  ;;  %v9830_v17 = vld [vmem:[%s12328_s2 + $0x44] sm:$0xf] }
  0x13   : > { %570 = vperm.xlu1 %9309, %v9746_v3   ;;  %546 = vperm.xlu0 %9308, %v9751_v4   ;;  %v9835_v18 = vld [vmem:[%s12328_s2 + $0x40] sm:$0xf]  ;;  %v9842_v19 = vld [vmem:[%s12328_s2 + $0x4c] sm:$0xf]  ;;  %v9847_v20 = vld [vmem:[%s12328_s2 + $0x48] sm:$0xf] }
  0x14   : > { %v9852_v21 = vld [vmem:[%s12328_s2 + $0x54] sm:$0xf]  ;;  %v9859_v22 = vld [vmem:[%s12328_s2 + $0x50] sm:$0xf]  ;;  %v9864_v23 = vld [vmem:[%s12328_s2 + $0x5c] sm:$0xf] }
  0x15   : > { %v9871_v24 = vld [vmem:[%s12328_s2 + $0x58] sm:$0xf]  ;;  %v9876_v25 = vld [vmem:[%s12328_s2 + $0x64] sm:$0xf]  ;;  %v9883_v26 = vld [vmem:[%s12328_s2 + $0x60] sm:$0xf] }
  0x16   : > { %v9888_v27 = vld [vmem:[%s12328_s2 + $0x6c] sm:$0xf]  ;;  %v9895_v28 = vld [vmem:[%s12328_s2 + $0x68] sm:$0xf]  ;;  %v9900_v29 = vld [vmem:[%s12328_s2 + $0x74] sm:$0xf] }
  0x17   : > { %594 = vperm.xlu1 %9309, %v9758_v5   ;;  %582 = vperm.xlu0 %9308, %v9763_v6   ;;  %v9907_v30 = vld [vmem:[%s12328_s2 + $0x70] sm:$0xf]  ;;  %v9912_v31 = vld [vmem:[%s12328_s2 + $0x7c] sm:$0xf]  ;;  %v9917_v32 = vld [vmem:[%s12328_s2 + $0x78] sm:$0xf] }
  0x18   : > { %v9391_v33 = vld [vmem:[%s12327_s1 + $0x20] sm:$0xff]   ;;  %v9393_v34 = vld [vmem:[%s12327_s1 + $0x28] sm:$0xff]   ;;  %v9394_v36 = vld [vmem:[%s12327_s1 + $0x30] sm:$0xff]   ;;  %v12332_v41 = vmov 2   ;;  %v9686_v42 = vmov 4   ;;  %s8048_s8 = sshll.u32 %s8043_s19, 5 }
  0x19   : > { %8634 = vmatprep.subr.bf16.mxu1 %v9391_v33  ;;  %v9395_v37 = vld [vmem:[%s12327_s1 + $0x38] sm:$0xff]   ;;  %v9968_v38 = vld [vmem:[%s12327_s1] sm:$0xff]   ;;  %v9402_v60 = vld [vmem:[%s12327_s1 + $0x88] sm:$0xff]   ;;  %p217_p3 = scmp.lt.s32.totalorder %s8048_s8, 63  ;;  %vm1549_vm0 = vcmask 523264   ;;  %vm529_vm3 = vcmask 1040384  }
  0x1a   : > { %8635 = vmatpush3.bf16.msra.mxu1 %v9391_v33  ;;  %v9401_v57 = vld [vmem:[%s12327_s1 + $0x80] sm:$0xff]   ;;  %v9403_v63 = vld [vmem:[%s12327_s1 + $0x90] sm:$0xff]   ;;  %vm301_vm1 = vsmask.f32 4352  ;;  %vm394_vm2 = vsmask.f32 256 }
  0x1b   : > { %618 = vperm.xlu1 %9309, %v9770_v7   ;;  %606 = vperm.xlu0 %9308, %v9775_v8   ;;  %s12686_s8 = smov (!%p217_p3, %s8048_s8), 63  ;;  %vm530_vm4 = vmand %vm529_vm3, %vm394_vm2  ;;  %vm2001_vm5 = vsmask.f32 7424  ;;  %vm2067_vm6 = vcmask 1047552  }
  0x1c   : > { %8636 = vmatprep.subr.bf16.mxu1 %v9393_v34  ;;  %8794 = vmatprep.subr.bf16.mxu0 %v9401_v57  ;;  %s8049_s19 = sshll.u32 %s12686_s8, 2  ;;  %vm11319_vm7 = vmand %vm2067_vm6, %vm2001_vm5  ;;  %s8051_s29 = sshll.u32 %s12686_s8, 3 }
  0x1d   : > { %8795 = vmatpush3.bf16.msra.mxu0 %v9401_v57  ;;  %s10088_s11 = scalar_lea.vmem %s12326_s0, %s8049_s19  ;;  %s12226_s7 = scalar_lea.vmem %s12331_s5, %s8051_s29 }
  0x1e   : > { %8637 = vmatpush3.bf16.msra.mxu1 %v9393_v34  ;;  %8796 = vmatprep.subr.bf16.mxu0 %v9402_v60  ;;  %v9404_v34 = vld [vmem:[%s12327_s1 + $0x98] sm:$0xff]  }
  0x1f   : > { %642 = vperm.xlu1 %9309, %v9780_v9   ;;  %630 = vperm.xlu0 %9308, %v9787_v10  }
  0x20   : > { %8638 = vmatprep.subr.bf16.mxu1 %v9394_v36 }
  0x21   : > { %8797 = vmatpush3.bf16.msra.mxu0 %v9402_v60 }
  0x22   : > { %8639 = vmatpush3.bf16.msra.mxu1 %v9394_v36  ;;  %8798 = vmatprep.subr.bf16.mxu0 %v9403_v63 }
  0x23   : > { %666 = vperm.xlu1 %9309, %v9794_v11   ;;  %654 = vperm.xlu0 %9308, %v9799_v12  }
  0x24   : > { %8640 = vmatprep.subr.bf16.mxu1 %v9395_v37 }
  0x25   : > { %8799 = vmatpush3.bf16.msra.mxu0 %v9403_v63 }
  0x26   : > { %8641 = vmatpush3.bf16.msra.mxu1 %v9395_v37  ;;  %8800 = vmatprep.subr.bf16.mxu0 %v9404_v34 }
  0x27   : > { %690 = vperm.xlu1 %9309, %v9806_v13   ;;  %678 = vperm.xlu0 %9308, %v9811_v14  }
  0x28   : > { %8674 = vmatprep.subr.bf16.mxu1 %v9968_v38 }
  0x29   : > { %8801 = vmatpush3.bf16.msra.mxu0 %v9404_v34  ;;  %v540_v34 = vlaneseq }
  0x2b   : > { %714 = vperm.xlu1 %9309, %v9818_v15   ;;  %702 = vperm.xlu0 %9308, %v9823_v16  }
  0x2f   : > { %738 = vperm.xlu1 %9309, %v9830_v17   ;;  %726 = vperm.xlu0 %9308, %v9835_v18  }
  0x33   : > { %762 = vperm.xlu1 %9309, %v9842_v19   ;;  %750 = vperm.xlu0 %9308, %v9847_v20  }
  0x37   : > { %786 = vperm.xlu1 %9309, %v9852_v21   ;;  %774 = vperm.xlu0 %9308, %v9859_v22  }
  0x3b   : > { %810 = vperm.xlu1 %9309, %v9864_v23   ;;  %798 = vperm.xlu0 %9308, %v9871_v24  }
  0x3f   : > { %834 = vperm.xlu1 %9309, %v9876_v25   ;;  %822 = vperm.xlu0 %9308, %v9883_v26  }
  0x43   : > { %858 = vperm.xlu1 %9309, %v9888_v27   ;;  %846 = vperm.xlu0 %9308, %v9895_v28  }
  0x47   : > { %882 = vperm.xlu1 %9309, %v9900_v29   ;;  %870 = vperm.xlu0 %9308, %v9907_v30  }
  0x4b   : > { %906 = vperm.xlu1 %9309, %v9912_v31   ;;  %894 = vperm.xlu0 %9308, %v9917_v32  }
  0x4f   : > { %9311 = vset.pattern.permute.xlu1 %v9684_v35  ;;  %9310 = vset.pattern.permute.xlu0 %v9684_v35 }
  0x50   : > { %1065 = vperm.xlu1 %9311, %v9751_v4   ;;  %1054 = vperm.xlu0 %9310, %v9739_v1  }
  0x54   : > { %1076 = vperm.xlu1 %9311, %v9734_v0   ;;  %1087 = vperm.xlu0 %9310, %v9746_v3  }
  0x58   : > { %1098 = vperm.xlu1 %9311, %v9763_v6   ;;  %1109 = vperm.xlu0 %9310, %v9758_v5  }
  0x5c   : > { %1120 = vperm.xlu1 %9311, %v9775_v8   ;;  %1131 = vperm.xlu0 %9310, %v9770_v7  }
  0x60   : > { %1142 = vperm.xlu1 %9311, %v9787_v10   ;;  %1153 = vperm.xlu0 %9310, %v9780_v9  }
  0x64   : > { %1164 = vperm.xlu1 %9311, %v9799_v12   ;;  %1175 = vperm.xlu0 %9310, %v9794_v11  }
  0x68   : > { %1186 = vperm.xlu1 %9311, %v9811_v14   ;;  %1197 = vperm.xlu0 %9310, %v9806_v13  }
  0x6c   : > { %1208 = vperm.xlu1 %9311, %v9823_v16   ;;  %1219 = vperm.xlu0 %9310, %v9818_v15  }
  0x70   : > { %1230 = vperm.xlu1 %9311, %v9835_v18   ;;  %1241 = vperm.xlu0 %9310, %v9830_v17  }
  0x74   : > { %1252 = vperm.xlu1 %9311, %v9847_v20   ;;  %1263 = vperm.xlu0 %9310, %v9842_v19  }
  0x78   : > { %1274 = vperm.xlu1 %9311, %v9859_v22   ;;  %1285 = vperm.xlu0 %9310, %v9852_v21  }
  0x7c   : > { %1296 = vperm.xlu1 %9311, %v9871_v24   ;;  %1307 = vperm.xlu0 %9310, %v9864_v23  }
  0x80   : > { %1318 = vperm.xlu1 %9311, %v9883_v26   ;;  %1329 = vperm.xlu0 %9310, %v9876_v25  }
  0x84   : > { %1340 = vperm.xlu1 %9311, %v9895_v28   ;;  %1351 = vperm.xlu0 %9310, %v9888_v27  }
  0x88   : > { %1362 = vperm.xlu1 %9311, %v9907_v30   ;;  %1373 = vperm.xlu0 %9310, %v9900_v29  }
  0x8c   : > { %1384 = vperm.xlu1 %9311, %v9917_v32   ;;  %1395 = vperm.xlu0 %9310, %v9912_v31  }
  0x8e   : > { %v9973_v39 = vpop.permute.xlu1 %558  ;;  %v9975_v40 = vpop.permute.xlu0 %534 }
  0x90   : > { %9312 = vset.pattern.permute.xlu1 %v12332_v41  ;;  %9313 = vset.pattern.permute.xlu0 %v9686_v42 }
  0x91   : > { %2071 = vperm.xlu1 %9312, %v9739_v1   ;;  %3549 = vperm.xlu0 %9313, %v9739_v1  }
  0x92   : > { %v9980_v43 = vpop.permute.xlu1 %570  ;;  %v9982_v44 = vpop.permute.xlu0 %546 }
  0x95   : > { %2093 = vperm.xlu1 %9312, %v9734_v0   ;;  %3582 = vperm.xlu0 %9313, %v9746_v3  }
  0x96   : > { %v9986_v45 = vpop.permute.xlu1 %594  ;;  %v9988_v46 = vpop.permute.xlu0 %582 }
  0x99   : > { %2104 = vperm.xlu1 %9312, %v9746_v3   ;;  %3604 = vperm.xlu0 %9313, %v9758_v5  }
  0x9a   : > { %v9992_v47 = vpop.permute.xlu1 %618  ;;  %v9994_v48 = vpop.permute.xlu0 %606 }
  0x9d   : > { %2126 = vperm.xlu1 %9312, %v9758_v5   ;;  %3626 = vperm.xlu0 %9313, %v9770_v7  }
  0x9e   : > { %v9998_v49 = vpop.permute.xlu1 %642  ;;  %v10000_v50 = vpop.permute.xlu0 %630 }
  0xa1   : > { %2148 = vperm.xlu1 %9312, %v9770_v7   ;;  %3648 = vperm.xlu0 %9313, %v9780_v9  }
  0xa2   : > { %v10004_v51 = vpop.permute.xlu1 %666  ;;  %v10006_v52 = vpop.permute.xlu0 %654 }
  0xa5   : > { %2170 = vperm.xlu1 %9312, %v9780_v9   ;;  %3670 = vperm.xlu0 %9313, %v9794_v11  }
  0xa6   : > { %v10010_v53 = vpop.permute.xlu1 %690  ;;  %v10012_v54 = vpop.permute.xlu0 %678 }
  0xa9   : > { %2192 = vperm.xlu1 %9312, %v9794_v11   ;;  %3692 = vperm.xlu0 %9313, %v9806_v13  }
  0xaa   : > { %v10016_v55 = vpop.permute.xlu1 %714  ;;  %v10018_v56 = vpop.permute.xlu0 %702 }
  0xad   : > { %2214 = vperm.xlu1 %9312, %v9806_v13   ;;  %3714 = vperm.xlu0 %9313, %v9818_v15  }
  0xae   : > { %v10025_v58 = vpop.permute.xlu1 %738  ;;  %v10027_v59 = vpop.permute.xlu0 %726 }
  0xb1   : > { %9314 = vset.pattern.permute.xlu1 %v9686_v42  ;;  %3736 = vperm.xlu0 %9313, %v9830_v17  }
  0xb2   : > { %v10033_v61 = vpop.permute.xlu1 %762  ;;  %3560 = vperm.xlu1 %9314, %v9751_v4   ;;  %v10036_v62 = vpop.permute.xlu0 %750 }
  0xb5   : > { %3758 = vperm.xlu0 %9313, %v9842_v19  }
  0xb6   : > { %v10042_v2 = vpop.permute.xlu1 %786  ;;  %3571 = vperm.xlu1 %9314, %v9734_v0   ;;  %v10045_v33 = vpop.permute.xlu0 %774 }
  0xb7   : > { %12445 = vst [vmem:[#allocation2_spill] sm:$0xff] %v10042_v2  ;;  %12446 = vst [vmem:[#allocation3_spill] sm:$0xff] %v10045_v33 }
  0xb9   : > { %3780 = vperm.xlu0 %9313, %v9852_v21  }
  0xba   : > { %v10051_v35 = vpop.permute.xlu1 %810  ;;  %3593 = vperm.xlu1 %9314, %v9763_v6   ;;  %v10054_v36 = vpop.permute.xlu0 %798 }
  0xbb   : > { %12447 = vst [vmem:[#allocation4_spill] sm:$0xff] %v10051_v35  ;;  %12448 = vst [vmem:[#allocation5_spill] sm:$0xff] %v10054_v36 }
  0xbd   : > { %3802 = vperm.xlu0 %9313, %v9864_v23   ;;  %v9687_v23 = vmov 839922192  }
  0xbe   : > { %v10059_v37 = vpop.permute.xlu1 %834  ;;  %3615 = vperm.xlu1 %9314, %v9775_v8   ;;  %v10062_v42 = vpop.permute.xlu0 %822  ;;  %v538_v63 = vunpack.c.l.s4 %v9687_v23  ;;  %v10098_v23 = vld [vmem:[%s10088_s11 + $0x7c] sm:$0xf] }
  0xbf   : > { %12449 = vst [vmem:[#allocation6_spill] sm:$0xff] %v10059_v37  ;;  %12450 = vst [vmem:[#allocation7_spill] sm:$0xff] %v10062_v42 }
  0xc1   : > { %3824 = vperm.xlu0 %9313, %v9876_v25   ;;  %v539_v25 = vunpack.c.0.s8 %v538_v63 }
  0xc2   : > { %v10065_v57 = vpop.permute.xlu1 %858  ;;  %3637 = vperm.xlu1 %9314, %v9787_v10   ;;  %v10068_v60 = vpop.permute.xlu0 %846 }
  0xc3   : > { %12451 = vst [vmem:[#allocation8_spill] sm:$0xff] %v10065_v57  ;;  %12452 = vst [vmem:[#allocation9_spill] sm:$0xff] %v10068_v60  ;;  %v541_v57 = vshrl.u32 %v540_v34, 7 }
  0xc5   : > { %3846 = vperm.xlu0 %9313, %v9888_v27   ;;  %v10091_v27 = vld [vmem:[%s10088_s11 + $0x78] sm:$0xf] }
  0xc6   : > { %v10073_v41 = vpop.permute.xlu1 %882  ;;  %3659 = vperm.xlu1 %9314, %v9799_v12   ;;  %v10076_v42 = vpop.permute.xlu0 %870 }
  0xc7   : > { %12453 = vst [vmem:[#allocation10_spill] sm:$0xff] %v10073_v41  ;;  %12454 = vst [vmem:[#allocation11_spill] sm:$0xff] %v10076_v42  ;;  %v10104_v42 = vcombine.low %v10091_v27, %v10098_v23  ;;  %v12334_v41 = vmov 5  }
  0xc9   : > { %3868 = vperm.xlu0 %9313, %v9900_v29   ;;  %v10094_v29 = vsub.s32 %v539_v25, %v541_v57  ;;  %12457 = vst [vmem:[#allocation14_spill] sm:$0xff] %v10104_v42  ;;  %v10110_v57 = vld [vmem:[%s10088_s11] sm:$0xf]  ;;  %v10113_v25 = vld [vmem:[%s10088_s11 + $0x4] sm:$0xf] }
  0xca   : > { %v10080_v60 = vpop.permute.xlu1 %906  ;;  %3681 = vperm.xlu1 %9314, %v9811_v14   ;;  %v10083_v37 = vpop.permute.xlu0 %894  ;;  %12458 = vst [vmem:[#allocation15_spill] sm:$0xff] %v10113_v25 }
  0xcb   : > { %12455 = vst [vmem:[#allocation12_spill] sm:$0xff] %v10080_v60  ;;  %12456 = vst [vmem:[#allocation13_spill] sm:$0xff] %v10083_v37 }
  0xcd   : > { %3890 = vperm.xlu0 %9313, %v9912_v31  }
  0xce   : > { %3703 = vperm.xlu1 %9314, %v9823_v16  }
  0xcf   : > { %v1066_v63 = vpop.permute.xlu1 %1065  ;;  %v1055_v34 = vpop.permute.xlu0 %1054 }
  0xd0   : > { %v1074_v37 = vrot.slane %v1066_v63, %v10094_v29  ;;  %v1063_v60 = vrot.slane %v1055_v34, %v10094_v29 }
  0xd1   : > { %9316 = vset.pattern.permute.xlu0 %v12334_v41  ;;  %v10120_v41 = vcombine.low %v10110_v57, %v10113_v25 }
  0xd2   : > { %3725 = vperm.xlu1 %9314, %v9835_v18   ;;  %4306 = vperm.xlu0 %9316, %v9751_v4   ;;  %v8086_v31 = vcombine.low %v1063_v60, %v1074_v37  ;;  %v10125_v4 = vld [vmem:[%s10088_s11 + $0x8] sm:$0xf]  ;;  %v10128_v37 = vld [vmem:[%s10088_s11 + $0xc] sm:$0xf] }
  0xd3   : > { %v1077_v63 = vpop.permute.xlu1 %1076  ;;  %v1088_v34 = vpop.permute.xlu0 %1087  ;;  %12459 = vst [vmem:[#allocation16_spill] sm:$0xff] %v10120_v41  ;;  %12460 = vst [vmem:[#allocation17_spill] sm:$0xff] %v10125_v4 }
  0xd4   : > { %v1085_v36 = vrot.slane %v1077_v63, %v10094_v29  ;;  %v1096_v35 = vrot.slane %v1088_v34, %v10094_v29  ;;  %v1501_v33 = vmul.bf16 %v8086_v31, %v10104_v42  ;;  %12461 = vst [vmem:[#allocation18_spill] sm:$0xff] %v10128_v37 }
  0xd6   : > { %v8087_v2 = vcombine.low %v1085_v36, %v1096_v35  ;;  %3747 = vperm.xlu1 %9314, %v9847_v20   ;;  %4339 = vperm.xlu0 %9316, %v9763_v6   ;;  %v9398_v36 = vld [vmem:[%s12327_s1 + $0x8] sm:$0xff]   ;;  %v10139_v6 = vcombine.low %v10125_v4, %v10128_v37 }
  0xd7   : > { %8642 = vmatprep.mubr.msk.bf16.mxu1 %vm1549_vm0, %v1501_v33  ;;  %v1099_v60 = vpop.permute.xlu1 %1098  ;;  %v1110_v31 = vpop.permute.xlu0 %1109  ;;  %v10144_v33 = vld [vmem:[%s10088_s11 + $0x10] sm:$0xf] }
  0xd8   : > { %v1502_v63 = vmul.bf16 %v8087_v2, %v10120_v41  ;;  %v1107_v34 = vrot.slane %v1099_v60, %v10094_v29  ;;  %v1118_v35 = vrot.slane %v1110_v31, %v10094_v29  ;;  %12462 = vst [vmem:[#allocation19_spill] sm:$0xff] %v10144_v33  ;;  %v10147_v2 = vld [vmem:[%s10088_s11 + $0x14] sm:$0xf] }
  0xd9   : > { %12463 = vst [vmem:[#allocation20_spill] sm:$0xff] %v10147_v2 }
  0xda   : > { %v8088_v42 = vcombine.low %v1107_v34, %v1118_v35  ;;  %3769 = vperm.xlu1 %9314, %v9859_v22   ;;  %4361 = vperm.xlu0 %9316, %v9775_v8   ;;  %v9399_v8 = vld [vmem:[%s12327_s1 + $0x10] sm:$0xff]   ;;  %v10159_v35 = vcombine.low %v10144_v33, %v10147_v2 }
  0xdb   : > { %8643 = vmatmul.mubr.msk.bf16.vlgmr.msra.gmra.mrb[0].mxu1 %vm1549_vm0, %v1502_v63  ;;  %v1121_v60 = vpop.permute.xlu1 %1120  ;;  %v1132_v31 = vpop.permute.xlu0 %1131 }
  0xdc   : > { %v1503_v25 = vmul.bf16 %v8088_v42, %v10139_v6  ;;  %v1129_v4 = vrot.slane %v1121_v60, %v10094_v29  ;;  %v1140_v34 = vrot.slane %v1132_v31, %v10094_v29  ;;  %8675 = vmatpush3.bf16.msra.mxu1 %v9968_v38  ;;  %v10164_v42 = vld [vmem:[%s10088_s11 + $0x18] sm:$0xf]  ;;  %v10167_v60 = vld [vmem:[%s10088_s11 + $0x1c] sm:$0xf] }
  0xdd   : > { %8676 = vmatprep.subr.bf16.mxu1 %v9398_v36  ;;  %12464 = vst [vmem:[#allocation21_spill] sm:$0xff] %v10164_v42 }
  0xde   : > { %v8089_v63 = vcombine.low %v1129_v4, %v1140_v34  ;;  %3791 = vperm.xlu1 %9314, %v9871_v24   ;;  %4383 = vperm.xlu0 %9316, %v9787_v10   ;;  %v9400_v10 = vld [vmem:[%s12327_s1 + $0x18] sm:$0xff]   ;;  %v10178_v34 = vcombine.low %v10164_v42, %v10167_v60 }
  0xdf   : > { %8646 = vmatprep.mubr.msk.bf16.mxu1 %vm1549_vm0, %v1503_v25  ;;  %v1143_v38 = vpop.permute.xlu1 %1142  ;;  %v1154_v31 = vpop.permute.xlu0 %1153  ;;  %v10183_v25 = vld [vmem:[%s10088_s11 + $0x20] sm:$0xf] }
  0xe0   : > { %v1504_v37 = vmul.bf16 %v8089_v63, %v10159_v35  ;;  %v1151_v33 = vrot.slane %v1143_v38, %v10094_v29  ;;  %v1162_v4 = vrot.slane %v1154_v31, %v10094_v29  ;;  %8677 = vmatpush3.bf16.msra.mxu1 %v9398_v36  ;;  %12465 = vst [vmem:[#allocation22_spill] sm:$0xff] %v10183_v25  ;;  %v10186_v63 = vld [vmem:[%s10088_s11 + $0x24] sm:$0xf] }
  0xe1   : > { %8678 = vmatprep.subr.bf16.mxu1 %v9399_v8  ;;  %12466 = vst [vmem:[#allocation23_spill] sm:$0xff] %v10186_v63 }
  0xe2   : > { %v8090_v2 = vcombine.low %v1151_v33, %v1162_v4  ;;  %3813 = vperm.xlu1 %9314, %v9883_v26   ;;  %4405 = vperm.xlu0 %9316, %v9799_v12   ;;  %v10194_v12 = vcombine.low %v10183_v25, %v10186_v63  ;;  %v10218_v63 = vld [vmem:[%s10088_s11 + $0x34] sm:$0xf] }
  0xe3   : > { %8647 = vmatmul.mubr.msk.bf16.gmra.mrb[4].mxu1 %vm1549_vm0, %v1504_v37  ;;  %v1165_v36 = vpop.permute.xlu1 %1164  ;;  %v1176_v38 = vpop.permute.xlu0 %1175  ;;  %v10199_v37 = vld [vmem:[%s10088_s11 + $0x28] sm:$0xf]  ;;  %12470 = vst [vmem:[#allocation27_spill] sm:$0xff] %v10218_v63 }
  0xe4   : > { %v1505_v31 = vmul.bf16 %v8090_v2, %v10178_v34  ;;  %v1173_v42 = vrot.slane %v1165_v36, %v10094_v29  ;;  %v1184_v33 = vrot.slane %v1176_v38, %v10094_v29  ;;  %8679 = vmatpush3.bf16.msra.mxu1 %v9399_v8  ;;  %12467 = vst [vmem:[#allocation24_spill] sm:$0xff] %v10199_v37  ;;  %v10202_v2 = vld [vmem:[%s10088_s11 + $0x2c] sm:$0xf] }
  0xe5   : > { %8680 = vmatprep.subr.bf16.mxu1 %v9400_v10  ;;  %12468 = vst [vmem:[#allocation25_spill] sm:$0xff] %v10202_v2 }
  0xe6   : > { %v8091_v4 = vcombine.low %v1173_v42, %v1184_v33  ;;  %3835 = vperm.xlu1 %9314, %v9895_v28   ;;  %4427 = vperm.xlu0 %9316, %v9811_v14   ;;  %v10210_v33 = vcombine.low %v10199_v37, %v10202_v2  ;;  %v12476_v2 = vmov 5  }
  0xe7   : > { %8650 = vmatprep.mubr.msk.bf16.mxu1 %vm1549_vm0, %v1505_v31  ;;  %v1187_v36 = vpop.permute.xlu1 %1186  ;;  %v1198_v8 = vpop.permute.xlu0 %1197  ;;  %v10215_v31 = vld [vmem:[%s10088_s11 + $0x30] sm:$0xf] }
  0xe8   : > { %v1506_v38 = vmul.bf16 %v8091_v4, %v10194_v12  ;;  %v1195_v25 = vrot.slane %v1187_v36, %v10094_v29  ;;  %v1206_v42 = vrot.slane %v1198_v8, %v10094_v29  ;;  %8681 = vmatpush3.bf16.msra.mxu1 %v9400_v10  ;;  %12469 = vst [vmem:[#allocation26_spill] sm:$0xff] %v10215_v31 }
  0xea   : > { %v8092_v14 = vcombine.low %v1195_v25, %v1206_v42  ;;  %3857 = vperm.xlu1 %9314, %v9907_v30   ;;  %4449 = vperm.xlu0 %9316, %v9823_v16   ;;  %v10226_v25 = vcombine.low %v10215_v31, %v10218_v63  ;;  %v10231_v16 = vld [vmem:[%s10088_s11 + $0x38] sm:$0xf] }
  0xeb   : > { %8651 = vmatmul.mubr.msk.bf16.gmra.mrb[8].mxu1 %vm1549_vm0, %v1506_v38  ;;  %v1209_v4 = vpop.permute.xlu1 %1208  ;;  %v1220_v36 = vpop.permute.xlu0 %1219  ;;  %12472 = vst [vmem:[#allocation29_spill] sm:$0xff] %v10231_v16  ;;  %v10234_v38 = vld [vmem:[%s10088_s11 + $0x3c] sm:$0xf] }
  0xec   : > { %v1507_v10 = vmul.bf16 %v8092_v14, %v10210_v33  ;;  %v1217_v8 = vrot.slane %v1209_v4, %v10094_v29  ;;  %v1228_v37 = vrot.slane %v1220_v36, %v10094_v29  ;;  %12471 = vst [vmem:[#allocation28_spill] sm:$0xff] %v10226_v25  ;;  %12473 = vst [vmem:[#allocation30_spill] sm:$0xff] %v10234_v38 }
  0xee   : > { %v8093_v42 = vcombine.low %v1217_v8, %v1228_v37  ;;  %3879 = vperm.xlu1 %9314, %v9917_v32   ;;  %4471 = vperm.xlu0 %9316, %v9835_v18   ;;  %v10243_v8 = vld [vmem:[%s12327_s1 + $0xa0] sm:$0xff]   ;;  %v10247_v18 = vcombine.low %v10231_v16, %v10234_v38 }
  0xef   : > { %8654 = vmatprep.mubr.msk.bf16.mxu1 %vm1549_vm0, %v1507_v10  ;;  %v1231_v14 = vpop.permute.xlu1 %1230  ;;  %v1242_v4 = vpop.permute.xlu0 %1241  ;;  %12474 = vst [vmem:[#allocation31_spill] sm:$0xff] %v10243_v8  ;;  %v10252_v10 = vld [vmem:[%s10088_s11 + $0x40] sm:$0xf]  ;;  %8834 = vmatprep.subr.bf16.mxu0 %v10243_v8 }
  0xf0   : > { %v1508_v36 = vmul.bf16 %v8093_v42, %v10226_v25  ;;  %v1239_v31 = vrot.slane %v1231_v14, %v10094_v29  ;;  %v1250_v37 = vrot.slane %v1242_v4, %v10094_v29  ;;  %12475 = vst [vmem:[#allocation32_spill] sm:$0xff] %v10247_v18  ;;  %12477 = vst [vmem:[#allocation33_spill] sm:$0xff] %v10252_v10  ;;  %v10255_v42 = vld [vmem:[%s10088_s11 + $0x44] sm:$0xf]  ;;  %v10324_v8 = vld [vmem:[%s10088_s11 + $0x60] sm:$0xf] }
  0xf1   : > { %12478 = vst [vmem:[#allocation34_spill] sm:$0xff] %v10255_v42  ;;  %12488 = vst [vmem:[#allocation44_spill] sm:$0xff] %v10324_v8 }
  0xf2   : > { %v8094_v63 = vcombine.low %v1239_v31, %v1250_v37  ;;  %9315 = vset.pattern.permute.xlu1 %v12476_v2  ;;  %4493 = vperm.xlu0 %9316, %v9847_v20   ;;  %v10265_v20 = vcombine.low %v10252_v10, %v10255_v42 }
  0xf3   : > { %8655 = vmatmul.mubr.msk.bf16.gmra.mrb[12].mxu1 %vm1549_vm0, %v1508_v36  ;;  %v1253_v14 = vpop.permute.xlu1 %1252  ;;  %4295 = vperm.xlu1 %9315, %v9739_v1   ;;  %v1264_v4 = vpop.permute.xlu0 %1263  ;;  %v10270_v1 = vld [vmem:[%s10088_s11 + $0x48] sm:$0xf] }
  0xf4   : > { %v1509_v16 = vmul.bf16 %v8094_v63, %v10247_v18  ;;  %v1261_v31 = vrot.slane %v1253_v14, %v10094_v29  ;;  %v1272_v2 = vrot.slane %v1264_v4, %v10094_v29  ;;  %12479 = vst [vmem:[#allocation35_spill] sm:$0xff] %v10265_v20  ;;  %12480 = vst [vmem:[#allocation36_spill] sm:$0xff] %v10270_v1  ;;  %v10273_v63 = vld [vmem:[%s10088_s11 + $0x4c] sm:$0xf] }
  0xf5   : > { %12481 = vst [vmem:[#allocation37_spill] sm:$0xff] %v10273_v63 }
  0xf6   : > { %v8095_v37 = vcombine.low %v1261_v31, %v1272_v2  ;;  %4515 = vperm.xlu0 %9316, %v9859_v22   ;;  %8658 = vmatprep.mubr.msk.bf16.mxu1 %vm1549_vm0, %v1509_v16  ;;  %v10281_v22 = vcombine.low %v10270_v1, %v10273_v63  ;;  %v10285_v31 = vld [vmem:[%s10088_s11 + $0x50] sm:$0xf]  ;;  %v10288_v2 = vld [vmem:[%s10088_s11 + $0x54] sm:$0xf] }
  0xf7   : > { %v1275_v36 = vpop.permute.xlu1 %1274  ;;  %4317 = vperm.xlu1 %9315, %v9734_v0   ;;  %v1286_v14 = vpop.permute.xlu0 %1285  ;;  %12483 = vst [vmem:[#allocation39_spill] sm:$0xff] %v10285_v31  ;;  %12484 = vst [vmem:[#allocation40_spill] sm:$0xff] %v10288_v2  ;;  %v10302_v1 = vcombine.low %v10285_v31, %v10288_v2 }
  0xf8   : > { %v1510_v4 = vmul.bf16 %v8095_v37, %v10265_v20  ;;  %v1283_v10 = vrot.slane %v1275_v36, %v10094_v29  ;;  %v1294_v42 = vrot.slane %v1286_v14, %v10094_v29  ;;  %12482 = vst [vmem:[#allocation38_spill] sm:$0xff] %v10281_v22  ;;  %v10293_v36 = vld [vmem:[%s10088_s11 + $0x74] sm:$0xf] }
  0xf9   : > { %12485 = vst [vmem:[#allocation41_spill] sm:$0xff] %v10302_v1 }
  0xfa   : > { %v8096_v16 = vcombine.low %v1283_v10, %v1294_v42  ;;  %4537 = vperm.xlu0 %9316, %v9871_v24   ;;  %v8052_v42 = vcombine.low %v10293_v36, %v10091_v27 }
  0xfb   : > { %8659 = vmatmul.mubr.msk.bf16.gmra.mrb[16].mxu1 %vm1549_vm0, %v1510_v4  ;;  %v1297_v0 = vpop.permute.xlu1 %1296  ;;  %4328 = vperm.xlu1 %9315, %v9746_v3   ;;  %v1308_v37 = vpop.permute.xlu0 %1307  ;;  %v8053_v3 = vcombine.low %v10098_v23, %v10098_v23 }
  0xfc   : > { %v1511_v14 = vmul.bf16 %v8096_v16, %v10281_v22  ;;  %v1305_v10 = vrot.slane %v1297_v0, %v10094_v29  ;;  %v1316_v24 = vrot.slane %v1308_v37, %v10094_v29  ;;  %v10309_v16 = vld [vmem:[%s10088_s11 + $0x58] sm:$0xf]  ;;  %v10312_v0 = vld [vmem:[%s10088_s11 + $0x5c] sm:$0xf] }
  0xfd   : > { %12486 = vst [vmem:[#allocation42_spill] sm:$0xff] %v10309_v16  ;;  %v314_v2 = vshll.u32 %v8053_v3, 16  ;;  %v10320_v23 = vcombine.low %v10309_v16, %v10312_v0  ;;  %v311_v38 = vshrl.u32 %v8053_v3, 16 }
  0xfe   : > { %v8097_v4 = vcombine.low %v1305_v10, %v1316_v24  ;;  %4559 = vperm.xlu0 %9316, %v9883_v26   ;;  %8662 = vmatprep.mubr.msk.bf16.mxu1 %vm1549_vm0, %v1511_v14  ;;  %v303_v14 = vshrl.u32 %v8052_v42, 16  ;;  %v306_v24 = vshll.u32 %v8052_v42, 16 }
  0xff   : > { %v1319_v37 = vpop.permute.xlu1 %1318  ;;  %4350 = vperm.xlu1 %9315, %v9758_v5   ;;  %v1330_v27 = vpop.permute.xlu0 %1329  ;;  %12487 = vst [vmem:[#allocation43_spill] sm:$0xff] %v10320_v23  ;;  %v10327_v5 = vld [vmem:[%s10088_s11 + $0x64] sm:$0xf] }
 0x100   : > { %v1512_v31 = vmul.bf16 %v8097_v4, %v10302_v1  ;;  %v1327_v10 = vrot.slane %v1319_v37, %v10094_v29  ;;  %v1338_v26 = vrot.slane %v1330_v27, %v10094_v29  ;;  %v308_v3 = vrot.slane %v306_v24, 4 }
 0x101   : > { %v10336_v16 = vcombine.low %v10324_v8, %v10327_v5  ;;  %v555_v24 = vrot.slane %v9982_v44, %v10094_v29  ;;  %v12360_v44 = vshrl.u32 %v10139_v6, 16 }
 0x102   : > { %v8098_v63 = vcombine.low %v1327_v10, %v1338_v26  ;;  %4581 = vperm.xlu0 %9316, %v9895_v28   ;;  %v305_v28 = vrot.slane %v303_v14, 3  ;;  %v316_v26 = vrot.slane %v314_v2, 4 }
 0x103   : > { %8663 = vmatmul.mubr.msk.bf16.gmra.mrb[20].mxu1 %vm1549_vm0, %v1512_v31  ;;  %v1341_v4 = vpop.permute.xlu1 %1340  ;;  %4372 = vperm.xlu1 %9315, %v9770_v7   ;;  %v1352_v42 = vpop.permute.xlu0 %1351  ;;  %12489 = vst [vmem:[#allocation45_spill] sm:$0xff] %v10336_v16  ;;  %v543_v7 = vrot.slane %v9975_v40, %v10094_v29 }
 0x104   : > { %v1513_v37 = vmul.bf16 %v8098_v63, %v10320_v23  ;;  %v1349_v27 = vrot.slane %v1341_v4, %v10094_v29  ;;  %v1360_v10 = vrot.slane %v1352_v42, %v10094_v29  ;;  %v10342_v63 = vrot.slane %v311_v38, 3  ;;  %v10345_v4 = vld [vmem:[%s10088_s11 + $0x68] sm:$0xf]  ;;  %v10348_v42 = vld [vmem:[%s10088_s11 + $0x6c] sm:$0xf] }
 0x105   : > { %v10356_v38 = vor.u32 %v308_v3, %v305_v28 }
 0x106   : > { %v8099_v31 = vcombine.low %v1349_v27, %v1360_v10  ;;  %4603 = vperm.xlu0 %9316, %v9907_v30   ;;  %8666 = vmatprep.mubr.msk.bf16.mxu1 %vm1549_vm0, %v1513_v37  ;;  %v317_v27 = vor.u32 %v316_v26, %v10342_v63  ;;  %v8069_v26 = vcombine.low %v543_v7, %v555_v24  ;;  %v12361_v24 = vmov 6  }
 0x107   : > { %v1363_v2 = vpop.permute.xlu1 %1362  ;;  %4394 = vperm.xlu1 %9315, %v9780_v9   ;;  %v1374_v14 = vpop.permute.xlu0 %1373  ;;  %12490 = vst [vmem:[#allocation46_spill] sm:$0xff] %v10356_v38  ;;  %v10362_v9 = vcombine.low %v10345_v4, %v10348_v42 }
 0x108   : > { %v1514_v30 = vmul.bf16 %v8099_v31, %v10336_v16  ;;  %v1371_v37 = vrot.slane %v1363_v2, %v10094_v29  ;;  %v1382_v40 = vrot.slane %v1374_v14, %v10094_v29  ;;  %v10367_v31 = vld [vmem:[%s10088_s11 + $0x70] sm:$0xf] }
 0x109   : > { %12491 = vst [vmem:[#allocation47_spill] sm:$0xff] %v10362_v9 }
 0x10a   : > { %v8100_v8 = vcombine.low %v1371_v37, %v1382_v40  ;;  %4625 = vperm.xlu0 %9316, %v9917_v32   ;;  %v10376_v32 = vsel %vm301_vm1, %v10356_v38, %v317_v27  ;;  %v12493_v37 = vshrl.u32 %v10120_v41, 16  ;;  %v12363_v27 = vshll.u32 %v10139_v6, 16 }
 0x10b   : > { %8667 = vmatmul.mubr.msk.bf16.gmra.mrb[24].mxu1 %vm1549_vm0, %v1514_v30  ;;  %v1385_v28 = vpop.permute.xlu1 %1384  ;;  %4416 = vperm.xlu1 %9315, %v9794_v11   ;;  %v1396_v3 = vpop.permute.xlu0 %1395  ;;  %12492 = vst [vmem:[#allocation48_spill] sm:$0xff] %v10376_v32  ;;  %v12364_v30 = vshll.u32 %v10120_v41, 16  ;;  %v10383_v11 = vcombine.low %v10367_v31, %v10293_v36 }
 0x10c   : > { %v1515_v2 = vmul.bf16 %v8100_v8, %v10362_v9  ;;  %v1393_v14 = vrot.slane %v1385_v28, %v10094_v29  ;;  %v1404_v10 = vrot.slane %v1396_v3, %v10094_v29  ;;  %v398_v40 = vrot.slane %v12493_v37, 7  ;;  %v10394_v28 = vld [vmem:[%s12328_s2] sm:$0xf] }
 0x10d   : > { %12494 = vst [vmem:[#allocation49_spill] sm:$0xff] %v10383_v11  ;;  %v405_v8 = vrot.slane %v12360_v44, 7  ;;  %v12368_v37 = vshrl.u32 %v10159_v35, 16 }
 0x10e   : > { %v8101_v7 = vcombine.low %v1393_v14, %v1404_v10  ;;  %9317 = vset.pattern.permute.xlu0 %v12361_v24  ;;  %8670 = vmatprep.mubr.msk.bf16.mxu1 %vm1549_vm0, %v1515_v2  ;;  %v1012_v10 = vmul.bf16 %v8069_v26, %v10376_v32  ;;  %v401_v44 = vor.u32 %v12364_v30, %v398_v40 }
 0x10f   : > { %4438 = vperm.xlu1 %9315, %v9806_v13   ;;  %5186 = vperm.xlu0 %9317, %v10394_v28   ;;  %v579_v13 = vrot.slane %v9980_v43, %v10094_v29  ;;  %v603_v24 = vrot.slane %v9986_v45, %v10094_v29  ;;  %v591_v26 = vrot.slane %v9988_v46, %v10094_v29  ;;  %v10423_v45 = vld [vmem:[%s12328_s2 + $0xc] sm:$0xf]  ;;  %v413_v30 = vrot.slane %v12368_v37, 7 }
 0x110   : > { %v1516_v3 = vmul.bf16 %v8101_v7, %v10383_v11  ;;  %v10399_v2 = vpop.permute.xlu1 %2071  ;;  %v10401_v14 = vpop.permute.xlu0 %3549  ;;  %v567_v7 = vrot.slane %v9973_v39, %v10094_v29  ;;  %v408_v32 = vor.u32 %v12363_v27, %v405_v8  ;;  %12496 = vst [vmem:[#allocation51_spill] sm:$0xff] %v10423_v45  ;;  %v12374_v37 = vshll.u32 %v10194_v12, 16 }
 0x111   : > { %12495 = vst [vmem:[#allocation50_spill] sm:$0xff] %v10399_v2  ;;  %v8071_v43 = vcombine.low %v591_v26, %v603_v24  ;;  %v12500_v2 = vshrl.u32 %v10178_v34, 16  ;;  %v639_v26 = vrot.slane %v10000_v50, %v10094_v29 }
 0x112   : > { %v8070_v27 = vcombine.low %v567_v7, %v579_v13  ;;  %v10438_v38 = vsel %vm394_vm2, %v398_v40, %v408_v32  ;;  %v627_v40 = vrot.slane %v9992_v47, %v10094_v29  ;;  %v651_v13 = vrot.slane %v9998_v49, %v10094_v29 }
 0x113   : > { %8671 = vmatmul.mubr.msk.bf16.gmra.mrb[28].mxu1 %vm1549_vm0, %v1516_v3  ;;  %4460 = vperm.xlu1 %9315, %v9818_v15   ;;  %v12369_v3 = vshll.u32 %v10159_v35, 16  ;;  %v10435_v15 = vsel %vm530_vm4, %v10342_v63, %v401_v44  ;;  %12499 = vst [vmem:[#allocation54_spill] sm:$0xff] %v10438_v38  ;;  %v12372_v7 = vshrl.u32 %v10194_v12, 16  ;;  %v12371_v47 = vshrl.u32 %v10210_v33, 16 }
 0x114   : > { %5219 = vperm.xlu0 %9317, %v10423_v45   ;;  %v10426_v46 = vpop.permute.xlu1 %2093  ;;  %v10428_v39 = vpop.permute.xlu0 %3582  ;;  %8682 = vmatprep.mubr.msk.bf16.mxu1 %vm1549_vm0, %v1012_v10  ;;  %12498 = vst [vmem:[#allocation53_spill] sm:$0xff] %v10435_v15  ;;  %v12367_v45 = vshll.u32 %v10178_v34, 16  ;;  %v10447_v10 = vld [vmem:[%s12328_s2 + $0x14] sm:$0xf]  ;;  %v1013_v32 = vmul.bf16 %v8070_v27, %v10435_v15  ;;  %v12511_v15 = vshrl.u32 %v10247_v18, 16 }
 0x115   : > { %12497 = vst [vmem:[#allocation52_spill] sm:$0xff] %v10426_v46  ;;  %v421_v46 = vrot.slane %v12500_v2, 7  ;;  %v416_v24 = vor.u32 %v12369_v3, %v413_v30  ;;  %v1014_v2 = vmul.bf16 %v8071_v43, %v10438_v38  ;;  %v12373_v38 = vshll.u32 %v10210_v33, 16 }
 0x117   : > { %4482 = vperm.xlu1 %9315, %v9830_v17   ;;  %v615_v17 = vrot.slane %v9994_v48, %v10094_v29  ;;  %v424_v27 = vor.u32 %v12367_v45, %v421_v46  ;;  %v10475_v48 = vld [vmem:[%s12328_s2 + $0x1c] sm:$0xf]  ;;  %v10484_v45 = vsel %vm394_vm2, %v405_v8, %v416_v24  ;;  %v10501_v8 = vld [vmem:[%s12328_s2 + $0x24] sm:$0xf] }
 0x118   : > { %5241 = vperm.xlu0 %9317, %v10447_v10   ;;  %v10450_v63 = vpop.permute.xlu1 %2104  ;;  %v10452_v44 = vpop.permute.xlu0 %3604  ;;  %12503 = vst [vmem:[#allocation57_spill] sm:$0xff] %v10484_v45 }
 0x119   : > { %12501 = vst [vmem:[#allocation55_spill] sm:$0xff] %v10450_v63  ;;  %v8072_v43 = vcombine.low %v615_v17, %v627_v40  ;;  %v10490_v3 = vsel %vm394_vm2, %v413_v30, %v424_v27  ;;  %v675_v17 = vrot.slane %v10004_v51, %v10094_v29  ;;  %v3591_v63 = vrot.slane %v10428_v39, %v10094_v29  ;;  %v10672_v39 = vld [vmem:[%s12328_s2 + $0x7c] sm:$0xf] }
 0x11a   : > { %12504 = vst [vmem:[#allocation58_spill] sm:$0xff] %v10490_v3 }
 0x11b   : > { %8683 = vmatmul.mubr.msk.bf16.vlgmr.msra.gmra.mrb[0].mxu1 %vm1549_vm0, %v1013_v32  ;;  %4504 = vperm.xlu1 %9315, %v9842_v19   ;;  %v8073_v32 = vcombine.low %v639_v26, %v651_v13  ;;  %v429_v19 = vrot.slane %v12372_v7, 7  ;;  %v1015_v30 = vmul.bf16 %v8072_v43, %v10484_v45  ;;  %v663_v13 = vrot.slane %v10006_v52, %v10094_v29  ;;  %v10529_v52 = vld [vmem:[%s12328_s2 + $0x5c] sm:$0xf] }
 0x11c   : > { %5263 = vperm.xlu0 %9317, %v10475_v48   ;;  %8686 = vmatprep.mubr.msk.bf16.mxu1 %vm1549_vm0, %v1014_v2  ;;  %v10479_v49 = vpop.permute.xlu1 %2126  ;;  %v10481_v50 = vpop.permute.xlu0 %3626  ;;  %v10494_v2 = vrot.slane %v12371_v47, 7  ;;  %v699_v47 = vrot.slane %v10010_v53, %v10094_v29  ;;  %v687_v7 = vrot.slane %v10012_v54, %v10094_v29  ;;  %12506 = vst [vmem:[#allocation60_spill] sm:$0xff] %v10529_v52  ;;  %v10535_v53 = vld [vmem:[%s12328_s2 + $0x2c] sm:$0xf] }
 0x11d   : > { %12502 = vst [vmem:[#allocation56_spill] sm:$0xff] %v10479_v49  ;;  %v1016_v26 = vmul.bf16 %v8073_v32, %v10490_v3  ;;  %v432_v27 = vor.u32 %v12374_v37, %v429_v19  ;;  %12507 = vst [vmem:[#allocation61_spill] sm:$0xff] %v10535_v53  ;;  %v12380_v3 = vshll.u32 %v10226_v25, 16 }
 0x11e   : > { %v440_v51 = vor.u32 %v12373_v38, %v10494_v2  ;;  %v8075_v37 = vcombine.low %v687_v7, %v699_v47  ;;  %v10567_v47 = vld [vmem:[%s12328_s2 + $0x34] sm:$0xf] }
 0x11f   : > { %4526 = vperm.xlu1 %9315, %v9852_v21   ;;  %v12379_v21 = vshrl.u32 %v10226_v25, 16  ;;  %v10544_v38 = vsel %vm394_vm2, %v421_v46, %v432_v27  ;;  %v10560_v46 = vld [vmem:[%s12328_s2 + $0x64] sm:$0xf]  ;;  %12512 = vst [vmem:[#allocation65_spill] sm:$0xff] %v10567_v47  ;;  %v711_v27 = vrot.slane %v10018_v56, %v10094_v29  ;;  %v10594_v56 = vld [vmem:[%s12328_s2 + $0x6c] sm:$0xf] }
 0x120   : > { %5285 = vperm.xlu0 %9317, %v10501_v8   ;;  %v10504_v40 = vpop.permute.xlu1 %2148  ;;  %v10506_v24 = vpop.permute.xlu0 %3648  ;;  %12509 = vst [vmem:[#allocation63_spill] sm:$0xff] %v10544_v38  ;;  %v10550_v45 = vsel %vm394_vm2, %v429_v19, %v440_v51  ;;  %v12389_v51 = vshll.u32 %v10265_v20, 16 }
 0x121   : > { %12505 = vst [vmem:[#allocation59_spill] sm:$0xff] %v10504_v40  ;;  %v445_v43 = vrot.slane %v12379_v21, 7  ;;  %12510 = vst [vmem:[#allocation64_spill] sm:$0xff] %v10550_v45  ;;  %v1018_v21 = vmul.bf16 %v8075_v37, %v10550_v45  ;;  %v12515_v37 = vshrl.u32 %v10265_v20, 16  ;;  %v12518_v45 = vshrl.u32 %v10281_v22, 16 }
 0x123   : > { %8687 = vmatmul.mubr.msk.bf16.gmra.mrb[4].mxu1 %vm1549_vm0, %v1015_v30  ;;  %4548 = vperm.xlu1 %9315, %v10529_v52   ;;  %v8074_v30 = vcombine.low %v663_v13, %v675_v17  ;;  %v723_v13 = vrot.slane %v10016_v55, %v10094_v29  ;;  %v448_v7 = vor.u32 %v12380_v3, %v445_v43  ;;  %v461_v3 = vrot.slane %v12515_v37, 7 }
 0x124   : > { %5307 = vperm.xlu0 %9317, %v10535_v53   ;;  %8690 = vmatprep.mubr.msk.bf16.mxu1 %vm1549_vm0, %v1016_v26  ;;  %v10539_v54 = vpop.permute.xlu1 %2170  ;;  %v10541_v32 = vpop.permute.xlu0 %3670  ;;  %v10554_v26 = vrot.slane %v12511_v15, 7  ;;  %v12391_v37 = vshll.u32 %v10281_v22, 16 }
 0x125   : > { %12508 = vst [vmem:[#allocation62_spill] sm:$0xff] %v10539_v54  ;;  %v1017_v17 = vmul.bf16 %v8074_v30, %v10544_v38  ;;  %v747_v54 = vrot.slane %v10025_v58, %v10094_v29  ;;  %v12514_v30 = vshll.u32 %v10247_v18, 16  ;;  %v10602_v58 = vld [vmem:[%s12328_s2 + $0x3c] sm:$0xf]  ;;  %v10613_v38 = vrot.slane %v12518_v45, 7 }
 0x126   : > { %12516 = vst [vmem:[#allocation67_spill] sm:$0xff] %v10602_v58  ;;  %v10618_v40 = vsel %vm394_vm2, %v10494_v2, %v448_v7  ;;  %v10630_v45 = vld [vmem:[%s12328_s2 + $0x74] sm:$0xf]  ;;  %v771_v2 = vrot.slane %v10033_v61, %v10094_v29  ;;  %v12522_v7 = vld [vmem:[#allocation3_spill] sm:$0xff] }
 0x127   : > { %4570 = vperm.xlu1 %9315, %v10560_v46   ;;  %v456_v55 = vor.u32 %v12514_v30, %v10554_v26  ;;  %v8076_v30 = vcombine.low %v711_v27, %v723_v13  ;;  %12519 = vst [vmem:[#allocation69_spill] sm:$0xff] %v10618_v40 }
 0x128   : > { %5329 = vperm.xlu0 %9317, %v10567_v47   ;;  %v10570_v15 = vpop.permute.xlu1 %2192  ;;  %v10572_v19 = vpop.permute.xlu0 %3692  ;;  %v12524_v47 = vshrl.u32 %v10302_v1, 16 }
 0x129   : > { %12513 = vst [vmem:[#allocation66_spill] sm:$0xff] %v10570_v15  ;;  %v735_v15 = vrot.slane %v10027_v59, %v10094_v29  ;;  %v1019_v61 = vmul.bf16 %v8076_v30, %v10618_v40 }
 0x12a   : > { %v477_v30 = vrot.slane %v12524_v47, 7  ;;  %v10678_v47 = vld [vmem:[%s12328_s2 + $0x4c] sm:$0xf] }
 0x12b   : > { %8691 = vmatmul.mubr.msk.bf16.gmra.mrb[8].mxu1 %vm1549_vm0, %v1017_v17  ;;  %4592 = vperm.xlu1 %9315, %v10594_v56   ;;  %v8077_v49 = vcombine.low %v735_v15, %v747_v54  ;;  %v783_v15 = vrot.slane %v12522_v7, %v10094_v29  ;;  %12526 = vst [vmem:[#allocation3_spill] sm:$0xff] %v10678_v47 }
 0x12c   : > { %5351 = vperm.xlu0 %9317, %v10602_v58   ;;  %8694 = vmatprep.mubr.msk.bf16.mxu1 %vm1549_vm0, %v1018_v21  ;;  %v10606_v59 = vpop.permute.xlu1 %2214  ;;  %v10608_v17 = vpop.permute.xlu0 %3714  ;;  %v3558_v21 = vrot.slane %v10401_v14, %v10094_v29  ;;  %v759_v14 = vrot.slane %v10036_v62, %v10094_v29  ;;  %v464_v62 = vor.u32 %v12389_v51, %v461_v3  ;;  %v12525_v51 = vshrl.u32 %v10320_v23, 16 }
 0x12d   : > { %12517 = vst [vmem:[#allocation68_spill] sm:$0xff] %v10606_v59  ;;  %v10623_v59 = vsel %vm394_vm2, %v445_v43, %v456_v55  ;;  %v12521_v43 = vld [vmem:[#allocation2_spill] sm:$0xff] }
 0x12e   : > { %12520 = vst [vmem:[#allocation70_spill] sm:$0xff] %v10623_v59  ;;  %v795_v54 = vrot.slane %v12521_v43, %v10094_v29  ;;  %v10644_v55 = vld [vmem:[%s12328_s2 + $0x44] sm:$0xf]  ;;  %v472_v43 = vor.u32 %v12391_v37, %v10613_v38  ;;  %v1020_v7 = vmul.bf16 %v8077_v49, %v10623_v59  ;;  %v10665_v53 = vrot.slane %v12525_v51, 7 }
 0x12f   : > { %4614 = vperm.xlu1 %9315, %v10630_v45   ;;  %12523 = vst [vmem:[#allocation2_spill] sm:$0xff] %v10644_v55  ;;  %v3613_v37 = vrot.slane %v10452_v44, %v10094_v29  ;;  %v12531_v59 = vshll.u32 %v10302_v1, 16 }
 0x130   : > { %5373 = vperm.xlu0 %9317, %v10644_v55   ;;  %v10647_v27 = vpop.permute.xlu0 %3736  ;;  %v3900_v55 = vmul.bf16 %v3558_v21, %v10110_v57  ;;  %v8078_v57 = vcombine.low %v759_v14, %v771_v2  ;;  %v8079_v49 = vcombine.low %v783_v15, %v795_v54  ;;  %v12527_v21 = vld [vmem:[#allocation15_spill] sm:$0xff]  ;;  %v10690_v2 = vsel %vm394_vm2, %v461_v3, %v472_v43  ;;  %v12530_v54 = vld [vmem:[#allocation18_spill] sm:$0xff] }
 0x131   : > { %v3561_v13 = vpop.permute.xlu1 %3560  ;;  %12529 = vst [vmem:[#allocation71_spill] sm:$0xff] %v10690_v2  ;;  %v3903_v15 = vmul.bf16 %v3591_v63, %v12530_v54  ;;  %v12533_v3 = vmov 6  }
 0x132   : > { %v3569_v58 = vrot.slane %v3561_v13, %v10094_v29  ;;  %v1022_v63 = vmul.bf16 %v8079_v49, %v10690_v2  ;;  %v12536_v49 = vld [vmem:[#allocation4_spill] sm:$0xff] }
 0x133   : > { %8695 = vmatmul.mubr.msk.bf16.gmra.mrb[12].mxu1 %vm1549_vm0, %v1019_v61  ;;  %4636 = vperm.xlu1 %9315, %v10672_v39   ;;  %v10687_v61 = vsel %vm394_vm2, %v10554_v26, %v464_v62  ;;  %v12540_v2 = vld [vmem:[#allocation20_spill] sm:$0xff] }
 0x134   : > { %5395 = vperm.xlu0 %9317, %v10678_v47   ;;  %8698 = vmatprep.mubr.msk.bf16.mxu1 %vm1549_vm0, %v1020_v7  ;;  %v10682_v51 = vpop.permute.xlu0 %3758  ;;  %v3901_v13 = vmul.bf16 %v3569_v58, %v12527_v21  ;;  %12528 = vst [vmem:[#allocation15_spill] sm:$0xff] %v10687_v61  ;;  %v480_v47 = vor.u32 %v12531_v59, %v477_v30  ;;  %v12532_v58 = vshll.u32 %v10320_v23, 16  ;;  %v12534_v21 = vld [vmem:[#allocation17_spill] sm:$0xff]  ;;  %v10710_v59 = vld [vmem:[%s12328_s2 + $0x54] sm:$0xf] }
 0x135   : > { %v3572_v14 = vpop.permute.xlu1 %3571  ;;  %v1021_v43 = vmul.bf16 %v8078_v57, %v10687_v61  ;;  %12535 = vst [vmem:[#allocation18_spill] sm:$0xff] %v10710_v59  ;;  %v3905_v61 = vmul.bf16 %v3613_v37, %v12540_v2  ;;  %v12543_v37 = vshrl.u32 %v10336_v16, 16 }
 0x136   : > { %v3580_v40 = vrot.slane %v3572_v14, %v10094_v29  ;;  %v8215_v7 = vcombine.low %v3900_v55, %v3901_v13  ;;  %v488_v26 = vor.u32 %v12532_v58, %v10665_v53  ;;  %v10716_v55 = vld [vmem:[%s12328_s2 + $0x4] sm:$0xf]  ;;  %v819_v13 = vrot.slane %v12536_v49, %v10094_v29 }
 0x137   : > { %9318 = vset.pattern.permute.xlu1 %v12533_v3  ;;  %v12538_v58 = vld [vmem:[#allocation6_spill] sm:$0xff]  ;;  %v493_v2 = vrot.slane %v12543_v37, 7  ;;  %v12547_v37 = vld [vmem:[#allocation8_spill] sm:$0xff] }
 0x138   : > { %v3902_v14 = vmul.bf16 %v3580_v40, %v12534_v21  ;;  %5417 = vperm.xlu0 %9317, %v10710_v59   ;;  %5197 = vperm.xlu1 %9318, %v10716_v55   ;;  %v10719_v57 = vpop.permute.xlu0 %3780  ;;  %v12537_v40 = vld [vmem:[#allocation5_spill] sm:$0xff]  ;;  %v843_v3 = vrot.slane %v12538_v58, %v10094_v29  ;;  %v12539_v21 = vld [vmem:[#allocation7_spill] sm:$0xff]  ;;  %v3635_v59 = vrot.slane %v10481_v50, %v10094_v29  ;;  %v12552_v50 = vshll.u32 %v10336_v16, 16 }
 0x139   : > { %v807_v54 = vrot.slane %v12537_v40, %v10094_v29  ;;  %v831_v44 = vrot.slane %v12539_v21, %v10094_v29  ;;  %8802 = vmatprep.mubr.msk.bf16.mxu0 %vm1549_vm0, %v8215_v7  ;;  %v3594_v62 = vpop.permute.xlu1 %3593  ;;  %v10736_v40 = vsel %vm394_vm2, %v10613_v38, %v480_v47  ;;  %v9406_v58 = vld [vmem:[%s12327_s1 + $0xa8] sm:$0xff]   ;;  %v10743_v7 = vsel %vm394_vm2, %v477_v30, %v488_v26 }
 0x13a   : > { %v8216_v23 = vcombine.low %v3902_v14, %v3903_v15  ;;  %v3602_v49 = vrot.slane %v3594_v62, %v10094_v29  ;;  %12541 = vst [vmem:[#allocation17_spill] sm:$0xff] %v10736_v40  ;;  %12542 = vst [vmem:[#allocation4_spill] sm:$0xff] %v10743_v7  ;;  %v12544_v15 = vld [vmem:[#allocation19_spill] sm:$0xff]  ;;  %v12545_v14 = vshrl.u32 %v10362_v9, 16 }
 0x13b   : > { %8699 = vmatmul.mubr.msk.bf16.gmra.mrb[16].mxu1 %vm1549_vm0, %v1021_v43  ;;  %v8080_v47 = vcombine.low %v807_v54, %v819_v13  ;;  %v8081_v43 = vcombine.low %v831_v44, %v843_v3  ;;  %v10761_v26 = vld [vmem:[%s12328_s2 + $0x8] sm:$0xf]  ;;  %v3657_v44 = vrot.slane %v10506_v24, %v10094_v29 }
 0x13c   : > { %v3904_v62 = vmul.bf16 %v3602_v49, %v12544_v15  ;;  %5439 = vperm.xlu0 %9317, %v10529_v52   ;;  %8702 = vmatprep.mubr.msk.bf16.mxu1 %vm1549_vm0, %v1022_v63  ;;  %v10751_v38 = vpop.permute.xlu0 %3802  ;;  %v10755_v21 = vrot.slane %v12545_v14, 7  ;;  %v3907_v49 = vmul.bf16 %v3635_v59, %v10167_v60  ;;  %v12546_v3 = vld [vmem:[#allocation31_spill] sm:$0xff]  ;;  %v867_v15 = vrot.slane %v12547_v37, %v10094_v29  ;;  %v12548_v14 = vld [vmem:[#allocation9_spill] sm:$0xff]  ;;  %v9407_v60 = vld [vmem:[%s12327_s1 + $0xb0] sm:$0xff]  }
 0x13d   : > { %5208 = vperm.xlu1 %9318, %v10761_v26   ;;  %8803 = vmatmul.mubr.msk.bf16.vlgmr.msra.gmra.mrb[0].mxu0 %vm1549_vm0, %v8216_v23  ;;  %v3616_v63 = vpop.permute.xlu1 %3615  ;;  %v855_v30 = vrot.slane %v12548_v14, %v10094_v29  ;;  %v12549_v23 = vld [vmem:[#allocation10_spill] sm:$0xff]  ;;  %v1023_v37 = vmul.bf16 %v8080_v47, %v10736_v40  ;;  %v1024_v14 = vmul.bf16 %v8081_v43, %v10743_v7  ;;  %v12405_v7 = vshll.u32 %v10383_v11, 16 }
 0x13e   : > { %v8217_v13 = vcombine.low %v3904_v62, %v3905_v61  ;;  %v3624_v54 = vrot.slane %v3616_v63, %v10094_v29  ;;  %8835 = vmatpush3.bf16.msra.mxu0 %v12546_v3  ;;  %v891_v24 = vrot.slane %v12549_v23, %v10094_v29  ;;  %v12550_v61 = vld [vmem:[#allocation11_spill] sm:$0xff]  ;;  %v12551_v62 = vld [vmem:[#allocation21_spill] sm:$0xff]  ;;  %v496_v52 = vor.u32 %v12552_v50, %v493_v2 }
 0x13f   : > { %8836 = vmatprep.subr.bf16.mxu0 %v9406_v58  ;;  %v879_v59 = vrot.slane %v12550_v61, %v10094_v29  ;;  %v12553_v23 = vshll.u32 %v10362_v9, 16  ;;  %v3679_v47 = vrot.slane %v10541_v32, %v10094_v29  ;;  %v12557_v32 = vld [vmem:[#allocation22_spill] sm:$0xff] }
 0x140   : > { %v3906_v63 = vmul.bf16 %v3624_v54, %v12551_v62  ;;  %5461 = vperm.xlu0 %9317, %v10560_v46   ;;  %8806 = vmatprep.mubr.msk.bf16.mxu0 %vm1549_vm0, %v8217_v13  ;;  %v10785_v3 = vpop.permute.xlu0 %3824  ;;  %v10797_v54 = vld [vmem:[%s12328_s2 + $0x10] sm:$0xf]  ;;  %v12554_v13 = vld [vmem:[#allocation23_spill] sm:$0xff]  ;;  %v12555_v62 = vshrl.u32 %v10383_v11, 16 }
 0x141   : > { %v504_v1 = vor.u32 %v12553_v23, %v10755_v21  ;;  %5230 = vperm.xlu1 %9318, %v10797_v54   ;;  %v3638_v46 = vpop.permute.xlu1 %3637  ;;  %v3909_v61 = vmul.bf16 %v3657_v44, %v12554_v13  ;;  %v9408_v44 = vld [vmem:[%s12327_s1 + $0xb8] sm:$0xff]   ;;  %v8082_v13 = vcombine.low %v855_v30, %v867_v15  ;;  %v8083_v40 = vcombine.low %v879_v59, %v891_v24 }
 0x142   : > { %v8218_v43 = vcombine.low %v3906_v63, %v3907_v49  ;;  %v3646_v50 = vrot.slane %v3638_v46, %v10094_v29  ;;  %8837 = vmatpush3.bf16.msra.mxu0 %v9406_v58  ;;  %v10806_v23 = vrot.slane %v12555_v62, 7  ;;  %v10820_v63 = vsel %vm394_vm2, %v10665_v53, %v496_v52  ;;  %v10830_v30 = vld [vmem:[%s12328_s2 + $0x18] sm:$0xf] }
 0x143   : > { %8703 = vmatmul.mubr.msk.bf16.gmra.mrb[20].mxu1 %vm1549_vm0, %v1023_v37  ;;  %8838 = vmatprep.subr.bf16.mxu0 %v9407_v60  ;;  %12558 = vst [vmem:[#allocation6_spill] sm:$0xff] %v10820_v63  ;;  %v10823_v37 = vsel %vm394_vm2, %v493_v2, %v504_v1  ;;  %v3701_v46 = vrot.slane %v10572_v19, %v10094_v29  ;;  %v12560_v24 = vld [vmem:[#allocation25_spill] sm:$0xff]  ;;  %v10842_v19 = vld [vmem:[%s12327_s1 + $0xc0] sm:$0xff]  }
 0x144   : > { %12556 = vst [vmem:[#allocation5_spill] sm:$0xff] %v10806_v23  ;;  %v3908_v49 = vmul.bf16 %v3646_v50, %v12557_v32  ;;  %5483 = vperm.xlu0 %9317, %v10594_v56   ;;  %8706 = vmatprep.mubr.msk.bf16.mxu1 %vm1549_vm0, %v1024_v14  ;;  %v10816_v58 = vpop.permute.xlu0 %3846  ;;  %12559 = vst [vmem:[#allocation7_spill] sm:$0xff] %v10823_v37  ;;  %v3911_v59 = vmul.bf16 %v3679_v47, %v12560_v24  ;;  %v9420_v2 = vld [vmem:[%s12327_s1 + $0x40] sm:$0xff]   ;;  %v12561_v47 = vld [vmem:[#allocation24_spill] sm:$0xff] }
 0x145   : > { %5252 = vperm.xlu1 %9318, %v10830_v30   ;;  %8807 = vmatmul.mubr.msk.bf16.gmra.mrb[4].mxu0 %vm1549_vm0, %v8218_v43  ;;  %v3660_v15 = vpop.permute.xlu1 %3659  ;;  %v512_v1 = vor.u32 %v12405_v7, %v10806_v23  ;;  %v1025_v14 = vmul.bf16 %v8082_v13, %v10820_v63  ;;  %v12562_v50 = vld [vmem:[#allocation12_spill] sm:$0xff]  ;;  %v12563_v32 = vld [vmem:[#allocation13_spill] sm:$0xff]  ;;  %v3723_v13 = vrot.slane %v10608_v17, %v10094_v29  ;;  %v12408_v7 = vmov 7  }
 0x146   : > { %v8219_v52 = vcombine.low %v3908_v49, %v3909_v61  ;;  %v3668_v53 = vrot.slane %v3660_v15, %v10094_v29  ;;  %8839 = vmatpush3.bf16.msra.mxu0 %v9407_v60  ;;  %v1026_v61 = vmul.bf16 %v8083_v40, %v10823_v37  ;;  %v915_v62 = vrot.slane %v12562_v50, %v10094_v29  ;;  %v12564_v15 = vld [vmem:[#allocation27_spill] sm:$0xff]  ;;  %v10862_v40 = vld [vmem:[%s12328_s2 + $0x20] sm:$0xf] }
 0x147   : > { %8840 = vmatprep.subr.bf16.mxu0 %v9408_v44  ;;  %v903_v49 = vrot.slane %v12563_v32, %v10094_v29  ;;  %v3913_v24 = vmul.bf16 %v3701_v46, %v12564_v15  ;;  %8714 = vmatprep.subr.bf16.mxu1 %v9420_v2  ;;  %v9422_v46 = vld [vmem:[%s12327_s1 + $0x48] sm:$0xff]   ;;  %v12586_v37 = vmov 7  }
 0x148   : > { %v3910_v60 = vmul.bf16 %v3668_v53, %v12561_v47  ;;  %5505 = vperm.xlu0 %9317, %v10630_v45   ;;  %8810 = vmatprep.mubr.msk.bf16.mxu0 %vm1549_vm0, %v8219_v52  ;;  %v10852_v43 = vpop.permute.xlu0 %3868  ;;  %v12565_v47 = vld [vmem:[#allocation26_spill] sm:$0xff] }
 0x149   : > { %5274 = vperm.xlu1 %9318, %v10862_v40   ;;  %v3682_v45 = vpop.permute.xlu1 %3681  ;;  %8715 = vmatpush3.bf16.msra.mxu1 %v9420_v2  ;;  %v10885_v2 = vld [vmem:[%s12328_s2 + $0x28] sm:$0xf] }
 0x14a   : > { %v8220_v52 = vcombine.low %v3910_v60, %v3911_v59  ;;  %v3690_v53 = vrot.slane %v3682_v45, %v10094_v29  ;;  %8841 = vmatpush3.bf16.msra.mxu0 %v9408_v44  ;;  %v10880_v44 = vsel %vm394_vm2, %v10755_v21, %v512_v1  ;;  %v8084_v59 = vcombine.low %v903_v49, %v915_v62  ;;  %v12567_v60 = vld [vmem:[#allocation30_spill] sm:$0xff]  ;;  %v9424_v1 = vld [vmem:[%s12327_s1 + $0x50] sm:$0xff]   ;;  %v12568_v62 = vld [vmem:[#allocation29_spill] sm:$0xff] }
 0x14b   : > { %8707 = vmatmul.mubr.msk.bf16.gmra.mrb[24].mxu1 %vm1549_vm0, %v1025_v14  ;;  %8874 = vmatprep.subr.bf16.mxu0 %v10842_v19  ;;  %12566 = vst [vmem:[#allocation20_spill] sm:$0xff] %v10880_v44  ;;  %v3915_v32 = vmul.bf16 %v3723_v13, %v12567_v60  ;;  %v12569_v45 = vmov 2  }
 0x14c   : > { %v3912_v50 = vmul.bf16 %v3690_v53, %v12565_v47  ;;  %5527 = vperm.xlu0 %9317, %v10672_v39   ;;  %8710 = vmatprep.mubr.msk.bf16.mxu1 %vm1549_vm0, %v1026_v61  ;;  %v10876_v17 = vpop.permute.xlu0 %3890  ;;  %v3745_v61 = vrot.slane %v10647_v27, %v10094_v29  ;;  %v1027_v13 = vmul.bf16 %v8084_v59, %v10880_v44 }
 0x14d   : > { %5296 = vperm.xlu1 %9318, %v10885_v2   ;;  %8811 = vmatmul.mubr.msk.bf16.gmra.mrb[8].mxu0 %vm1549_vm0, %v8220_v52  ;;  %v3704_v14 = vpop.permute.xlu1 %3703  ;;  %v3767_v27 = vrot.slane %v10682_v51, %v10094_v29  ;;  %v9426_v51 = vld [vmem:[%s12327_s1 + $0x58] sm:$0xff]  }
 0x14e   : > { %v8221_v15 = vcombine.low %v3912_v50, %v3913_v24  ;;  %v3712_v21 = vrot.slane %v3704_v14, %v10094_v29  ;;  %8716 = vmatprep.subr.bf16.mxu1 %v9422_v46  ;;  %v10905_v24 = vld [vmem:[%s12328_s2 + $0x30] sm:$0xf]  ;;  %v12571_v14 = vld [vmem:[#allocation33_spill] sm:$0xff] }
 0x14f   : > { %8717 = vmatpush3.bf16.msra.mxu1 %v9422_v46  ;;  %v12570_v46 = vld [vmem:[#allocation34_spill] sm:$0xff] }
 0x150   : > { %v3914_v49 = vmul.bf16 %v3712_v21, %v12568_v62  ;;  %9319 = vset.pattern.permute.xlu0 %v12569_v45  ;;  %8814 = vmatprep.mubr.msk.bf16.mxu0 %vm1549_vm0, %v8221_v15  ;;  %v3917_v47 = vmul.bf16 %v3745_v61, %v12570_v46  ;;  %v12572_v15 = vld [vmem:[#allocation37_spill] sm:$0xff]  ;;  %v10937_v46 = vld [vmem:[%s12328_s2 + $0x40] sm:$0xf] }
 0x151   : > { %5318 = vperm.xlu1 %9318, %v10905_v24   ;;  %2082 = vperm.xlu0 %9319, %v10716_v55   ;;  %v3726_v52 = vpop.permute.xlu1 %3725  ;;  %v10909_v53 = vpop.permute.xlu0 %4306  ;;  %v3919_v21 = vmul.bf16 %v3767_v27, %v12572_v15  ;;  %v10922_v62 = vld [vmem:[%s12328_s2 + $0x38] sm:$0xf]  ;;  %v12573_v27 = vld [vmem:[#allocation36_spill] sm:$0xff]  ;;  %v12575_v15 = vld [vmem:[#allocation39_spill] sm:$0xff] }
 0x152   : > { %v8222_v50 = vcombine.low %v3914_v49, %v3915_v32  ;;  %v3734_v59 = vrot.slane %v3726_v52, %v10094_v29  ;;  %8718 = vmatprep.subr.bf16.mxu1 %v9424_v1  ;;  %v3789_v49 = vrot.slane %v10719_v57, %v10094_v29 }
 0x153   : > { %8711 = vmatmul.mubr.msk.bf16.gmra.mrb[28].mxu1 %vm1549_vm0, %v1027_v13 }
 0x154   : > { %v3916_v60 = vmul.bf16 %v3734_v59, %v12571_v14  ;;  %8719 = vmatpush3.bf16.msra.mxu1 %v9424_v1  ;;  %v3811_v14 = vrot.slane %v10751_v38, %v10094_v29  ;;  %v3833_v38 = vrot.slane %v10785_v3, %v10094_v29 }
 0x155   : > { %5340 = vperm.xlu1 %9318, %v10922_v62   ;;  %2115 = vperm.xlu0 %9319, %v10797_v54   ;;  %v3748_v32 = vpop.permute.xlu1 %3747  ;;  %v10926_v61 = vpop.permute.xlu0 %4339 }
 0x156   : > { %v8223_v13 = vcombine.low %v3916_v60, %v3917_v47  ;;  %8815 = vmatmul.mubr.msk.bf16.gmra.mrb[12].mxu0 %vm1549_vm0, %v8222_v50  ;;  %v3756_v1 = vrot.slane %v3748_v32, %v10094_v29  ;;  %8720 = vmatprep.subr.bf16.mxu1 %v9426_v51  ;;  %v12574_v50 = vld [vmem:[#allocation40_spill] sm:$0xff]  ;;  %v4348_v44 = vrot.slane %v10926_v61, %v10094_v29 }
 0x157   : > { %v3921_v59 = vmul.bf16 %v3789_v49, %v12574_v50  ;;  %v3923_v49 = vmul.bf16 %v3811_v14, %v10312_v0  ;;  %v3855_v14 = vrot.slane %v10816_v58, %v10094_v29  ;;  %v3877_v58 = vrot.slane %v10852_v43, %v10094_v29 }
 0x158   : > { %v3918_v52 = vmul.bf16 %v3756_v1, %v12573_v27  ;;  %8818 = vmatprep.mubr.msk.bf16.mxu0 %vm1549_vm0, %v8223_v13  ;;  %8721 = vmatpush3.bf16.msra.mxu1 %v9426_v51  ;;  %v10951_v13 = vld [vmem:[%s12328_s2 + $0x48] sm:$0xf] }
 0x159   : > { %5362 = vperm.xlu1 %9318, %v10937_v46   ;;  %2137 = vperm.xlu0 %9319, %v10830_v30   ;;  %v3770_v57 = vpop.permute.xlu1 %3769  ;;  %v10941_v47 = vpop.permute.xlu0 %4361 }
 0x15a   : > { %v8224_v60 = vcombine.low %v3918_v52, %v3919_v21  ;;  %v3778_v51 = vrot.slane %v3770_v57, %v10094_v29  ;;  %v12576_v57 = vld [vmem:[#allocation42_spill] sm:$0xff] }
 0x15c   : > { %v3920_v32 = vmul.bf16 %v3778_v51, %v12575_v15  ;;  %v10967_v51 = vld [vmem:[%s12328_s2 + $0x50] sm:$0xf] }
 0x15d   : > { %5384 = vperm.xlu1 %9318, %v10951_v13   ;;  %2159 = vperm.xlu0 %9319, %v10862_v40   ;;  %v3792_v1 = vpop.permute.xlu1 %3791  ;;  %v10955_v27 = vpop.permute.xlu0 %4383 }
 0x15e   : > { %v8225_v21 = vcombine.low %v3920_v32, %v3921_v59  ;;  %8819 = vmatmul.mubr.msk.bf16.gmra.mrb[16].mxu0 %vm1549_vm0, %v8224_v60  ;;  %v3800_v52 = vrot.slane %v3792_v1, %v10094_v29  ;;  %v3925_v59 = vmul.bf16 %v3833_v38, %v10327_v5  ;;  %v12577_v32 = vld [vmem:[#allocation44_spill] sm:$0xff]  ;;  %v3927_v5 = vmul.bf16 %v3855_v14, %v10348_v42 }
 0x160   : > { %v3922_v50 = vmul.bf16 %v3800_v52, %v12576_v57  ;;  %8822 = vmatprep.mubr.msk.bf16.mxu0 %vm1549_vm0, %v8225_v21  ;;  %v10981_v21 = vld [vmem:[%s12328_s2 + $0x58] sm:$0xf] }
 0x161   : > { %5406 = vperm.xlu1 %9318, %v10967_v51   ;;  %2181 = vperm.xlu0 %9319, %v10885_v2   ;;  %v3814_v0 = vpop.permute.xlu1 %3813  ;;  %v10971_v3 = vpop.permute.xlu0 %4405 }
 0x162   : > { %v8226_v60 = vcombine.low %v3922_v50, %v3923_v49  ;;  %v3822_v15 = vrot.slane %v3814_v0, %v10094_v29  ;;  %v10997_v0 = vld [vmem:[%s12328_s2 + $0x60] sm:$0xf] }
 0x164   : > { %v3924_v1 = vmul.bf16 %v3822_v15, %v12577_v32  ;;  %v11011_v32 = vld [vmem:[%s12328_s2 + $0x68] sm:$0xf] }
 0x165   : > { %5428 = vperm.xlu1 %9318, %v10981_v21   ;;  %2203 = vperm.xlu0 %9319, %v10905_v24   ;;  %v3836_v52 = vpop.permute.xlu1 %3835  ;;  %v10985_v57 = vpop.permute.xlu0 %4427 }
 0x166   : > { %v8227_v49 = vcombine.low %v3924_v1, %v3925_v59  ;;  %8823 = vmatmul.mubr.msk.bf16.gmra.mrb[20].mxu0 %vm1549_vm0, %v8226_v60  ;;  %v3844_v38 = vrot.slane %v3836_v52, %v10094_v29  ;;  %v3929_v59 = vmul.bf16 %v3877_v58, %v10293_v36  ;;  %v12578_v52 = vshll.u32 %v10120_v41, 16 }
 0x168   : > { %v3926_v50 = vmul.bf16 %v3844_v38, %v10345_v4  ;;  %8826 = vmatprep.mubr.msk.bf16.mxu0 %vm1549_vm0, %v8227_v49  ;;  %v3899_v4 = vrot.slane %v10876_v17, %v10094_v29  ;;  %v11019_v17 = vrot.slane %v12578_v52, 1  ;;  %v9609_v38 = vld [vmem:[%s10088_s11 + $0x78] sm:$0xf] }
 0x169   : > { %5450 = vperm.xlu1 %9318, %v10997_v0   ;;  %2225 = vperm.xlu0 %9319, %v10922_v62   ;;  %v3858_v42 = vpop.permute.xlu1 %3857  ;;  %v11001_v43 = vpop.permute.xlu0 %4449 }
 0x16a   : > { %v8228_v14 = vcombine.low %v3926_v50, %v3927_v5  ;;  %v3866_v60 = vrot.slane %v3858_v42, %v10094_v29  ;;  %v9608_v5 = vld [vmem:[%s10088_s11 + $0x7c] sm:$0xf]  ;;  %v4315_v42 = vrot.slane %v10909_v53, %v10094_v29 }
 0x16b   : > { %v3931_v58 = vmul.bf16 %v9608_v5, %v3899_v4  ;;  %v12579_v4 = vshrl.u32 %v10120_v41, 16 }
 0x16c   : > { %v3928_v15 = vmul.bf16 %v3866_v60, %v10367_v31  ;;  %v11031_v60 = vld [vmem:[%s12328_s2 + $0x70] sm:$0xf] }
 0x16d   : > { %5472 = vperm.xlu1 %9318, %v11011_v32   ;;  %2269 = vperm.xlu0 %9319, %v10951_v13   ;;  %v3880_v1 = vpop.permute.xlu1 %3879  ;;  %v11015_v36 = vpop.permute.xlu0 %4471 }
 0x16e   : > { %v8229_v49 = vcombine.low %v3928_v15, %v3929_v59  ;;  %8827 = vmatmul.mubr.msk.bf16.gmra.mrb[24].mxu0 %vm1549_vm0, %v8228_v14  ;;  %v3888_v31 = vrot.slane %v3880_v1, %v10094_v29  ;;  %v11040_v14 = vor.u32 %v11019_v17, %v12579_v4  ;;  %v12581_v15 = vshll.u32 %v10139_v6, 16 }
 0x170   : > { %v3930_v50 = vmul.bf16 %v9609_v38, %v3888_v31  ;;  %8830 = vmatprep.mubr.msk.bf16.mxu0 %vm1549_vm0, %v8229_v49  ;;  %12580 = vst [vmem:[#allocation19_spill] sm:$0xff] %v11040_v14  ;;  %v2004_v1 = vrot.slane %v12581_v15, 1  ;;  %v9611_v31 = vld [vmem:[%s12328_s2 + $0x78] sm:$0xf] }
 0x171   : > { %5494 = vperm.xlu1 %9318, %v11031_v60   ;;  %2313 = vperm.xlu0 %9319, %v10981_v21   ;;  %v11035_v59 = vpop.permute.xlu0 %4493 }
 0x172   : > { %v8230_v53 = vcombine.low %v3930_v50, %v3931_v58  ;;  %v4296_v52 = vpop.permute.xlu1 %4295  ;;  %v11053_v4 = vsel %vm2001_vm5, %v11040_v14, %v2004_v1 }
 0x173   : > { %v4304_v5 = vrot.slane %v4296_v52, %v10094_v29  ;;  %v12583_v52 = vshll.u32 %v10159_v35, 16 }
 0x175   : > { %v8252_v49 = vcombine.low %v4304_v5, %v4315_v42  ;;  %5516 = vperm.xlu1 %9318, %v9611_v31   ;;  %2357 = vperm.xlu0 %9319, %v11011_v32   ;;  %v11049_v38 = vpop.permute.xlu0 %4515  ;;  %v12582_v42 = vshrl.u32 %v10139_v6, 16  ;;  %v2007_v5 = vrot.slane %v12583_v52, 1 }
 0x176   : > { %8831 = vmatmul.mubr.msk.bf16.gmra.mrb[28].mxu0 %vm1549_vm0, %v8230_v53  ;;  %v4318_v58 = vpop.permute.xlu1 %4317 }
 0x177   : > { %v4742_v50 = vmul.bf16 %v8252_v49, %v11053_v4  ;;  %v2006_v15 = vor.u32 %v2004_v1, %v12582_v42  ;;  %v4326_v14 = vrot.slane %v4318_v58, %v10094_v29  ;;  %v12584_v42 = vshrl.u32 %v10159_v35, 16 }
 0x179   : > { %9320 = vset.pattern.permute.xlu1 %v12408_v7  ;;  %2401 = vperm.xlu0 %9319, %v9611_v31   ;;  %v11062_v23 = vpop.permute.xlu0 %4537  ;;  %v11069_v1 = vsel %vm2001_vm5, %v2006_v15, %v2007_v5  ;;  %v2009_v52 = vor.u32 %v2007_v5, %v12584_v42  ;;  %v12585_v7 = vshll.u32 %v10178_v34, 16 }
 0x17a   : > { %5923 = vperm.xlu1 %9320, %v10394_v28   ;;  %8842 = vmatprep.mubr.msk.bf16.mxu0 %vm1549_vm0, %v4742_v50  ;;  %v4329_v53 = vpop.permute.xlu1 %4328 }
 0x17b   : > { %v4337_v49 = vrot.slane %v4329_v53, %v10094_v29  ;;  %v2010_v31 = vrot.slane %v12585_v7, 1  ;;  %v12587_v7 = vshrl.u32 %v10178_v34, 16 }
 0x17d   : > { %v8253_v28 = vcombine.low %v4326_v14, %v4337_v49  ;;  %9337 = vset.pattern.permute.xlu0 %v12586_v37  ;;  %v11078_v50 = vpop.permute.xlu0 %4559  ;;  %v11085_v53 = vsel %vm2001_vm5, %v2009_v52, %v2010_v31  ;;  %v2012_v61 = vor.u32 %v2010_v31, %v12587_v7  ;;  %v12588_v14 = vshll.u32 %v10194_v12, 16  ;;  %v12589_v52 = vld [vmem:[#allocation51_spill] sm:$0xff] }
 0x17e   : > { %5945 = vperm.xlu1 %9320, %v10761_v26   ;;  %5934 = vperm.xlu0 %9337, %v10716_v55   ;;  %v4351_v58 = vpop.permute.xlu1 %4350  ;;  %v9411_v26 = vld [vmem:[%s12327_s1 + $0xc8] sm:$0xff]   ;;  %v4370_v55 = vrot.slane %v10941_v47, %v10094_v29 }
 0x17f   : > { %v4743_v15 = vmul.bf16 %v8253_v28, %v11069_v1  ;;  %v4359_v5 = vrot.slane %v4351_v58, %v10094_v29  ;;  %v2013_v49 = vrot.slane %v12588_v14, 1 }
 0x181   : > { %v8254_v42 = vcombine.low %v4348_v44, %v4359_v5  ;;  %8843 = vmatmul.mubr.msk.bf16.vlgmr.msra.gmra.mrb[0].mxu0 %vm1549_vm0, %v4743_v15  ;;  %v11097_v28 = vpop.permute.xlu0 %4581  ;;  %v11105_v14 = vsel %vm2001_vm5, %v2012_v61, %v2013_v49  ;;  %v12590_v44 = vshrl.u32 %v10194_v12, 16  ;;  %v12591_v15 = vshll.u32 %v10210_v33, 16 }
 0x182   : > { %5956 = vperm.xlu1 %9320, %v12589_v52   ;;  %v4373_v58 = vpop.permute.xlu1 %4372  ;;  %5967 = vperm.xlu0 %9337, %v10797_v54   ;;  %v9414_v52 = vld [vmem:[%s12327_s1 + $0xd0] sm:$0xff]  }
 0x183   : > { %v4744_v31 = vmul.bf16 %v8254_v42, %v11085_v53  ;;  %v4381_v7 = vrot.slane %v4373_v58, %v10094_v29  ;;  %8875 = vmatpush3.bf16.msra.mxu0 %v10842_v19  ;;  %v2015_v47 = vor.u32 %v2013_v49, %v12590_v44  ;;  %v2016_v5 = vrot.slane %v12591_v15, 1 }
 0x184   : > { %8876 = vmatprep.subr.bf16.mxu0 %v9411_v26  ;;  %v4392_v42 = vrot.slane %v10955_v27, %v10094_v29  ;;  %v12592_v27 = vshrl.u32 %v10210_v33, 16 }
 0x185   : > { %v8255_v58 = vcombine.low %v4370_v55, %v4381_v7  ;;  %8846 = vmatprep.mubr.msk.bf16.mxu0 %vm1549_vm0, %v4744_v31  ;;  %v11117_v19 = vpop.permute.xlu0 %4603  ;;  %v11124_v15 = vsel %vm2001_vm5, %v2015_v47, %v2016_v5  ;;  %v12593_v31 = vshll.u32 %v10226_v25, 16 }
 0x186   : > { %5978 = vperm.xlu1 %9320, %v10447_v10   ;;  %v4395_v61 = vpop.permute.xlu1 %4394  ;;  %5989 = vperm.xlu0 %9337, %v10830_v30   ;;  %v2018_v55 = vor.u32 %v2016_v5, %v12592_v27  ;;  %v9416_v10 = vld [vmem:[%s12327_s1 + $0xd8] sm:$0xff]   ;;  %v4414_v30 = vrot.slane %v10971_v3, %v10094_v29  ;;  %v12594_v3 = vshrl.u32 %v10226_v25, 16 }
 0x187   : > { %v4745_v49 = vmul.bf16 %v8255_v58, %v11105_v14  ;;  %v4403_v44 = vrot.slane %v4395_v61, %v10094_v29  ;;  %8877 = vmatpush3.bf16.msra.mxu0 %v9411_v26  ;;  %v2019_v7 = vrot.slane %v12593_v31, 1  ;;  %v4436_v31 = vrot.slane %v10985_v57, %v10094_v29  ;;  %v9618_v25 = vld [vmem:[%s10088_s11 + $0x18] sm:$0xf] }
 0x188   : > { %8878 = vmatprep.subr.bf16.mxu0 %v9414_v52  ;;  %v12597_v57 = vshrl.u32 %v10247_v18, 16 }
 0x189   : > { %v8256_v58 = vcombine.low %v4392_v42, %v4403_v44  ;;  %8847 = vmatmul.mubr.msk.bf16.gmra.mrb[4].mxu0 %vm1549_vm0, %v4745_v49  ;;  %v11136_v26 = vpop.permute.xlu0 %4625  ;;  %v11143_v27 = vsel %vm2001_vm5, %v2018_v55, %v2019_v7  ;;  %v2021_v42 = vor.u32 %v2019_v7, %v12594_v3  ;;  %v12595_v49 = vshll.u32 %v10247_v18, 16 }
 0x18a   : > { %6000 = vperm.xlu1 %9320, %v10475_v48   ;;  %v4417_v47 = vpop.permute.xlu1 %4416  ;;  %6011 = vperm.xlu0 %9337, %v10862_v40   ;;  %v11152_v48 = vld [vmem:[%s12327_s1 + $0xe0] sm:$0xff]  }
 0x18b   : > { %v4746_v5 = vmul.bf16 %v8256_v58, %v11124_v15  ;;  %v4425_v61 = vrot.slane %v4417_v47, %v10094_v29  ;;  %8879 = vmatpush3.bf16.msra.mxu0 %v9414_v52  ;;  %v2022_v44 = vrot.slane %v12595_v49, 1  ;;  %v12599_v49 = vld [vmem:[#allocation61_spill] sm:$0xff] }
 0x18c   : > { %8880 = vmatprep.subr.bf16.mxu0 %v9416_v10 }
 0x18d   : > { %v8257_v58 = vcombine.low %v4414_v30, %v4425_v61  ;;  %8850 = vmatprep.mubr.msk.bf16.mxu0 %vm1549_vm0, %v4746_v5  ;;  %v11164_v3 = vsel %vm2001_vm5, %v2021_v42, %v2022_v44  ;;  %v2024_v30 = vor.u32 %v2022_v44, %v12597_v57  ;;  %v12598_v5 = vshll.u32 %v10265_v20, 16 }
 0x18e   : > { %6022 = vperm.xlu1 %9320, %v10501_v8   ;;  %v4439_v52 = vpop.permute.xlu1 %4438  ;;  %v11158_v55 = vpop.permute.xlu0 %5186  ;;  %6033 = vperm.xlu0 %9337, %v10885_v2   ;;  %12596 = vst [vmem:[#allocation31_spill] sm:$0xff] %v11164_v3  ;;  %v4458_v8 = vrot.slane %v11001_v43, %v10094_v29  ;;  %v12601_v57 = vshrl.u32 %v10265_v20, 16 }
 0x18f   : > { %v4747_v7 = vmul.bf16 %v8257_v58, %v11143_v27  ;;  %v4447_v47 = vrot.slane %v4439_v52, %v10094_v29  ;;  %8881 = vmatpush3.bf16.msra.mxu0 %v9416_v10  ;;  %v2025_v61 = vrot.slane %v12598_v5, 1 }
 0x190   : > { %8914 = vmatprep.subr.bf16.mxu0 %v11152_v48 }
 0x191   : > { %v8258_v2 = vcombine.low %v4436_v31, %v4447_v47  ;;  %8851 = vmatmul.mubr.msk.bf16.gmra.mrb[8].mxu0 %vm1549_vm0, %v4747_v7  ;;  %v11181_v52 = vsel %vm2001_vm5, %v2024_v30, %v2025_v61  ;;  %v2027_v43 = vor.u32 %v2025_v61, %v12601_v57  ;;  %v12602_v31 = vshll.u32 %v10281_v22, 16 }
 0x192   : > { %6044 = vperm.xlu1 %9320, %v12599_v49   ;;  %v4461_v10 = vpop.permute.xlu1 %4460  ;;  %6055 = vperm.xlu0 %9337, %v10905_v24   ;;  %12600 = vst [vmem:[#allocation8_spill] sm:$0xff] %v11181_v52  ;;  %v4480_v47 = vrot.slane %v11015_v36, %v10094_v29  ;;  %v12606_v57 = vshrl.u32 %v10281_v22, 16  ;;  %v4524_v22 = vrot.slane %v11049_v38, %v10094_v29 }
 0x193   : > { %v4748_v42 = vmul.bf16 %v8258_v2, %v11164_v3  ;;  %v4469_v44 = vrot.slane %v4461_v10, %v10094_v29  ;;  %v11178_v58 = vpop.permute.xlu0 %5219  ;;  %v2028_v7 = vrot.slane %v12602_v31, 1  ;;  %v12603_v2 = vld [vmem:[#allocation65_spill] sm:$0xff]  ;;  %v12604_v10 = vld [vmem:[#allocation67_spill] sm:$0xff]  ;;  %v4502_v31 = vrot.slane %v11035_v59, %v10094_v29 }
 0x195   : > { %v8259_v5 = vcombine.low %v4458_v8, %v4469_v44  ;;  %8854 = vmatprep.mubr.msk.bf16.mxu0 %vm1549_vm0, %v4748_v42  ;;  %v11197_v61 = vsel %vm2001_vm5, %v2027_v43, %v2028_v7  ;;  %v2030_v36 = vor.u32 %v2028_v7, %v12606_v57  ;;  %v12607_v8 = vld [vmem:[#allocation41_spill] sm:$0xff] }
 0x196   : > { %6066 = vperm.xlu1 %9320, %v12603_v2   ;;  %v4483_v49 = vpop.permute.xlu1 %4482  ;;  %6088 = vperm.xlu0 %9337, %v12604_v10   ;;  %12605 = vst [vmem:[#allocation9_spill] sm:$0xff] %v11197_v61  ;;  %v12608_v44 = vshll.u32 %v12607_v8, 16 }
 0x197   : > { %v4749_v30 = vmul.bf16 %v8259_v5, %v11181_v52  ;;  %v4491_v63 = vrot.slane %v4483_v49, %v10094_v29  ;;  %v11194_v41 = vpop.permute.xlu0 %5241 }
 0x198   : > { %v2031_v42 = vrot.slane %v12608_v44, 1 }
 0x199   : > { %v8260_v2 = vcombine.low %v4480_v47, %v4491_v63  ;;  %8855 = vmatmul.mubr.msk.bf16.gmra.mrb[12].mxu0 %vm1549_vm0, %v4749_v30  ;;  %v12610_v63 = vshrl.u32 %v12607_v8, 16  ;;  %v12611_v47 = vld [vmem:[#allocation43_spill] sm:$0xff] }
 0x19a   : > { %9321 = vset.pattern.permute.xlu1 %v12569_v45  ;;  %v4505_v5 = vpop.permute.xlu1 %4504  ;;  %6099 = vperm.xlu0 %9337, %v10937_v46   ;;  %v11214_v57 = vsel %vm2001_vm5, %v2030_v36, %v2031_v42  ;;  %v12612_v30 = vshll.u32 %v12611_v47, 16  ;;  %v12615_v38 = vshrl.u32 %v12611_v47, 16  ;;  %v9612_v47 = vld [vmem:[%s10088_s11] sm:$0xf] }
 0x19b   : > { %v4750_v43 = vmul.bf16 %v8260_v2, %v11197_v61  ;;  %2236 = vperm.xlu1 %9321, %v12604_v10   ;;  %v4513_v7 = vrot.slane %v4505_v5, %v10094_v29  ;;  %v11211_v49 = vpop.permute.xlu0 %5263  ;;  %12609 = vst [vmem:[#allocation10_spill] sm:$0xff] %v11214_v57  ;;  %v2033_v59 = vor.u32 %v2031_v42, %v12610_v63  ;;  %v12613_v2 = vld [vmem:[#allocation3_spill] sm:$0xff] }
 0x19c   : > { %v2034_v44 = vrot.slane %v12612_v30, 1  ;;  %v9614_v61 = vld [vmem:[%s10088_s11 + $0x8] sm:$0xf] }
 0x19d   : > { %v8261_v52 = vcombine.low %v4502_v31, %v4513_v7  ;;  %8858 = vmatprep.mubr.msk.bf16.mxu0 %vm1549_vm0, %v4750_v43  ;;  %v12616_v43 = vshll.u32 %v10336_v16, 16 }
 0x19e   : > { %v4527_v10 = vpop.permute.xlu1 %4526  ;;  %6132 = vperm.xlu0 %9337, %v12613_v2   ;;  %v11230_v42 = vsel %vm2001_vm5, %v2033_v59, %v2034_v44  ;;  %v2036_v31 = vor.u32 %v2034_v44, %v12615_v38  ;;  %v4568_v38 = vrot.slane %v11078_v50, %v10094_v29 }
 0x19f   : > { %v4751_v5 = vmul.bf16 %v8261_v52, %v11214_v57  ;;  %9322 = vset.pattern.permute.xlu1 %v12586_v37  ;;  %v4535_v36 = vrot.slane %v4527_v10, %v10094_v29  ;;  %v11227_v8 = vpop.permute.xlu0 %5285  ;;  %12614 = vst [vmem:[#allocation11_spill] sm:$0xff] %v11230_v42  ;;  %v2037_v7 = vrot.slane %v12616_v43, 1  ;;  %v4546_v52 = vrot.slane %v11062_v23, %v10094_v29  ;;  %v9613_v57 = vld [vmem:[%s10088_s11 + $0x4] sm:$0xf] }
 0x1a0   : > { %6077 = vperm.xlu1 %9322, %v10922_v62   ;;  %v12618_v23 = vshrl.u32 %v10336_v16, 16  ;;  %v12622_v16 = vld [vmem:[#allocation14_spill] sm:$0xff]  ;;  %v8288_v20 = vcombine.low %v9613_v57, %v9614_v61 }
 0x1a1   : > { %v8262_v63 = vcombine.low %v4524_v22, %v4535_v36  ;;  %8859 = vmatmul.mubr.msk.bf16.gmra.mrb[16].mxu0 %vm1549_vm0, %v4751_v5  ;;  %v11246_v44 = vsel %vm2001_vm5, %v2036_v31, %v2037_v7  ;;  %v12619_v5 = vshll.u32 %v10362_v9, 16  ;;  %v12626_v61 = vshll.u32 %v12622_v16, 16 }
 0x1a2   : > { %v4549_v30 = vpop.permute.xlu1 %4548  ;;  %6143 = vperm.xlu0 %9337, %v10967_v51   ;;  %12617 = vst [vmem:[#allocation21_spill] sm:$0xff] %v11246_v44  ;;  %v2039_v22 = vor.u32 %v2037_v7, %v12618_v23  ;;  %v12621_v7 = vshll.u32 %v10383_v11, 16 }
 0x1a3   : > { %v4752_v59 = vmul.bf16 %v8262_v63, %v11230_v42  ;;  %v4557_v10 = vrot.slane %v4549_v30, %v10094_v29  ;;  %v11243_v62 = vpop.permute.xlu0 %5307  ;;  %v2040_v36 = vrot.slane %v12619_v5, 1  ;;  %v12620_v63 = vshrl.u32 %v10362_v9, 16  ;;  %v12623_v42 = vld [vmem:[#allocation60_spill] sm:$0xff]  ;;  %v9615_v9 = vld [vmem:[%s10088_s11 + $0xc] sm:$0xf] }
 0x1a4   : > { %9323 = vset.pattern.permute.xlu1 %v12569_v45  ;;  %v2043_v23 = vrot.slane %v12621_v7, 1  ;;  %v9616_v7 = vld [vmem:[%s10088_s11 + $0x10] sm:$0xf]  ;;  %v1997_v57 = vrot.slane %v12626_v61, 1  ;;  %v9617_v61 = vld [vmem:[%s10088_s11 + $0x14] sm:$0xf] }
 0x1a5   : > { %v8263_v43 = vcombine.low %v4546_v52, %v4557_v10  ;;  %2247 = vperm.xlu1 %9323, %v10937_v46   ;;  %8862 = vmatprep.mubr.msk.bf16.mxu0 %vm1549_vm0, %v4752_v59  ;;  %v2042_v30 = vor.u32 %v2040_v36, %v12620_v63  ;;  %v8251_v59 = vcombine.low %v9612_v47, %v9612_v47 }
 0x1a6   : > { %v4571_v31 = vpop.permute.xlu1 %4570  ;;  %6176 = vperm.xlu0 %9337, %v12623_v42   ;;  %v11271_v63 = vsel %vm2001_vm5, %v2039_v22, %v2040_v36  ;;  %v8289_v3 = vcombine.low %v9615_v9, %v9616_v7  ;;  %v4590_v42 = vrot.slane %v11097_v28, %v10094_v29  ;;  %v12627_v22 = vshrl.u32 %v10383_v11, 16 }
 0x1a7   : > { %v4753_v50 = vmul.bf16 %v8263_v43, %v11246_v44  ;;  %v4579_v52 = vrot.slane %v4571_v31, %v10094_v29  ;;  %v11265_v10 = vpop.permute.xlu0 %5329  ;;  %v12624_v43 = vld [vmem:[#allocation2_spill] sm:$0xff]  ;;  %v11280_v31 = vsel %vm2001_vm5, %v2042_v30, %v2043_v23  ;;  %v12435_v28 = vshrl.u32 %v12622_v16, 16 }
 0x1a8   : > { %12625 = vst [vmem:[#allocation23_spill] sm:$0xff] %v11280_v31  ;;  %v11286_v9 = vor.u32 %v2043_v23, %v12627_v22  ;;  %v5046_v30 = vshrl.u32 %v8288_v20, 16  ;;  %v5049_v7 = vshll.u32 %v8288_v20, 16  ;;  %v5054_v44 = vshrl.u32 %v8289_v3, 16 }
 0x1a9   : > { %v8264_v5 = vcombine.low %v4568_v38, %v4579_v52  ;;  %2258 = vperm.xlu1 %9323, %v12624_v43   ;;  %8863 = vmatmul.mubr.msk.bf16.gmra.mrb[20].mxu0 %vm1549_vm0, %v4753_v50  ;;  %v4289_v52 = vshll.u32 %v8251_v59, 16  ;;  %v5057_v18 = vshll.u32 %v8289_v3, 16  ;;  %v8290_v11 = vcombine.low %v9617_v61, %v9618_v25 }
 0x1aa   : > { %v4593_v47 = vpop.permute.xlu1 %4592  ;;  %12628 = vst [vmem:[#allocation22_spill] sm:$0xff] %v11286_v9  ;;  %6187 = vperm.xlu0 %9337, %v10997_v0   ;;  %v4612_v23 = vrot.slane %v11117_v19, %v10094_v29  ;;  %v11303_v59 = vsel %vm2001_vm5, %v11286_v9, %v1997_v57  ;;  %v11307_v20 = vor.u32 %v1997_v57, %v12435_v28 }
 0x1ab   : > { %v4754_v36 = vmul.bf16 %v8264_v5, %v11271_v63  ;;  %v4601_v38 = vrot.slane %v4593_v47, %v10094_v29  ;;  %v11292_v50 = vpop.permute.xlu0 %5351  ;;  %12629 = vst [vmem:[#allocation25_spill] sm:$0xff] %v11303_v59  ;;  %v5051_v47 = vrot.slane %v5049_v7, 4  ;;  %v5063_v61 = vshrl.u32 %v8290_v11, 16 }
 0x1ac   : > { %v4634_v57 = vrot.slane %v11136_v26, %v10094_v29 }
 0x1ad   : > { %v8265_v22 = vcombine.low %v4590_v42, %v4601_v38  ;;  %9324 = vset.pattern.permute.xlu1 %v12586_v37  ;;  %8866 = vmatprep.mubr.msk.bf16.mxu0 %vm1549_vm0, %v4754_v36  ;;  %v4291_v42 = vrot.slane %v4289_v52, 1  ;;  %v5056_v36 = vrot.slane %v5054_v44, 3  ;;  %v5059_v38 = vrot.slane %v5057_v18, 4  ;;  %v9620_v52 = vld [vmem:[%s10088_s11 + $0x20] sm:$0xf] }
 0x1ae   : > { %6110 = vperm.xlu1 %9324, %v12624_v43   ;;  %v4615_v5 = vpop.permute.xlu1 %4614  ;;  %6220 = vperm.xlu0 %9337, %v10594_v56   ;;  %v5048_v43 = vrot.slane %v5046_v30, 3 }
 0x1af   : > { %v4755_v25 = vmul.bf16 %v8265_v22, %v11280_v31  ;;  %v4623_v19 = vrot.slane %v4615_v5, %v10094_v29  ;;  %v11312_v3 = vpop.permute.xlu0 %5373  ;;  %v5066_v22 = vshll.u32 %v8290_v11, 16  ;;  %v9619_v5 = vld [vmem:[%s10088_s11 + $0x1c] sm:$0xf]  ;;  %v4293_v11 = vsel %vm11319_vm7, %v11307_v20, %v4291_v42 }
 0x1b0   : > { %v8291_v30 = vcombine.low %v9619_v5, %v9620_v52 }
 0x1b1   : > { %v8266_v28 = vcombine.low %v4612_v23, %v4623_v19  ;;  %8867 = vmatmul.mubr.msk.bf16.gmra.mrb[24].mxu0 %vm1549_vm0, %v4755_v25  ;;  %v5052_v23 = vor.u32 %v5051_v47, %v5048_v43  ;;  %v5060_v25 = vor.u32 %v5059_v38, %v5056_v36  ;;  %v5065_v19 = vrot.slane %v5063_v61, 3 }
 0x1b2   : > { %9325 = vset.pattern.permute.xlu1 %v12569_v45  ;;  %v4637_v18 = vpop.permute.xlu1 %4636  ;;  %6231 = vperm.xlu0 %9337, %v11031_v60   ;;  %v5068_v52 = vrot.slane %v5066_v22, 4  ;;  %v5072_v9 = vshrl.u32 %v8291_v30, 16  ;;  %v5075_v16 = vshll.u32 %v8291_v30, 16 }
 0x1b3   : > { %v4756_v26 = vmul.bf16 %v8266_v28, %v11303_v59  ;;  %2280 = vperm.xlu1 %9325, %v12613_v2   ;;  %v4645_v44 = vrot.slane %v4637_v18, %v10094_v29  ;;  %v11330_v7 = vpop.permute.xlu0 %5395  ;;  %v5195_v2 = vrot.slane %v11158_v55, %v10094_v29  ;;  %v9621_v28 = vld [vmem:[%s10088_s11 + $0x24] sm:$0xf]  ;;  %v9622_v18 = vld [vmem:[%s10088_s11 + $0x28] sm:$0xf]  ;;  %v5061_v38 = vsel %vm301_vm1, %v5052_v23, %v5060_v25 }
 0x1b4   : > { %v8292_v59 = vcombine.low %v9621_v28, %v9622_v18  ;;  %v5069_v55 = vor.u32 %v5068_v52, %v5065_v19  ;;  %v5074_v61 = vrot.slane %v5072_v9, 3  ;;  %v9626_v19 = vld [vmem:[%s10088_s11 + $0x34] sm:$0xf]  ;;  %v9627_v52 = vld [vmem:[%s10088_s11 + $0x38] sm:$0xf] }
 0x1b5   : > { %v8267_v5 = vcombine.low %v4634_v57, %v4645_v44  ;;  %8870 = vmatprep.mubr.msk.bf16.mxu0 %vm1549_vm0, %v4756_v26  ;;  %v5077_v57 = vrot.slane %v5075_v16, 4  ;;  %v9623_v26 = vld [vmem:[%s10088_s11 + $0x2c] sm:$0xf]  ;;  %v9624_v44 = vld [vmem:[%s10088_s11 + $0x30] sm:$0xf] }
 0x1b6   : > { %6264 = vperm.xlu0 %9337, %v10672_v39   ;;  %v5081_v22 = vshrl.u32 %v8292_v59, 16  ;;  %v5084_v30 = vshll.u32 %v8292_v59, 16  ;;  %v11358_v16 = vld [vmem:[%s12328_s2] sm:$0xf]  ;;  %v5070_v28 = vsel %vm301_vm1, %v5060_v25, %v5069_v55 }
 0x1b7   : > { %v4757_v42 = vmul.bf16 %v8267_v5, %v4293_v11  ;;  %9326 = vset.pattern.permute.xlu1 %v12586_v37  ;;  %v5198_v43 = vpop.permute.xlu1 %5197  ;;  %v11342_v47 = vpop.permute.xlu0 %5417  ;;  %v8293_v11 = vcombine.low %v9623_v26, %v9624_v44  ;;  %v12439_v5 = vmov 8   ;;  %v5078_v18 = vor.u32 %v5077_v57, %v5074_v61 }
 0x1b8   : > { %6121 = vperm.xlu1 %9326, %v10951_v13   ;;  %v5206_v36 = vrot.slane %v5198_v43, %v10094_v29  ;;  %v5228_v13 = vrot.slane %v11178_v58, %v10094_v29  ;;  %v5086_v43 = vrot.slane %v5084_v30, 4  ;;  %v9629_v30 = vld [vmem:[%s10088_s11 + $0x40] sm:$0xf] }
 0x1b9   : > { %8871 = vmatmul.mubr.msk.bf16.gmra.mrb[28].mxu0 %vm1549_vm0, %v4757_v42  ;;  %v5083_v42 = vrot.slane %v5081_v22, 3  ;;  %v9628_v22 = vld [vmem:[%s10088_s11 + $0x3c] sm:$0xf] }
 0x1ba   : > { %v8302_v39 = vcombine.low %v5195_v2, %v5206_v36  ;;  %9341 = vset.pattern.permute.xlu0 %v12439_v5  ;;  %v8294_v2 = vcombine.low %v9626_v19, %v9627_v52  ;;  %v5090_v36 = vshrl.u32 %v8293_v11, 16  ;;  %v8295_v52 = vcombine.low %v9628_v22, %v9629_v30 }
 0x1bb   : > { %v11353_v23 = vpop.permute.xlu0 %5439  ;;  %6667 = vperm.xlu0 %9341, %v11358_v16  }
 0x1bc   : > { %v5633_v9 = vmul.bf16 %v8302_v39, %v5061_v38  ;;  %9327 = vset.pattern.permute.xlu1 %v12569_v45  ;;  %v5209_v59 = vpop.permute.xlu1 %5208  ;;  %v5093_v38 = vshll.u32 %v8293_v11, 16  ;;  %v5250_v39 = vrot.slane %v11194_v41, %v10094_v29  ;;  %v5102_v19 = vshll.u32 %v8294_v2, 16  ;;  %v9433_v41 = vld [vmem:[%s12327_s1 + $0xe8] sm:$0xff]  }
 0x1bd   : > { %v5217_v58 = vrot.slane %v5209_v59, %v10094_v29  ;;  %2291 = vperm.xlu1 %9327, %v10967_v51   ;;  %v5099_v59 = vshrl.u32 %v8294_v2, 16  ;;  %v5079_v11 = vsel %vm301_vm1, %v5069_v55, %v5078_v18  ;;  %v5272_v2 = vrot.slane %v11211_v49, %v10094_v29 }
 0x1be   : > { %8882 = vmatprep.mubr.msk.bf16.mxu0 %vm1549_vm0, %v5633_v9  ;;  %v12632_v9 = vld [vmem:[#allocation18_spill] sm:$0xff]  ;;  %v5104_v22 = vrot.slane %v5102_v19, 4  ;;  %v5108_v49 = vshrl.u32 %v8295_v52, 16 }
 0x1bf   : > { %v8303_v26 = vcombine.low %v5217_v58, %v5228_v13  ;;  %v11370_v44 = vpop.permute.xlu0 %5461  ;;  %6711 = vperm.xlu0 %9341, %v10797_v54   ;;  %v5087_v13 = vor.u32 %v5086_v43, %v5083_v42  ;;  %v5092_v58 = vrot.slane %v5090_v36, 3  ;;  %v5095_v54 = vrot.slane %v5093_v38, 4  ;;  %v9434_v36 = vld [vmem:[%s12327_s1 + $0xf0] sm:$0xff]  }
 0x1c0   : > { %v5231_v25 = vpop.permute.xlu1 %5230  ;;  %v5111_v43 = vshll.u32 %v8295_v52, 16  ;;  %v11397_v38 = vld [vmem:[%s12328_s2 + $0x54] sm:$0xf] }
 0x1c1   : > { %v5634_v61 = vmul.bf16 %v8303_v26, %v5070_v28  ;;  %v5239_v57 = vrot.slane %v5231_v25, %v10094_v29  ;;  %2302 = vperm.xlu1 %9327, %v12632_v9   ;;  %v5101_v9 = vrot.slane %v5099_v59, 3  ;;  %12633 = vst [vmem:[#allocation24_spill] sm:$0xff] %v11397_v38  ;;  %v9632_v59 = vld [vmem:[%s10088_s11 + $0x48] sm:$0xf] }
 0x1c3   : > { %v8304_v28 = vcombine.low %v5239_v57, %v5250_v39  ;;  %8883 = vmatmul.mubr.msk.bf16.vlgmr.msra.gmra.mrb[0].mxu0 %vm1549_vm0, %v5634_v61  ;;  %v11384_v26 = vpop.permute.xlu0 %5483  ;;  %6755 = vperm.xlu0 %9341, %v10862_v40   ;;  %v5088_v40 = vsel %vm301_vm1, %v5078_v18, %v5087_v13  ;;  %v9631_v39 = vld [vmem:[%s10088_s11 + $0x44] sm:$0xf]  ;;  %v5294_v61 = vrot.slane %v11227_v8, %v10094_v29  ;;  %v9435_v8 = vld [vmem:[%s12327_s1 + $0xf8] sm:$0xff]  }
 0x1c4   : > { %v5253_v25 = vpop.permute.xlu1 %5252  ;;  %8915 = vmatpush3.bf16.msra.mxu0 %v11152_v48  ;;  %v5096_v48 = vor.u32 %v5095_v54, %v5092_v58  ;;  %v8296_v19 = vcombine.low %v9631_v39, %v9632_v59  ;;  %v5105_v52 = vor.u32 %v5104_v22, %v5101_v9  ;;  %v5110_v54 = vrot.slane %v5108_v49, 3  ;;  %v9633_v9 = vld [vmem:[%s10088_s11 + $0x4c] sm:$0xf]  ;;  %v11421_v49 = vld [vmem:[%s12328_s2 + $0x5c] sm:$0xf] }
 0x1c5   : > { %v5635_v55 = vmul.bf16 %v8304_v28, %v5079_v11  ;;  %v5261_v42 = vrot.slane %v5253_v25, %v10094_v29  ;;  %9328 = vset.pattern.permute.xlu1 %v12586_v37  ;;  %8916 = vmatprep.subr.bf16.mxu0 %v9433_v41  ;;  %v5113_v28 = vrot.slane %v5111_v43, 4  ;;  %v12634_v43 = vld [vmem:[#allocation52_spill] sm:$0xff]  ;;  %v12635_v39 = vld [vmem:[#allocation55_spill] sm:$0xff] }
 0x1c6   : > { %6154 = vperm.xlu1 %9328, %v11397_v38   ;;  %v5120_v25 = vshll.u32 %v8296_v19, 16  ;;  %v2113_v59 = vrot.slane %v12635_v39, %v10094_v29  ;;  %v12636_v38 = vld [vmem:[#allocation50_spill] sm:$0xff] }
 0x1c7   : > { %v8305_v57 = vcombine.low %v5261_v42, %v5272_v2  ;;  %8886 = vmatprep.mubr.msk.bf16.mxu0 %vm1549_vm0, %v5635_v55  ;;  %v11405_v30 = vpop.permute.xlu0 %5505  ;;  %6799 = vperm.xlu0 %9341, %v10905_v24   ;;  %v5097_v2 = vsel %vm301_vm1, %v5087_v13, %v5096_v48  ;;  %v5117_v24 = vshrl.u32 %v8296_v19, 16  ;;  %v5316_v55 = vrot.slane %v11243_v62, %v10094_v29  ;;  %v9636_v62 = vld [vmem:[%s10088_s11 + $0x54] sm:$0xf] }
 0x1c8   : > { %v5275_v18 = vpop.permute.xlu1 %5274  ;;  %8917 = vmatpush3.bf16.msra.mxu0 %v9433_v41  ;;  %v9634_v41 = vld [vmem:[%s10088_s11 + $0x50] sm:$0xf]  ;;  %v2080_v31 = vrot.slane %v12636_v38, %v10094_v29 }
 0x1c9   : > { %v5636_v11 = vmul.bf16 %v8305_v57, %v5088_v40  ;;  %v5283_v58 = vrot.slane %v5275_v18, %v10094_v29  ;;  %8918 = vmatprep.subr.bf16.mxu0 %v9434_v36  ;;  %v8297_v22 = vcombine.low %v9633_v9, %v9634_v41  ;;  %v2102_v40 = vrot.slane %v12634_v43, %v10094_v29 }
 0x1ca   : > { %9329 = vset.pattern.permute.xlu1 %v12569_v45  ;;  %v5114_v9 = vor.u32 %v5113_v28, %v5110_v54  ;;  %v5119_v41 = vrot.slane %v5117_v24, 3  ;;  %v5122_v43 = vrot.slane %v5120_v25, 4  ;;  %v9638_v25 = vld [vmem:[%s10088_s11 + $0x5c] sm:$0xf] }
 0x1cb   : > { %v8306_v42 = vcombine.low %v5283_v58, %v5294_v61  ;;  %2324 = vperm.xlu1 %9329, %v11421_v49   ;;  %8887 = vmatmul.mubr.msk.bf16.gmra.mrb[4].mxu0 %vm1549_vm0, %v5636_v11  ;;  %v11425_v13 = vpop.permute.xlu0 %5527  ;;  %v9637_v61 = vld [vmem:[%s10088_s11 + $0x58] sm:$0xf]  ;;  %v5106_v58 = vsel %vm301_vm1, %v5096_v48, %v5105_v52  ;;  %v5126_v5 = vshrl.u32 %v8297_v22, 16  ;;  %v5129_v39 = vshll.u32 %v8297_v22, 16  ;;  %v9639_v22 = vld [vmem:[%s10088_s11 + $0x60] sm:$0xf] }
 0x1cc   : > { %v5297_v19 = vpop.permute.xlu1 %5296  ;;  %v8298_v57 = vcombine.low %v9636_v62, %v9637_v61  ;;  %8919 = vmatpush3.bf16.msra.mxu0 %v9434_v36  ;;  %6843 = vperm.xlu0 %9341, %v10937_v46   ;;  %v5338_v36 = vrot.slane %v11265_v10, %v10094_v29  ;;  %v8144_v48 = vcombine.low %v2102_v40, %v2113_v59 }
 0x1cd   : > { %v5637_v18 = vmul.bf16 %v8306_v42, %v5097_v2  ;;  %v5305_v11 = vrot.slane %v5297_v19, %v10094_v29  ;;  %8920 = vmatprep.subr.bf16.mxu0 %v9435_v8  ;;  %v8299_v42 = vcombine.low %v9638_v25, %v9639_v22  ;;  %v11450_v10 = vsel %vm11319_vm7, %v11307_v20, %v11019_v17  ;;  %v12638_v22 = vld [vmem:[#allocation59_spill] sm:$0xff] }
 0x1ce   : > { %v5135_v2 = vshrl.u32 %v8298_v57, 16  ;;  %v5138_v24 = vshll.u32 %v8298_v57, 16  ;;  %v5123_v40 = vor.u32 %v5122_v43, %v5119_v41  ;;  %v5128_v59 = vrot.slane %v5126_v5, 3 }
 0x1cf   : > { %v8307_v46 = vcombine.low %v5305_v11, %v5316_v55  ;;  %9330 = vset.pattern.permute.xlu1 %v12586_v37  ;;  %8890 = vmatprep.mubr.msk.bf16.mxu0 %vm1549_vm0, %v5637_v18  ;;  %v5131_v62 = vrot.slane %v5129_v39, 4  ;;  %v5360_v57 = vrot.slane %v11292_v50, %v10094_v29  ;;  %v5144_v5 = vshrl.u32 %v8299_v42, 16 }
 0x1d0   : > { %6165 = vperm.xlu1 %9330, %v10981_v21   ;;  %v5319_v54 = vpop.permute.xlu1 %5318  ;;  %v2083_v28 = vpop.permute.xlu0 %2082  ;;  %8921 = vmatpush3.bf16.msra.mxu0 %v9435_v8  ;;  %v5115_v21 = vsel %vm301_vm1, %v5105_v52, %v5114_v9  ;;  %v12637_v8 = vld [vmem:[#allocation56_spill] sm:$0xff]  ;;  %v5137_v20 = vrot.slane %v5135_v2, 3  ;;  %v5140_v56 = vrot.slane %v5138_v24, 4  ;;  %v5147_v52 = vshll.u32 %v8299_v42, 16 }
 0x1d1   : > { %v5638_v38 = vmul.bf16 %v8307_v46, %v5106_v58  ;;  %v5327_v19 = vrot.slane %v5319_v54, %v10094_v29  ;;  %v2091_v55 = vrot.slane %v2083_v28, %v10094_v29  ;;  %6887 = vperm.xlu0 %9341, %v10967_v51   ;;  %v2135_v61 = vrot.slane %v12637_v8, %v10094_v29  ;;  %v9640_v46 = vld [vmem:[%s10088_s11 + $0x64] sm:$0xf]  ;;  %v9641_v54 = vld [vmem:[%s10088_s11 + $0x68] sm:$0xf] }
 0x1d2   : > { %v5124_v39 = vsel %vm301_vm1, %v5114_v9, %v5123_v40  ;;  %v8300_v28 = vcombine.low %v9640_v46, %v9641_v54  ;;  %v5382_v2 = vrot.slane %v11312_v3, %v10094_v29  ;;  %v5141_v42 = vor.u32 %v5140_v56, %v5137_v20  ;;  %v12639_v56 = vld [vmem:[#allocation62_spill] sm:$0xff] }
 0x1d3   : > { %v8308_v18 = vcombine.low %v5327_v19, %v5338_v36  ;;  %v8143_v58 = vcombine.low %v2080_v31, %v2091_v55  ;;  %8891 = vmatmul.mubr.msk.bf16.gmra.mrb[8].mxu0 %vm1549_vm0, %v5638_v38  ;;  %v2519_v31 = vmul.bf16 %v8144_v48, %v11053_v4  ;;  %v5132_v36 = vor.u32 %v5131_v62, %v5128_v59  ;;  %v11483_v59 = vld [vmem:[%s12328_s2 + $0x64] sm:$0xf] }
 0x1d4   : > { %9331 = vset.pattern.permute.xlu1 %v12569_v45  ;;  %v5341_v51 = vpop.permute.xlu1 %5340  ;;  %v2116_v17 = vpop.permute.xlu0 %2115  ;;  %v2157_v4 = vrot.slane %v12638_v22, %v10094_v29  ;;  %v5149_v38 = vrot.slane %v5147_v52, 4  ;;  %v5153_v8 = vshrl.u32 %v8300_v28, 16  ;;  %v11509_v22 = vld [vmem:[%s12328_s2 + $0xc] sm:$0xf] }
 0x1d5   : > { %v5639_v11 = vmul.bf16 %v8308_v18, %v5115_v21  ;;  %v2518_v41 = vmul.bf16 %v8143_v58, %v11450_v10  ;;  %v5349_v43 = vrot.slane %v5341_v51, %v10094_v29  ;;  %v2124_v50 = vrot.slane %v2116_v17, %v10094_v29  ;;  %2335 = vperm.xlu1 %9331, %v10997_v0   ;;  %v9644_v18 = vld [vmem:[%s10088_s11 + $0x70] sm:$0xf] }
 0x1d6   : > { %6931 = vperm.xlu0 %9341, %v10997_v0   ;;  %v5146_v0 = vrot.slane %v5144_v5, 3  ;;  %v5133_v62 = vsel %vm301_vm1, %v5123_v40, %v5132_v36  ;;  %v5404_v51 = vrot.slane %v11330_v7, %v10094_v29  ;;  %v2179_v5 = vrot.slane %v12639_v56, %v10094_v29 }
 0x1d7   : > { %v8309_v24 = vcombine.low %v5349_v43, %v5360_v57  ;;  %v8145_v25 = vcombine.low %v2124_v50, %v2135_v61  ;;  %8722 = vmatprep.mubr.msk.bf16.mxu1 %vm1549_vm0, %v2518_v41  ;;  %8894 = vmatprep.mubr.msk.bf16.mxu0 %vm1549_vm0, %v5639_v11  ;;  %v5156_v61 = vshll.u32 %v8300_v28, 16  ;;  %v9643_v57 = vld [vmem:[%s10088_s11 + $0x6c] sm:$0xf]  ;;  %v5142_v52 = vsel %vm301_vm1, %v5132_v36, %v5141_v42 }
 0x1d8   : > { %v5363_v9 = vpop.permute.xlu1 %5362  ;;  %v2138_v48 = vpop.permute.xlu0 %2137  ;;  %8723 = vmatmul.mubr.msk.bf16.vlgmr.msra.gmra.mrb[0].mxu1 %vm1549_vm0, %v2519_v31  ;;  %v8301_v58 = vcombine.low %v9643_v57, %v9644_v18  ;;  %v5150_v41 = vor.u32 %v5149_v38, %v5146_v0  ;;  %v5426_v36 = vrot.slane %v11342_v47, %v10094_v29 }
 0x1d9   : > { %v5640_v19 = vmul.bf16 %v8309_v24, %v5124_v39  ;;  %v2520_v3 = vmul.bf16 %v8145_v25, %v11069_v1  ;;  %v5371_v55 = vrot.slane %v5363_v9, %v10094_v29  ;;  %v2146_v21 = vrot.slane %v2138_v48, %v10094_v29  ;;  %2346 = vperm.xlu1 %9331, %v11483_v59  }
 0x1da   : > { %6975 = vperm.xlu0 %9341, %v11031_v60   ;;  %v5155_v39 = vrot.slane %v5153_v8, 3  ;;  %v5158_v46 = vrot.slane %v5156_v61, 4  ;;  %v5162_v54 = vshrl.u32 %v8301_v58, 16  ;;  %v5165_v28 = vshll.u32 %v8301_v58, 16  ;;  %v11525_v58 = vld [vmem:[%s12328_s2 + $0x6c] sm:$0xf] }
 0x1db   : > { %v8310_v17 = vcombine.low %v5371_v55, %v5382_v2  ;;  %v8146_v20 = vcombine.low %v2146_v21, %v2157_v4  ;;  %8726 = vmatprep.mubr.msk.bf16.mxu1 %vm1549_vm0, %v2520_v3  ;;  %8895 = vmatmul.mubr.msk.bf16.gmra.mrb[12].mxu0 %vm1549_vm0, %v5640_v19  ;;  %v9692_v2 = vmov 3   ;;  %v12640_v4 = vld [vmem:[#allocation66_spill] sm:$0xff]  ;;  %v5151_v55 = vsel %vm301_vm1, %v5141_v42, %v5150_v41  ;;  %v12641_v42 = vld [vmem:[#allocation68_spill] sm:$0xff] }
 0x1dc   : > { %v5385_v40 = vpop.permute.xlu1 %5384  ;;  %v2160_v11 = vpop.permute.xlu0 %2159  ;;  %v2201_v9 = vrot.slane %v12640_v4, %v10094_v29  ;;  %v5159_v21 = vor.u32 %v5158_v46, %v5155_v39  ;;  %v5167_v8 = vrot.slane %v5165_v28, 4  ;;  %v5448_v61 = vrot.slane %v11353_v23, %v10094_v29  ;;  %v9647_v23 = vld [vmem:[%s12328_s2 + $0x10] sm:$0xf] }
 0x1dd   : > { %v5641_v43 = vmul.bf16 %v8310_v17, %v5133_v62  ;;  %v2521_v50 = vmul.bf16 %v8146_v20, %v11085_v53  ;;  %v5393_v31 = vrot.slane %v5385_v40, %v10094_v29  ;;  %v2168_v7 = vrot.slane %v2160_v11, %v10094_v29  ;;  %9332 = vset.pattern.permute.xlu1 %v12586_v37 }
 0x1de   : > { %6198 = vperm.xlu1 %9332, %v11483_v59   ;;  %9370 = vset.pattern.permute.xlu0 %v9692_v2  ;;  %v5164_v62 = vrot.slane %v5162_v54, 3  ;;  %v5160_v11 = vsel %vm301_vm1, %v5150_v41, %v5159_v21 }
 0x1df   : > { %v8311_v24 = vcombine.low %v5393_v31, %v5404_v51  ;;  %v8147_v25 = vcombine.low %v2168_v7, %v2179_v5  ;;  %8898 = vmatprep.mubr.msk.bf16.mxu0 %vm1549_vm0, %v5641_v43  ;;  %2845 = vperm.xlu0 %9370, %v11509_v22   ;;  %v2223_v51 = vrot.slane %v12641_v42, %v10094_v29  ;;  %v12643_v42 = vld [vmem:[#allocation48_spill] sm:$0xff] }
 0x1e0   : > { %v5407_v48 = vpop.permute.xlu1 %5406  ;;  %v2182_v0 = vpop.permute.xlu0 %2181  ;;  %8727 = vmatmul.mubr.msk.bf16.gmra.mrb[4].mxu1 %vm1549_vm0, %v2521_v50  ;;  %v5168_v43 = vor.u32 %v5167_v8, %v5164_v62  ;;  %v5470_v50 = vrot.slane %v11370_v44, %v10094_v29  ;;  %v11552_v44 = vld [vmem:[%s12328_s2 + $0x1c] sm:$0xf]  ;;  %v11579_v62 = vld [vmem:[%s12328_s2 + $0x74] sm:$0xf]  ;;  %v5536_v8 = vrot.slane %v11425_v13, %v10094_v29 }
 0x1e1   : > { %v5642_v38 = vmul.bf16 %v8311_v24, %v5142_v52  ;;  %v2522_v47 = vmul.bf16 %v8147_v25, %v11105_v14  ;;  %v5415_v19 = vrot.slane %v5407_v48, %v10094_v29  ;;  %v2190_v3 = vrot.slane %v2182_v0, %v10094_v29  ;;  %v9649_v0 = vld [vmem:[%s12328_s2 + $0x20] sm:$0xf] }
 0x1e2   : > { %9333 = vset.pattern.permute.xlu1 %v12569_v45 }
 0x1e3   : > { %v8312_v57 = vcombine.low %v5415_v19, %v5426_v36  ;;  %v8148_v18 = vcombine.low %v2190_v3, %v2201_v9  ;;  %2368 = vperm.xlu1 %9333, %v11525_v58   ;;  %8730 = vmatprep.mubr.msk.bf16.mxu1 %vm1549_vm0, %v2522_v47  ;;  %v5169_v36 = vsel %vm301_vm1, %v5159_v21, %v5168_v43 }
 0x1e4   : > { %8899 = vmatmul.mubr.msk.bf16.gmra.mrb[16].mxu0 %vm1549_vm0, %v5642_v38  ;;  %v5429_v17 = vpop.permute.xlu1 %5428  ;;  %v2204_v20 = vpop.permute.xlu0 %2203  ;;  %2856 = vperm.xlu0 %9370, %v9647_v23   ;;  %v5514_v47 = vrot.slane %v11405_v30, %v10094_v29  ;;  %v11585_v30 = vld [vmem:[%s12328_s2 + $0x2c] sm:$0xf] }
 0x1e5   : > { %v5643_v56 = vmul.bf16 %v8312_v57, %v5151_v55  ;;  %v2523_v5 = vmul.bf16 %v8148_v18, %v11124_v15  ;;  %v5437_v40 = vrot.slane %v5429_v17, %v10094_v29  ;;  %v2212_v52 = vrot.slane %v2204_v20, %v10094_v29  ;;  %v9652_v20 = vld [vmem:[%s12328_s2 + $0x30] sm:$0xf] }
 0x1e7   : > { %v8313_v31 = vcombine.low %v5437_v40, %v5448_v61  ;;  %v8149_v7 = vcombine.low %v2212_v52, %v2223_v51  ;;  %9334 = vset.pattern.permute.xlu1 %v12586_v37  ;;  %8902 = vmatprep.mubr.msk.bf16.mxu0 %vm1549_vm0, %v5643_v56  ;;  %v12644_v56 = vld [vmem:[#allocation53_spill] sm:$0xff] }
 0x1e8   : > { %6209 = vperm.xlu1 %9334, %v11011_v32   ;;  %v5451_v39 = vpop.permute.xlu1 %5450  ;;  %8731 = vmatmul.mubr.msk.bf16.gmra.mrb[8].mxu1 %vm1549_vm0, %v2523_v5  ;;  %v11545_v46 = vpop.permute.xlu0 %2225  ;;  %v5492_v32 = vrot.slane %v11384_v26, %v10094_v29  ;;  %v12642_v26 = vld [vmem:[#allocation46_spill] sm:$0xff]  ;;  %v11607_v52 = vld [vmem:[%s12328_s2 + $0x3c] sm:$0xf] }
 0x1e9   : > { %v5644_v54 = vmul.bf16 %v8313_v31, %v5160_v11  ;;  %v2524_v41 = vmul.bf16 %v8149_v7, %v11143_v27  ;;  %v5459_v28 = vrot.slane %v5451_v39, %v10094_v29  ;;  %2889 = vperm.xlu0 %9370, %v11552_v44   ;;  %v5170_v38 = vsel %vm301_vm1, %v5168_v43, %v12642_v26  ;;  %v11614_v11 = vld [vmem:[%s12328_s2 + $0x7c] sm:$0xf]  ;;  %v9655_v31 = vld [vmem:[%s12328_s2 + $0x40] sm:$0xf]  ;;  %v9658_v26 = vld [vmem:[%s12328_s2 + $0x50] sm:$0xf] }
 0x1eb   : > { %v8314_v24 = vcombine.low %v5459_v28, %v5470_v50  ;;  %8734 = vmatprep.mubr.msk.bf16.mxu1 %vm1549_vm0, %v2524_v41 }
 0x1ec   : > { %8903 = vmatmul.mubr.msk.bf16.gmra.mrb[20].mxu0 %vm1549_vm0, %v5644_v54  ;;  %9335 = vset.pattern.permute.xlu1 %v12569_v45  ;;  %v5473_v25 = vpop.permute.xlu1 %5472  ;;  %v11561_v4 = vpop.permute.xlu0 %2269  ;;  %v11627_v54 = vld [vmem:[%s12328_s2 + $0x78] sm:$0xf] }
 0x1ed   : > { %v5645_v9 = vmul.bf16 %v8314_v24, %v5169_v36  ;;  %v5481_v48 = vrot.slane %v5473_v25, %v10094_v29  ;;  %2379 = vperm.xlu1 %9335, %v11031_v60   ;;  %2900 = vperm.xlu0 %9370, %v9649_v0   ;;  %v11633_v36 = vld [vmem:[%s12328_s2 + $0x4c] sm:$0xf] }
 0x1ef   : > { %v8315_v19 = vcombine.low %v5481_v48, %v5492_v32  ;;  %8906 = vmatprep.mubr.msk.bf16.mxu0 %vm1549_vm0, %v5645_v9 }
 0x1f0   : > { %v5495_v3 = vpop.permute.xlu1 %5494  ;;  %v11573_v55 = vpop.permute.xlu0 %2313 }
 0x1f1   : > { %v5646_v21 = vmul.bf16 %v8315_v19, %v5170_v38  ;;  %v5503_v60 = vrot.slane %v5495_v3, %v10094_v29  ;;  %2390 = vperm.xlu1 %9335, %v11579_v62   ;;  %2933 = vperm.xlu0 %9370, %v11585_v30   ;;  %v9659_v3 = vld [vmem:[%s12328_s2 + $0x4] sm:$0xf] }
 0x1f3   : > { %v8316_v61 = vcombine.low %v5503_v60, %v5514_v47 }
 0x1f4   : > { %8907 = vmatmul.mubr.msk.bf16.gmra.mrb[24].mxu0 %vm1549_vm0, %v5646_v21  ;;  %v5517_v57 = vpop.permute.xlu1 %5516  ;;  %v11591_v18 = vpop.permute.xlu0 %2357 }
 0x1f5   : > { %v5647_v51 = vmul.bf16 %v8316_v61, %v12643_v42  ;;  %v5525_v17 = vrot.slane %v5517_v57, %v10094_v29  ;;  %9336 = vset.pattern.permute.xlu1 %v12586_v37  ;;  %2944 = vperm.xlu0 %9370, %v9652_v20   ;;  %v9438_v42 = vld [vmem:[%s12327_s1 + $0x68] sm:$0xff]  }
 0x1f6   : > { %6242 = vperm.xlu1 %9336, %v11579_v62  }
 0x1f7   : > { %v8317_v13 = vcombine.low %v5525_v17, %v5536_v8  ;;  %8910 = vmatprep.mubr.msk.bf16.mxu0 %vm1549_vm0, %v5647_v51  ;;  %v12645_v51 = vmov 8  }
 0x1f8   : > { %v11601_v23 = vpop.permute.xlu0 %2401 }
 0x1f9   : > { %v5648_v5 = vmul.bf16 %v8317_v13, %v12644_v56  ;;  %v5924_v40 = vpop.permute.xlu1 %5923  ;;  %2977 = vperm.xlu0 %9370, %v11607_v52  }
 0x1fa   : > { %9338 = vset.pattern.permute.xlu1 %v12569_v45  ;;  %v5932_v7 = vrot.slane %v5924_v40, %v10094_v29 }
 0x1fb   : > { %2412 = vperm.xlu1 %9338, %v11614_v11  }
 0x1fc   : > { %8911 = vmatmul.mubr.msk.bf16.gmra.mrb[28].mxu0 %vm1549_vm0, %v5648_v5 }
 0x1fd   : > { %v5946_v43 = vpop.permute.xlu1 %5945  ;;  %v5935_v50 = vpop.permute.xlu0 %5934  ;;  %2988 = vperm.xlu0 %9370, %v9655_v31  }
 0x1fe   : > { %v5943_v45 = vrot.slane %v5935_v50, %v10094_v29  ;;  %v5954_v32 = vrot.slane %v5946_v43, %v10094_v29  ;;  %v9439_v50 = vld [vmem:[%s12327_s1 + $0x70] sm:$0xff]  }
 0x1ff   : > { %9339 = vset.pattern.permute.xlu1 %v12586_v37 }
 0x200   : > { %v8338_v39 = vcombine.low %v5932_v7, %v5943_v45  ;;  %6253 = vperm.xlu1 %9339, %v11627_v54  }
 0x201   : > { %v5957_v41 = vpop.permute.xlu1 %5956  ;;  %v5968_v28 = vpop.permute.xlu0 %5967  ;;  %3021 = vperm.xlu0 %9370, %v11633_v36  }
 0x202   : > { %v6370_v37 = vmul.bf16 %v8338_v39, %v10139_v6  ;;  %v5965_v24 = vrot.slane %v5957_v41, %v10094_v29  ;;  %v5976_v9 = vrot.slane %v5968_v28, %v10094_v29  ;;  %v9661_v41 = vld [vmem:[%s12328_s2 + $0x8] sm:$0xf] }
 0x204   : > { %v8339_v25 = vcombine.low %v5954_v32, %v5965_v24  ;;  %9340 = vset.pattern.permute.xlu1 %v9692_v2  ;;  %8922 = vmatprep.mubr.msk.bf16.mxu0 %vm1549_vm0, %v6370_v37  ;;  %v9662_v24 = vld [vmem:[%s12328_s2 + $0x70] sm:$0xf] }
 0x205   : > { %2812 = vperm.xlu1 %9340, %v11358_v16   ;;  %v5979_v48 = vpop.permute.xlu1 %5978  ;;  %v5990_v0 = vpop.permute.xlu0 %5989  ;;  %3032 = vperm.xlu0 %9370, %v9658_v26   ;;  %v9437_v16 = vld [vmem:[%s12327_s1 + $0x60] sm:$0xff]  }
 0x206   : > { %v6371_v6 = vmul.bf16 %v8339_v25, %v10159_v35  ;;  %v5987_v38 = vrot.slane %v5979_v48, %v10094_v29  ;;  %v5998_v19 = vrot.slane %v5990_v0, %v10094_v29  ;;  %8754 = vmatprep.subr.bf16.mxu1 %v9437_v16  ;;  %v9442_v25 = vld [vmem:[%s12327_s1 + $0x108] sm:$0xff]  }
 0x207   : > { %8755 = vmatpush3.bf16.msra.mxu1 %v9437_v16 }
 0x208   : > { %v8340_v47 = vcombine.low %v5976_v9, %v5987_v38  ;;  %8923 = vmatmul.mubr.msk.bf16.vlgmr.msra.gmra.mrb[0].mxu0 %vm1549_vm0, %v6371_v6  ;;  %8756 = vmatprep.subr.bf16.mxu1 %v9438_v42  ;;  %v12646_v9 = vld [vmem:[#allocation28_spill] sm:$0xff]  ;;  %v2234_v6 = vrot.slane %v11545_v46, %v10094_v29 }
 0x209   : > { %2823 = vperm.xlu1 %9340, %v9659_v3   ;;  %v6001_v21 = vpop.permute.xlu1 %6000  ;;  %v6012_v60 = vpop.permute.xlu0 %6011  ;;  %3065 = vperm.xlu0 %9370, %v11421_v49   ;;  %v9443_v38 = vld [vmem:[%s12327_s1 + $0x110] sm:$0xff]  }
 0x20a   : > { %v6372_v35 = vmul.bf16 %v8340_v47, %v10178_v34  ;;  %v6009_v8 = vrot.slane %v6001_v21, %v10094_v29  ;;  %v6020_v57 = vrot.slane %v6012_v60, %v10094_v29  ;;  %v9660_v34 = vld [vmem:[%s12328_s2 + $0x60] sm:$0xf]  ;;  %v12647_v47 = vld [vmem:[#allocation32_spill] sm:$0xff]  ;;  %v9444_v60 = vld [vmem:[%s12327_s1 + $0x118] sm:$0xff]  }
 0x20b   : > { %8757 = vmatpush3.bf16.msra.mxu1 %v9438_v42 }
 0x20c   : > { %v8341_v61 = vcombine.low %v5998_v19, %v6009_v8  ;;  %8926 = vmatprep.mubr.msk.bf16.mxu0 %vm1549_vm0, %v6372_v35  ;;  %8758 = vmatprep.subr.bf16.mxu1 %v9439_v50  ;;  %v12648_v8 = vld [vmem:[#allocation31_spill] sm:$0xff] }
 0x20d   : > { %9342 = vset.pattern.permute.xlu1 %v12645_v51  ;;  %v6023_v17 = vpop.permute.xlu1 %6022  ;;  %v6034_v20 = vpop.permute.xlu0 %6033  ;;  %3076 = vperm.xlu0 %9370, %v9660_v34  }
 0x20e   : > { %v6373_v13 = vmul.bf16 %v8341_v61, %v10194_v12  ;;  %v6031_v5 = vrot.slane %v6023_v17, %v10094_v29  ;;  %6678 = vperm.xlu1 %9342, %v9659_v3   ;;  %v6042_v43 = vrot.slane %v6034_v20, %v10094_v29  ;;  %v9440_v12 = vld [vmem:[%s12327_s1 + $0x100] sm:$0xff]   ;;  %v12649_v20 = vld [vmem:[#allocation35_spill] sm:$0xff] }
 0x20f   : > { %8759 = vmatpush3.bf16.msra.mxu1 %v9439_v50  ;;  %8954 = vmatprep.subr.bf16.mxu0 %v9440_v12 }
 0x210   : > { %v8342_v40 = vcombine.low %v6020_v57, %v6031_v5  ;;  %8927 = vmatmul.mubr.msk.bf16.gmra.mrb[4].mxu0 %vm1549_vm0, %v6373_v13 }
 0x211   : > { %v6045_v31 = vpop.permute.xlu1 %6044  ;;  %v6056_v7 = vpop.permute.xlu0 %6055  ;;  %3109 = vperm.xlu0 %9370, %v11525_v58   ;;  %8955 = vmatpush3.bf16.msra.mxu0 %v9440_v12 }
 0x212   : > { %v6374_v45 = vmul.bf16 %v8342_v40, %v10210_v33  ;;  %v6053_v39 = vrot.slane %v6045_v31, %v10094_v29  ;;  %9343 = vset.pattern.permute.xlu1 %v9692_v2  ;;  %v6064_v32 = vrot.slane %v6056_v7, %v10094_v29  ;;  %v9441_v33 = vld [vmem:[%s12327_s1 + $0x78] sm:$0xff]   ;;  %8956 = vmatprep.subr.bf16.mxu0 %v9442_v25 }
 0x213   : > { %2834 = vperm.xlu1 %9343, %v9661_v41   ;;  %8760 = vmatprep.subr.bf16.mxu1 %v9441_v33  ;;  %v9664_v7 = vld [vmem:[%s12328_s2 + $0x18] sm:$0xf] }
 0x214   : > { %v8343_v28 = vcombine.low %v6042_v43, %v6053_v39  ;;  %8930 = vmatprep.mubr.msk.bf16.mxu0 %vm1549_vm0, %v6374_v45  ;;  %8761 = vmatpush3.bf16.msra.mxu1 %v9441_v33  ;;  %v12650_v45 = vld [vmem:[#allocation8_spill] sm:$0xff]  ;;  %v2278_v33 = vrot.slane %v11561_v4, %v10094_v29  ;;  %v9665_v4 = vld [vmem:[%s12328_s2 + $0x24] sm:$0xf] }
 0x215   : > { %v6067_v37 = vpop.permute.xlu1 %6066  ;;  %3120 = vperm.xlu0 %9370, %v9662_v24   ;;  %8957 = vmatpush3.bf16.msra.mxu0 %v9442_v25  ;;  %v6089_v21 = vpop.permute.xlu0 %6088 }
 0x216   : > { %v6375_v48 = vmul.bf16 %v8343_v28, %v12646_v9  ;;  %v6075_v0 = vrot.slane %v6067_v37, %v10094_v29  ;;  %8958 = vmatprep.subr.bf16.mxu0 %v9443_v38  ;;  %v6097_v35 = vrot.slane %v6089_v21, %v10094_v29  ;;  %v12651_v37 = vld [vmem:[#allocation38_spill] sm:$0xff] }
 0x217   : > { %9344 = vset.pattern.permute.xlu1 %v12645_v51 }
 0x218   : > { %v8344_v26 = vcombine.low %v6064_v32, %v6075_v0  ;;  %6689 = vperm.xlu1 %9344, %v9661_v41   ;;  %8931 = vmatmul.mubr.msk.bf16.gmra.mrb[8].mxu0 %vm1549_vm0, %v6375_v48 }
 0x219   : > { %3153 = vperm.xlu0 %9370, %v11614_v11   ;;  %8959 = vmatpush3.bf16.msra.mxu0 %v9443_v38  ;;  %v6100_v50 = vpop.permute.xlu0 %6099 }
 0x21a   : > { %v6376_v19 = vmul.bf16 %v8344_v26, %v12647_v47  ;;  %v2237_v16 = vpop.permute.xlu1 %2236  ;;  %8960 = vmatprep.subr.bf16.mxu0 %v9444_v60  ;;  %v6108_v12 = vrot.slane %v6100_v50, %v10094_v29  ;;  %v2322_v50 = vrot.slane %v11573_v55, %v10094_v29  ;;  %v9667_v55 = vld [vmem:[%s12328_s2 + $0x34] sm:$0xf] }
 0x21b   : > { %v2245_v3 = vrot.slane %v2237_v16, %v10094_v29  ;;  %v12653_v16 = vld [vmem:[#allocation41_spill] sm:$0xff] }
 0x21c   : > { %6700 = vperm.xlu1 %9344, %v11509_v22   ;;  %8934 = vmatprep.mubr.msk.bf16.mxu0 %vm1549_vm0, %v6376_v19  ;;  %v9663_v22 = vld [vmem:[%s12328_s2 + $0x14] sm:$0xf] }
 0x21d   : > { %v8150_v46 = vcombine.low %v2234_v6, %v2245_v3  ;;  %9374 = vset.pattern.permute.xlu0 %v12645_v51  ;;  %8961 = vmatpush3.bf16.msra.mxu0 %v9444_v60  ;;  %v6133_v48 = vpop.permute.xlu0 %6132  ;;  %v12652_v6 = vld [vmem:[#allocation9_spill] sm:$0xff] }
 0x21e   : > { %v6141_v26 = vrot.slane %v6133_v48, %v10094_v29  ;;  %v12657_v48 = vld [vmem:[#allocation45_spill] sm:$0xff] }
 0x21f   : > { %v2525_v61 = vmul.bf16 %v8150_v46, %v12648_v8  ;;  %v6078_v57 = vpop.permute.xlu1 %6077 }
 0x220   : > { %v6086_v42 = vrot.slane %v6078_v57, %v10094_v29  ;;  %9345 = vset.pattern.permute.xlu1 %v9692_v2 }
 0x221   : > { %2867 = vperm.xlu1 %9345, %v9663_v22   ;;  %8735 = vmatmul.mubr.msk.bf16.gmra.mrb[12].mxu1 %vm1549_vm0, %v2525_v61  ;;  %v6144_v60 = vpop.permute.xlu0 %6143 }
 0x222   : > { %v8345_v17 = vcombine.low %v6086_v42, %v6097_v35  ;;  %v9666_v42 = vld [vmem:[%s12328_s2 + $0x28] sm:$0xf] }
 0x224   : > { %v6377_v34 = vmul.bf16 %v8345_v17, %v12649_v20  ;;  %v2248_v13 = vpop.permute.xlu1 %2247  ;;  %v12654_v20 = vld [vmem:[#allocation10_spill] sm:$0xff] }
 0x225   : > { %9346 = vset.pattern.permute.xlu1 %v12645_v51  ;;  %v2256_v40 = vrot.slane %v2248_v13, %v10094_v29  ;;  %v6177_v17 = vpop.permute.xlu0 %6176 }
 0x226   : > { %6722 = vperm.xlu1 %9346, %v9663_v22   ;;  %8935 = vmatmul.mubr.msk.bf16.gmra.mrb[12].mxu0 %vm1549_vm0, %v6377_v34  ;;  %v6152_v22 = vrot.slane %v6144_v60, %v10094_v29 }
 0x228   : > { %v2259_v5 = vpop.permute.xlu1 %2258 }
 0x229   : > { %v2267_v43 = vrot.slane %v2259_v5, %v10094_v29 }
 0x22a   : > { %9347 = vset.pattern.permute.xlu1 %v9692_v2 }
 0x22b   : > { %v8151_v31 = vcombine.low %v2256_v40, %v2267_v43  ;;  %2878 = vperm.xlu1 %9347, %v9664_v7   ;;  %v6188_v43 = vpop.permute.xlu0 %6187 }
 0x22d   : > { %v2526_v39 = vmul.bf16 %v8151_v31, %v12650_v45  ;;  %v6111_v41 = vpop.permute.xlu1 %6110  ;;  %v12655_v31 = vld [vmem:[#allocation43_spill] sm:$0xff] }
 0x22e   : > { %v6119_v28 = vrot.slane %v6111_v41, %v10094_v29 }
 0x22f   : > { %9348 = vset.pattern.permute.xlu1 %v12645_v51  ;;  %8738 = vmatprep.mubr.msk.bf16.mxu1 %vm1549_vm0, %v2526_v39  ;;  %v6221_v41 = vpop.permute.xlu0 %6220 }
 0x230   : > { %v8346_v32 = vcombine.low %v6108_v12, %v6119_v28  ;;  %6733 = vperm.xlu1 %9348, %v9664_v7  }
 0x232   : > { %v6378_v24 = vmul.bf16 %v8346_v32, %v12651_v37  ;;  %v2281_v25 = vpop.permute.xlu1 %2280  ;;  %v6185_v32 = vrot.slane %v6177_v17, %v10094_v29 }
 0x233   : > { %v2289_v9 = vrot.slane %v2281_v25, %v10094_v29 }
 0x234   : > { %6744 = vperm.xlu1 %9348, %v11552_v44   ;;  %8938 = vmatprep.mubr.msk.bf16.mxu0 %vm1549_vm0, %v6378_v24 }
 0x235   : > { %v8152_v0 = vcombine.low %v2278_v33, %v2289_v9  ;;  %v12656_v33 = vld [vmem:[#allocation11_spill] sm:$0xff]  ;;  %v11778_v9 = vpop.permute.xlu0 %6231 }
 0x237   : > { %v2527_v38 = vmul.bf16 %v8152_v0, %v12652_v6  ;;  %v6122_v47 = vpop.permute.xlu1 %6121 }
 0x238   : > { %v6130_v19 = vrot.slane %v6122_v47, %v10094_v29  ;;  %9349 = vset.pattern.permute.xlu1 %v9692_v2 }
 0x239   : > { %2911 = vperm.xlu1 %9349, %v9665_v4   ;;  %8739 = vmatmul.mubr.msk.bf16.gmra.mrb[16].mxu1 %vm1549_vm0, %v2527_v38  ;;  %v11783_v47 = vpop.permute.xlu0 %6264 }
 0x23a   : > { %v8347_v44 = vcombine.low %v6130_v19, %v6141_v26 }
 0x23c   : > { %v6379_v3 = vmul.bf16 %v8347_v44, %v12653_v16  ;;  %v2292_v21 = vpop.permute.xlu1 %2291  ;;  %v9668_v16 = vld [vmem:[%s12328_s2 + $0x38] sm:$0xf] }
 0x23d   : > { %9350 = vset.pattern.permute.xlu1 %v12645_v51  ;;  %v2300_v35 = vrot.slane %v2292_v21, %v10094_v29  ;;  %v12658_v21 = vld [vmem:[#allocation21_spill] sm:$0xff] }
 0x23e   : > { %6766 = vperm.xlu1 %9350, %v9665_v4   ;;  %8939 = vmatmul.mubr.msk.bf16.gmra.mrb[16].mxu0 %vm1549_vm0, %v6379_v3  ;;  %v6196_v3 = vrot.slane %v6188_v43, %v10094_v29  ;;  %v6229_v43 = vrot.slane %v6221_v41, %v10094_v29 }
 0x240   : > { %v2303_v46 = vpop.permute.xlu1 %2302 }
 0x241   : > { %v2311_v61 = vrot.slane %v2303_v46, %v10094_v29 }
 0x242   : > { %9351 = vset.pattern.permute.xlu1 %v9692_v2 }
 0x243   : > { %v8153_v57 = vcombine.low %v2300_v35, %v2311_v61  ;;  %2922 = vperm.xlu1 %9351, %v9666_v42   ;;  %v11794_v61 = vpop.permute.xlu0 %6667 }
 0x245   : > { %v2528_v34 = vmul.bf16 %v8153_v57, %v12654_v20  ;;  %v6155_v13 = vpop.permute.xlu1 %6154 }
 0x246   : > { %v6163_v5 = vrot.slane %v6155_v13, %v10094_v29 }
 0x247   : > { %9352 = vset.pattern.permute.xlu1 %v12645_v51  ;;  %8742 = vmatprep.mubr.msk.bf16.mxu1 %vm1549_vm0, %v2528_v34 }
 0x248   : > { %v8348_v40 = vcombine.low %v6152_v22, %v6163_v5  ;;  %6777 = vperm.xlu1 %9352, %v9666_v42   ;;  %v2366_v42 = vrot.slane %v11591_v18, %v10094_v29  ;;  %v12659_v22 = vld [vmem:[#allocation47_spill] sm:$0xff]  ;;  %v11804_v5 = vpop.permute.xlu0 %6711 }
 0x24a   : > { %v6380_v7 = vmul.bf16 %v8348_v40, %v12655_v31  ;;  %v2325_v12 = vpop.permute.xlu1 %2324 }
 0x24b   : > { %v2333_v39 = vrot.slane %v2325_v12, %v10094_v29 }
 0x24c   : > { %6788 = vperm.xlu1 %9352, %v11585_v30   ;;  %8942 = vmatprep.mubr.msk.bf16.mxu0 %vm1549_vm0, %v6380_v7  ;;  %v9669_v7 = vld [vmem:[%s12328_s2 + $0x44] sm:$0xf]  ;;  %v11814_v12 = vpop.permute.xlu0 %6755 }
 0x24d   : > { %v8154_v28 = vcombine.low %v2322_v50, %v2333_v39  ;;  %v12660_v39 = vld [vmem:[#allocation49_spill] sm:$0xff] }
 0x24f   : > { %v2529_v37 = vmul.bf16 %v8154_v28, %v12656_v33  ;;  %v6166_v24 = vpop.permute.xlu1 %6165 }
 0x250   : > { %v6174_v25 = vrot.slane %v6166_v24, %v10094_v29  ;;  %9353 = vset.pattern.permute.xlu1 %v9692_v2 }
 0x251   : > { %2955 = vperm.xlu1 %9353, %v9667_v55   ;;  %8743 = vmatmul.mubr.msk.bf16.gmra.mrb[20].mxu1 %vm1549_vm0, %v2529_v37  ;;  %v9670_v37 = vld [vmem:[%s10088_s11 + $0x78] sm:$0xf] }
 0x252   : > { %v8349_v30 = vcombine.low %v6174_v25, %v6185_v32  ;;  %v8142_v24 = vcombine.low %v9670_v37, %v9670_v37  ;;  %v11820_v25 = vpop.permute.xlu0 %6799 }
 0x254   : > { %v6381_v0 = vmul.bf16 %v8349_v30, %v12657_v48  ;;  %v2336_v26 = vpop.permute.xlu1 %2335 }
 0x255   : > { %9354 = vset.pattern.permute.xlu1 %v12645_v51  ;;  %v2344_v19 = vrot.slane %v2336_v26, %v10094_v29  ;;  %v6240_v26 = vrot.slane %v11778_v9, %v10094_v29 }
 0x256   : > { %6810 = vperm.xlu1 %9354, %v9667_v55   ;;  %8943 = vmatmul.mubr.msk.bf16.gmra.mrb[20].mxu0 %vm1549_vm0, %v6381_v0  ;;  %v9671_v0 = vld [vmem:[%s12328_s2 + $0x48] sm:$0xf] }
 0x258   : > { %v2347_v38 = vpop.permute.xlu1 %2346 }
 0x259   : > { %v2355_v4 = vrot.slane %v2347_v38, %v10094_v29  ;;  %v2047_v38 = vshll.u32 %v8142_v24, 16 }
 0x25a   : > { %9355 = vset.pattern.permute.xlu1 %v9692_v2 }
 0x25b   : > { %v8155_v44 = vcombine.low %v2344_v19, %v2355_v4  ;;  %2966 = vperm.xlu1 %9355, %v9668_v16   ;;  %v12661_v19 = vld [vmem:[#allocation23_spill] sm:$0xff] }
 0x25d   : > { %v2530_v46 = vmul.bf16 %v8155_v44, %v12658_v21  ;;  %v6199_v60 = vpop.permute.xlu1 %6198 }
 0x25e   : > { %v6207_v35 = vrot.slane %v6199_v60, %v10094_v29  ;;  %v2049_v60 = vrot.slane %v2047_v38, 1 }
 0x25f   : > { %9356 = vset.pattern.permute.xlu1 %v12645_v51  ;;  %8746 = vmatprep.mubr.msk.bf16.mxu1 %vm1549_vm0, %v2530_v46 }
 0x260   : > { %v8350_v57 = vcombine.low %v6196_v3, %v6207_v35  ;;  %6821 = vperm.xlu1 %9356, %v9668_v16   ;;  %v11832_v3 = vpop.permute.xlu0 %6843  ;;  %v2410_v35 = vrot.slane %v11601_v23, %v10094_v29 }
 0x262   : > { %v6382_v17 = vmul.bf16 %v8350_v57, %v12659_v22  ;;  %v2369_v34 = vpop.permute.xlu1 %2368  ;;  %v12662_v57 = vld [vmem:[#allocation14_spill] sm:$0xff] }
 0x263   : > { %v2377_v13 = vrot.slane %v2369_v34, %v10094_v29 }
 0x264   : > { %6832 = vperm.xlu1 %9356, %v11607_v52   ;;  %8946 = vmatprep.mubr.msk.bf16.mxu0 %vm1549_vm0, %v6382_v17  ;;  %v12663_v17 = vld [vmem:[#allocation22_spill] sm:$0xff] }
 0x265   : > { %v8156_v40 = vcombine.low %v2366_v42, %v2377_v13  ;;  %v2050_v34 = vsel %vm2001_vm5, %v12663_v17, %v2049_v60  ;;  %v11844_v13 = vpop.permute.xlu0 %6887 }
 0x267   : > { %v2531_v50 = vmul.bf16 %v8156_v40, %v11271_v63  ;;  %v6210_v31 = vpop.permute.xlu1 %6209 }
 0x268   : > { %v6218_v18 = vrot.slane %v6210_v31, %v10094_v29  ;;  %9357 = vset.pattern.permute.xlu1 %v9692_v2 }
 0x269   : > { %2999 = vperm.xlu1 %9357, %v9669_v7   ;;  %8747 = vmatmul.mubr.msk.bf16.gmra.mrb[24].mxu1 %vm1549_vm0, %v2531_v50 }
 0x26a   : > { %v8351_v52 = vcombine.low %v6218_v18, %v6229_v43  ;;  %v6273_v43 = vrot.slane %v11783_v47, %v10094_v29  ;;  %v12664_v18 = vld [vmem:[#allocation24_spill] sm:$0xff] }
 0x26c   : > { %v6383_v41 = vmul.bf16 %v8351_v52, %v12660_v39  ;;  %v2380_v28 = vpop.permute.xlu1 %2379  ;;  %v12665_v52 = vld [vmem:[#allocation16_spill] sm:$0xff] }
 0x26d   : > { %9358 = vset.pattern.permute.xlu1 %v12645_v51  ;;  %v2388_v55 = vrot.slane %v2380_v28, %v10094_v29 }
 0x26e   : > { %6854 = vperm.xlu1 %9358, %v9669_v7   ;;  %8947 = vmatmul.mubr.msk.bf16.gmra.mrb[24].mxu0 %vm1549_vm0, %v6383_v41 }
 0x270   : > { %v2391_v32 = vpop.permute.xlu1 %2390 }
 0x271   : > { %v2399_v30 = vrot.slane %v2391_v32, %v10094_v29 }
 0x272   : > { %9359 = vset.pattern.permute.xlu1 %v9692_v2 }
 0x273   : > { %v8157_v48 = vcombine.low %v2388_v55, %v2399_v30  ;;  %3010 = vperm.xlu1 %9359, %v9671_v0   ;;  %v9672_v55 = vld [vmem:[%s12328_s2 + $0x58] sm:$0xf]  ;;  %v6676_v30 = vrot.slane %v11794_v61, %v10094_v29  ;;  %v12666_v61 = vld [vmem:[#allocation54_spill] sm:$0xff] }
 0x275   : > { %v2532_v4 = vmul.bf16 %v8157_v48, %v12661_v19  ;;  %v6243_v44 = vpop.permute.xlu1 %6242 }
 0x276   : > { %v6251_v16 = vrot.slane %v6243_v44, %v10094_v29 }
 0x277   : > { %9360 = vset.pattern.permute.xlu1 %v12645_v51  ;;  %8750 = vmatprep.mubr.msk.bf16.mxu1 %vm1549_vm0, %v2532_v4 }
 0x278   : > { %v8352_v46 = vcombine.low %v6240_v26, %v6251_v16  ;;  %6865 = vperm.xlu1 %9360, %v9671_v0  }
 0x27a   : > { %v6384_v9 = vmul.bf16 %v8352_v46, %v12662_v57  ;;  %v2413_v42 = vpop.permute.xlu1 %2412 }
 0x27b   : > { %v2421_v22 = vrot.slane %v2413_v42, %v10094_v29 }
 0x27c   : > { %6876 = vperm.xlu1 %9360, %v11633_v36   ;;  %8950 = vmatprep.mubr.msk.bf16.mxu0 %vm1549_vm0, %v6384_v9  ;;  %v11852_v36 = vpop.permute.xlu0 %6931 }
 0x27d   : > { %v8158_v40 = vcombine.low %v2410_v35, %v2421_v22 }
 0x27f   : > { %v2533_v50 = vmul.bf16 %v8158_v40, %v2050_v34  ;;  %v6254_v23 = vpop.permute.xlu1 %6253 }
 0x280   : > { %v6262_v31 = vrot.slane %v6254_v23, %v10094_v29  ;;  %9361 = vset.pattern.permute.xlu1 %v9692_v2  ;;  %v11858_v28 = vpop.permute.xlu0 %6975 }
 0x281   : > { %3043 = vperm.xlu1 %9361, %v12664_v18   ;;  %8751 = vmatmul.mubr.msk.bf16.gmra.mrb[28].mxu1 %vm1549_vm0, %v2533_v50 }
 0x282   : > { %v8353_v7 = vcombine.low %v6262_v31, %v6273_v43  ;;  %v9673_v31 = vld [vmem:[%s12328_s2 + $0x68] sm:$0xf] }
 0x284   : > { %v6385_v39 = vmul.bf16 %v8353_v7, %v12665_v52  ;;  %v2813_v41 = vpop.permute.xlu1 %2812  ;;  %v2846_v38 = vpop.permute.xlu0 %2845 }
 0x285   : > { %9362 = vset.pattern.permute.xlu1 %v12645_v51  ;;  %v2821_v32 = vrot.slane %v2813_v41, %v10094_v29  ;;  %v2854_v44 = vrot.slane %v2846_v38, %v10094_v29 }
 0x286   : > { %6898 = vperm.xlu1 %9362, %v12664_v18   ;;  %8951 = vmatmul.mubr.msk.bf16.gmra.mrb[28].mxu0 %vm1549_vm0, %v6385_v39  ;;  %v12667_v18 = vld [vmem:[#allocation57_spill] sm:$0xff] }
 0x288   : > { %v2824_v47 = vpop.permute.xlu1 %2823  ;;  %v2857_v17 = vpop.permute.xlu0 %2856 }
 0x289   : > { %v2832_v37 = vrot.slane %v2824_v47, %v10094_v29  ;;  %v2865_v34 = vrot.slane %v2857_v17, %v10094_v29 }
 0x28a   : > { %9363 = vset.pattern.permute.xlu1 %v9692_v2 }
 0x28b   : > { %v8179_v24 = vcombine.low %v2821_v32, %v2832_v37  ;;  %3054 = vperm.xlu1 %9363, %v9672_v55  }
 0x28c   : > { %v2890_v39 = vpop.permute.xlu0 %2889 }
 0x28d   : > { %v3259_v48 = vmul.bf16 %v8179_v24, %v12644_v56  ;;  %v6679_v0 = vpop.permute.xlu1 %6678  ;;  %v2898_v47 = vrot.slane %v2890_v39, %v10094_v29 }
 0x28e   : > { %v6687_v26 = vrot.slane %v6679_v0, %v10094_v29 }
 0x28f   : > { %9364 = vset.pattern.permute.xlu1 %v12645_v51  ;;  %8762 = vmatprep.mubr.msk.bf16.mxu1 %vm1549_vm0, %v3259_v48 }
 0x290   : > { %v8375_v4 = vcombine.low %v6676_v30, %v6687_v26  ;;  %6909 = vperm.xlu1 %9364, %v9672_v55   ;;  %v12668_v55 = vld [vmem:[#allocation58_spill] sm:$0xff]  ;;  %v2901_v38 = vpop.permute.xlu0 %2900 }
 0x292   : > { %v7114_v16 = vmul.bf16 %v8375_v4, %v11069_v1  ;;  %v2835_v46 = vpop.permute.xlu1 %2834  ;;  %v2909_v4 = vrot.slane %v2901_v38, %v10094_v29 }
 0x293   : > { %v2843_v60 = vrot.slane %v2835_v46, %v10094_v29 }
 0x294   : > { %6920 = vperm.xlu1 %9364, %v11421_v49   ;;  %8962 = vmatprep.mubr.msk.bf16.mxu0 %vm1549_vm0, %v7114_v16 }
 0x295   : > { %v8180_v56 = vcombine.low %v2843_v60, %v2854_v44 }
 0x297   : > { %v3260_v35 = vmul.bf16 %v8180_v56, %v12666_v61  ;;  %v6690_v9 = vpop.permute.xlu1 %6689  ;;  %v6764_v56 = vrot.slane %v11814_v12, %v10094_v29  ;;  %v12669_v61 = vld [vmem:[#allocation63_spill] sm:$0xff] }
 0x298   : > { %9365 = vset.pattern.permute.xlu1 %v9692_v2  ;;  %v6698_v1 = vrot.slane %v6690_v9, %v10094_v29 }
 0x299   : > { %3087 = vperm.xlu1 %9365, %v11483_v59   ;;  %8763 = vmatmul.mubr.msk.bf16.vlgmr.msra.gmra.mrb[0].mxu1 %vm1549_vm0, %v3260_v35 }
 0x29b   : > { %v6701_v42 = vpop.permute.xlu1 %6700 }
 0x29c   : > { %v6709_v22 = vrot.slane %v6701_v42, %v10094_v29  ;;  %v2934_v42 = vpop.permute.xlu0 %2933 }
 0x29d   : > { %9366 = vset.pattern.permute.xlu1 %v12645_v51 }
 0x29e   : > { %v8376_v49 = vcombine.low %v6698_v1, %v6709_v22  ;;  %6942 = vperm.xlu1 %9366, %v11483_v59   ;;  %v6720_v59 = vrot.slane %v11804_v5, %v10094_v29 }
 0x2a0   : > { %v7115_v40 = vmul.bf16 %v8376_v49, %v11085_v53  ;;  %v2868_v43 = vpop.permute.xlu1 %2867  ;;  %v12670_v49 = vld [vmem:[#allocation64_spill] sm:$0xff] }
 0x2a1   : > { %v2876_v50 = vrot.slane %v2868_v43, %v10094_v29 }
 0x2a2   : > { %9367 = vset.pattern.permute.xlu1 %v9692_v2  ;;  %8963 = vmatmul.mubr.msk.bf16.vlgmr.msra.gmra.mrb[0].mxu0 %vm1549_vm0, %v7115_v40 }
 0x2a3   : > { %v8181_v23 = vcombine.low %v2865_v34, %v2876_v50  ;;  %3098 = vperm.xlu1 %9367, %v9673_v31   ;;  %v2945_v50 = vpop.permute.xlu0 %2944 }
 0x2a5   : > { %v3261_v7 = vmul.bf16 %v8181_v23, %v12667_v18  ;;  %v6723_v52 = vpop.permute.xlu1 %6722  ;;  %v2953_v23 = vrot.slane %v2945_v50, %v10094_v29 }
 0x2a6   : > { %v6731_v53 = vrot.slane %v6723_v52, %v10094_v29  ;;  %v12671_v52 = vld [vmem:[#allocation69_spill] sm:$0xff] }
 0x2a7   : > { %9368 = vset.pattern.permute.xlu1 %v12645_v51  ;;  %8766 = vmatprep.mubr.msk.bf16.mxu1 %vm1549_vm0, %v3261_v7  ;;  %v6808_v7 = vrot.slane %v11820_v25, %v10094_v29  ;;  %v12672_v25 = vld [vmem:[#allocation70_spill] sm:$0xff] }
 0x2a8   : > { %v8377_v41 = vcombine.low %v6720_v59, %v6731_v53  ;;  %6953 = vperm.xlu1 %9368, %v9673_v31  }
 0x2aa   : > { %v7116_v32 = vmul.bf16 %v8377_v41, %v11105_v14  ;;  %v2879_v37 = vpop.permute.xlu1 %2878 }
 0x2ab   : > { %v2887_v24 = vrot.slane %v2879_v37, %v10094_v29 }
 0x2ac   : > { %6964 = vperm.xlu1 %9368, %v11525_v58   ;;  %8966 = vmatprep.mubr.msk.bf16.mxu0 %vm1549_vm0, %v7116_v32 }
 0x2ad   : > { %v8182_v5 = vcombine.low %v2887_v24, %v2898_v47  ;;  %v2978_v47 = vpop.permute.xlu0 %2977 }
 0x2af   : > { %v3262_v30 = vmul.bf16 %v8182_v5, %v12668_v55  ;;  %v6734_v48 = vpop.permute.xlu1 %6733 }
 0x2b0   : > { %9369 = vset.pattern.permute.xlu1 %v9692_v2  ;;  %v6742_v14 = vrot.slane %v6734_v48, %v10094_v29 }
 0x2b1   : > { %3131 = vperm.xlu1 %9369, %v11579_v62   ;;  %8767 = vmatmul.mubr.msk.bf16.gmra.mrb[4].mxu1 %vm1549_vm0, %v3262_v30  ;;  %v2989_v38 = vpop.permute.xlu0 %2988 }
 0x2b3   : > { %v6745_v0 = vpop.permute.xlu1 %6744 }
 0x2b4   : > { %v6753_v26 = vrot.slane %v6745_v0, %v10094_v29 }
 0x2b5   : > { %9371 = vset.pattern.permute.xlu1 %v12645_v51 }
 0x2b6   : > { %v8378_v58 = vcombine.low %v6742_v14, %v6753_v26  ;;  %6986 = vperm.xlu1 %9371, %v11579_v62  }
 0x2b8   : > { %v7117_v44 = vmul.bf16 %v8378_v58, %v11124_v15  ;;  %v2912_v16 = vpop.permute.xlu1 %2911 }
 0x2b9   : > { %v2920_v46 = vrot.slane %v2912_v16, %v10094_v29 }
 0x2ba   : > { %9372 = vset.pattern.permute.xlu1 %v9692_v2  ;;  %8967 = vmatmul.mubr.msk.bf16.gmra.mrb[4].mxu0 %vm1549_vm0, %v7117_v44  ;;  %v2942_v2 = vrot.slane %v2934_v42, %v10094_v29 }
 0x2bb   : > { %v8183_v60 = vcombine.low %v2909_v4, %v2920_v46  ;;  %3142 = vperm.xlu1 %9372, %v11627_v54  }
 0x2bd   : > { %v3263_v35 = vmul.bf16 %v8183_v60, %v12669_v61  ;;  %v6767_v62 = vpop.permute.xlu1 %6766  ;;  %v12673_v60 = vld [vmem:[#allocation15_spill] sm:$0xff] }
 0x2be   : > { %v6775_v9 = vrot.slane %v6767_v62, %v10094_v29 }
 0x2bf   : > { %9373 = vset.pattern.permute.xlu1 %v12645_v51  ;;  %8770 = vmatprep.mubr.msk.bf16.mxu1 %vm1549_vm0, %v3263_v35  ;;  %v6852_v35 = vrot.slane %v11832_v3, %v10094_v29 }
 0x2c0   : > { %v8379_v15 = vcombine.low %v6764_v56, %v6775_v9  ;;  %6997 = vperm.xlu1 %9373, %v11627_v54   ;;  %v3022_v9 = vpop.permute.xlu0 %3021 }
 0x2c2   : > { %v7118_v1 = vmul.bf16 %v8379_v15, %v11143_v27  ;;  %v2923_v22 = vpop.permute.xlu1 %2922  ;;  %v3030_v15 = vrot.slane %v3022_v9, %v10094_v29 }
 0x2c3   : > { %v2931_v12 = vrot.slane %v2923_v22, %v10094_v29 }
 0x2c4   : > { %7008 = vperm.xlu1 %9373, %v11614_v11   ;;  %8970 = vmatprep.mubr.msk.bf16.mxu0 %vm1549_vm0, %v7118_v1  ;;  %v3033_v50 = vpop.permute.xlu0 %3032 }
 0x2c5   : > { %v8184_v17 = vcombine.low %v2931_v12, %v2942_v2  ;;  %v9447_v12 = vld [vmem:[%s12330_s4 + $0x8] sm:$0xff]  }
 0x2c7   : > { %v3264_v34 = vmul.bf16 %v8184_v17, %v12670_v49  ;;  %v6778_v51 = vpop.permute.xlu1 %6777  ;;  %v12674_v17 = vld [vmem:[#allocation71_spill] sm:$0xff] }
 0x2c8   : > { %v6786_v54 = vrot.slane %v6778_v51, %v10094_v29 }
 0x2c9   : > { %8771 = vmatmul.mubr.msk.bf16.gmra.mrb[8].mxu1 %vm1549_vm0, %v3264_v34 }
 0x2cb   : > { %v6789_v40 = vpop.permute.xlu1 %6788 }
 0x2cc   : > { %v6797_v43 = vrot.slane %v6789_v40, %v10094_v29 }
 0x2ce   : > { %v8380_v27 = vcombine.low %v6786_v54, %v6797_v43  ;;  %v9449_v43 = vld [vmem:[%s12330_s4 + $0x18] sm:$0xff]  }
 0x2d0   : > { %v7119_v31 = vmul.bf16 %v8380_v27, %v12648_v8  ;;  %v2956_v11 = vpop.permute.xlu1 %2955  ;;  %v2986_v8 = vrot.slane %v2978_v47, %v10094_v29  ;;  %v3066_v47 = vpop.permute.xlu0 %3065 }
 0x2d1   : > { %v2964_v59 = vrot.slane %v2956_v11, %v10094_v29 }
 0x2d2   : > { %8971 = vmatmul.mubr.msk.bf16.gmra.mrb[8].mxu0 %vm1549_vm0, %v7119_v31 }
 0x2d3   : > { %v8185_v18 = vcombine.low %v2953_v23, %v2964_v59  ;;  %v3041_v23 = vrot.slane %v3033_v50, %v10094_v29  ;;  %v12681_v50 = vld [vmem:[#allocation20_spill] sm:$0xff] }
 0x2d5   : > { %v3265_v53 = vmul.bf16 %v8185_v18, %v12671_v52  ;;  %v6811_v39 = vpop.permute.xlu1 %6810 }
 0x2d6   : > { %v6819_v41 = vrot.slane %v6811_v39, %v10094_v29  ;;  %v6896_v39 = vrot.slane %v11844_v13, %v10094_v29 }
 0x2d7   : > { %8774 = vmatprep.mubr.msk.bf16.mxu1 %vm1549_vm0, %v3265_v53 }
 0x2d8   : > { %v8381_v32 = vcombine.low %v6808_v7, %v6819_v41  ;;  %v12675_v7 = vld [vmem:[#allocation17_spill] sm:$0xff] }
 0x2da   : > { %v7120_v37 = vmul.bf16 %v8381_v32, %v12650_v45  ;;  %v2967_v24 = vpop.permute.xlu1 %2966  ;;  %v2997_v45 = vrot.slane %v2989_v38, %v10094_v29 }
 0x2db   : > { %v2975_v5 = vrot.slane %v2967_v24, %v10094_v29 }
 0x2dc   : > { %8974 = vmatprep.mubr.msk.bf16.mxu0 %vm1549_vm0, %v7120_v37 }
 0x2dd   : > { %v8186_v55 = vcombine.low %v2975_v5, %v2986_v8 }
 0x2df   : > { %v3266_v30 = vmul.bf16 %v8186_v55, %v12672_v25  ;;  %v6822_v48 = vpop.permute.xlu1 %6821  ;;  %v12676_v55 = vld [vmem:[#allocation4_spill] sm:$0xff] }
 0x2e0   : > { %v6830_v14 = vrot.slane %v6822_v48, %v10094_v29 }
 0x2e1   : > { %8775 = vmatmul.mubr.msk.bf16.gmra.mrb[12].mxu1 %vm1549_vm0, %v3266_v30 }
 0x2e3   : > { %v6833_v0 = vpop.permute.xlu1 %6832 }
 0x2e4   : > { %v6841_v26 = vrot.slane %v6833_v0, %v10094_v29 }
 0x2e6   : > { %v8382_v58 = vcombine.low %v6830_v14, %v6841_v26  ;;  %v3077_v26 = vpop.permute.xlu0 %3076 }
 0x2e8   : > { %v7121_v4 = vmul.bf16 %v8382_v58, %v12652_v6  ;;  %v3000_v44 = vpop.permute.xlu1 %2999  ;;  %v9446_v6 = vld [vmem:[%s12330_s4] sm:$0xff]   ;;  %v3085_v58 = vrot.slane %v3077_v26, %v10094_v29 }
 0x2e9   : > { %v3008_v16 = vrot.slane %v3000_v44, %v10094_v29  ;;  %8994 = vmatprep.subr.bf16.mxu1 %v9446_v6  ;;  %v12677_v44 = vld [vmem:[#allocation6_spill] sm:$0xff] }
 0x2ea   : > { %8975 = vmatmul.mubr.msk.bf16.gmra.mrb[12].mxu0 %vm1549_vm0, %v7121_v4  ;;  %8995 = vmatpush3.bf16.msra.mxu1 %v9446_v6 }
 0x2eb   : > { %v8187_v46 = vcombine.low %v2997_v45, %v3008_v16  ;;  %8996 = vmatprep.subr.bf16.mxu1 %v9447_v12 }
 0x2ed   : > { %v3267_v56 = vmul.bf16 %v8187_v46, %v12673_v60  ;;  %v6855_v61 = vpop.permute.xlu1 %6854  ;;  %v6940_v60 = vrot.slane %v11852_v36, %v10094_v29 }
 0x2ee   : > { %v6863_v62 = vrot.slane %v6855_v61, %v10094_v29  ;;  %8997 = vmatpush3.bf16.msra.mxu1 %v9447_v12 }
 0x2ef   : > { %8778 = vmatprep.mubr.msk.bf16.mxu1 %vm1549_vm0, %v3267_v56 }
 0x2f0   : > { %v8383_v42 = vcombine.low %v6852_v35, %v6863_v62 }
 0x2f2   : > { %v7122_v2 = vmul.bf16 %v8383_v42, %v12654_v20  ;;  %v3011_v1 = vpop.permute.xlu1 %3010  ;;  %v9448_v20 = vld [vmem:[%s12330_s4 + $0x10] sm:$0xff]  }
 0x2f3   : > { %v3019_v22 = vrot.slane %v3011_v1, %v10094_v29  ;;  %8998 = vmatprep.subr.bf16.mxu1 %v9448_v20 }
 0x2f4   : > { %8978 = vmatprep.mubr.msk.bf16.mxu0 %vm1549_vm0, %v7122_v2  ;;  %8999 = vmatpush3.bf16.msra.mxu1 %v9448_v20 }
 0x2f5   : > { %v8188_v3 = vcombine.low %v3019_v22, %v3030_v15  ;;  %9000 = vmatprep.subr.bf16.mxu1 %v9449_v43  ;;  %v12678_v15 = vld [vmem:[#allocation7_spill] sm:$0xff] }
 0x2f7   : > { %v3268_v49 = vmul.bf16 %v8188_v3, %v12674_v17  ;;  %v6866_v34 = vpop.permute.xlu1 %6865  ;;  %v12679_v17 = vld [vmem:[#allocation25_spill] sm:$0xff] }
 0x2f8   : > { %v6874_v40 = vrot.slane %v6866_v34, %v10094_v29  ;;  %9001 = vmatpush3.bf16.msra.mxu1 %v9449_v43 }
 0x2f9   : > { %8779 = vmatmul.mubr.msk.bf16.gmra.mrb[16].mxu1 %vm1549_vm0, %v3268_v49 }
 0x2fb   : > { %v6877_v51 = vpop.permute.xlu1 %6876 }
 0x2fc   : > { %v6885_v54 = vrot.slane %v6877_v51, %v10094_v29 }
 0x2fe   : > { %v8384_v27 = vcombine.low %v6874_v40, %v6885_v54  ;;  %v12680_v54 = vshrl.u32 %v12662_v57, 16 }
 0x300   : > { %v7123_v31 = vmul.bf16 %v8384_v27, %v12656_v33  ;;  %v3044_v11 = vpop.permute.xlu1 %3043  ;;  %v3074_v33 = vrot.slane %v3066_v47, %v10094_v29  ;;  %v2807_v43 = vrot.slane %v12680_v54, 7 }
 0x301   : > { %v3052_v59 = vrot.slane %v3044_v11, %v10094_v29 }
 0x302   : > { %8979 = vmatmul.mubr.msk.bf16.gmra.mrb[16].mxu0 %vm1549_vm0, %v7123_v31  ;;  %v6984_v31 = vrot.slane %v11858_v28, %v10094_v29 }
 0x303   : > { %v8189_v18 = vcombine.low %v3041_v23, %v3052_v59 }
 0x305   : > { %v3269_v52 = vmul.bf16 %v8189_v18, %v12675_v7  ;;  %v6899_v53 = vpop.permute.xlu1 %6898  ;;  %v12682_v7 = vshll.u32 %v12662_v57, 16 }
 0x306   : > { %v6907_v41 = vrot.slane %v6899_v53, %v10094_v29  ;;  %v9674_v53 = vld [vmem:[%s10088_s11 + $0x8] sm:$0xf] }
 0x307   : > { %8782 = vmatprep.mubr.msk.bf16.mxu1 %vm1549_vm0, %v3269_v52  ;;  %v2808_v52 = vor.u32 %v2807_v43, %v12682_v7 }
 0x308   : > { %v8385_v32 = vcombine.low %v6896_v39, %v6907_v41  ;;  %v8374_v39 = vcombine.low %v9674_v53, %v9674_v53 }
 0x30a   : > { %v7124_v8 = vmul.bf16 %v8385_v32, %v12658_v21  ;;  %v3055_v37 = vpop.permute.xlu1 %3054 }
 0x30b   : > { %v3063_v24 = vrot.slane %v3055_v37, %v10094_v29 }
 0x30c   : > { %8982 = vmatprep.mubr.msk.bf16.mxu0 %vm1549_vm0, %v7124_v8  ;;  %v12683_v8 = vld [vmem:[#allocation5_spill] sm:$0xff] }
 0x30d   : > { %v8190_v5 = vcombine.low %v3063_v24, %v3074_v33  ;;  %v2809_v28 = vsel %vm394_vm2, %v12683_v8, %v2808_v52  ;;  %v6661_v24 = vshll.u32 %v8374_v39, 16 }
 0x30f   : > { %v3270_v25 = vmul.bf16 %v8190_v5, %v12676_v55  ;;  %v6910_v30 = vpop.permute.xlu1 %6909  ;;  %v6663_v57 = vrot.slane %v6661_v24, 1 }
 0x310   : > { %v6918_v48 = vrot.slane %v6910_v30, %v10094_v29 }
 0x311   : > { %8783 = vmatmul.mubr.msk.bf16.gmra.mrb[20].mxu1 %vm1549_vm0, %v3270_v25 }
 0x313   : > { %v6921_v13 = vpop.permute.xlu1 %6920 }
 0x314   : > { %v6929_v0 = vrot.slane %v6921_v13, %v10094_v29  ;;  %v12684_v13 = vld [vmem:[#allocation19_spill] sm:$0xff] }
 0x316   : > { %v8386_v14 = vcombine.low %v6918_v48, %v6929_v0  ;;  %v6664_v48 = vsel %vm2001_vm5, %v12684_v13, %v6663_v57 }
 0x318   : > { %v7125_v21 = vmul.bf16 %v8386_v14, %v11271_v63  ;;  %v3088_v38 = vpop.permute.xlu1 %3087  ;;  %v3110_v63 = vpop.permute.xlu0 %3109 }
 0x319   : > { %v3096_v45 = vrot.slane %v3088_v38, %v10094_v29  ;;  %v3118_v9 = vrot.slane %v3110_v63, %v10094_v29 }
 0x31a   : > { %8983 = vmatmul.mubr.msk.bf16.gmra.mrb[20].mxu0 %vm1549_vm0, %v7125_v21 }
 0x31b   : > { %v8191_v4 = vcombine.low %v3085_v58, %v3096_v45 }
 0x31d   : > { %v3271_v16 = vmul.bf16 %v8191_v4, %v12677_v44  ;;  %v6943_v46 = vpop.permute.xlu1 %6942  ;;  %v12043_v44 = vld [vmem:[%s12329_s3] ss:$0 sm:$0xff] }
 0x31e   : > { %v6951_v56 = vrot.slane %v6943_v46, %v10094_v29 }
 0x31f   : > { %8786 = vmatprep.mubr.msk.bf16.mxu1 %vm1549_vm0, %v3271_v16 }
 0x320   : > { %v8387_v61 = vcombine.low %v6940_v60, %v6951_v56 }
 0x322   : > { %v7126_v35 = vmul.bf16 %v8387_v61, %v12661_v19  ;;  %v3099_v62 = vpop.permute.xlu1 %3098  ;;  %v3121_v19 = vpop.permute.xlu0 %3120 }
 0x323   : > { %v3107_v6 = vrot.slane %v3099_v62, %v10094_v29  ;;  %v3129_v20 = vrot.slane %v3121_v19, %v10094_v29 }
 0x324   : > { %8986 = vmatprep.mubr.msk.bf16.mxu0 %vm1549_vm0, %v7126_v35 }
 0x325   : > { %v8192_v42 = vcombine.low %v3107_v6, %v3118_v9 }
 0x326   : > { %v3154_v59 = vpop.permute.xlu0 %3153 }
 0x327   : > { %v3272_v2 = vmul.bf16 %v8192_v42, %v12678_v15  ;;  %v6954_v1 = vpop.permute.xlu1 %6953  ;;  %v3162_v32 = vrot.slane %v3154_v59, %v10094_v29 }
 0x328   : > { %v6962_v22 = vrot.slane %v6954_v1, %v10094_v29 }
 0x329   : > { %8787 = vmatmul.mubr.msk.bf16.gmra.mrb[24].mxu1 %vm1549_vm0, %v3272_v2 }
 0x32b   : > { %v6965_v36 = vpop.permute.xlu1 %6964 }
 0x32c   : > { %v6973_v3 = vrot.slane %v6965_v36, %v10094_v29 }
 0x32e   : > { %v8388_v12 = vcombine.low %v6962_v22, %v6973_v3 }
 0x330   : > { %v7127_v49 = vmul.bf16 %v8388_v12, %v12679_v17  ;;  %v3132_v34 = vpop.permute.xlu1 %3131 }
 0x331   : > { %v3140_v51 = vrot.slane %v3132_v34, %v10094_v29 }
 0x332   : > { %8987 = vmatmul.mubr.msk.bf16.gmra.mrb[24].mxu0 %vm1549_vm0, %v7127_v49 }
 0x333   : > { %v8193_v40 = vcombine.low %v3129_v20, %v3140_v51 }
 0x335   : > { %v3273_v27 = vmul.bf16 %v8193_v40, %v12681_v50  ;;  %v6987_v23 = vpop.permute.xlu1 %6986 }
 0x336   : > { %v6995_v11 = vrot.slane %v6987_v23, %v10094_v29 }
 0x337   : > { %8790 = vmatprep.mubr.msk.bf16.mxu1 %vm1549_vm0, %v3273_v27 }
 0x338   : > { %v8389_v18 = vcombine.low %v6984_v31, %v6995_v11 }
 0x33a   : > { %v7128_v41 = vmul.bf16 %v8389_v18, %v11450_v10  ;;  %v3143_v47 = vpop.permute.xlu1 %3142 }
 0x33b   : > { %v3151_v33 = vrot.slane %v3143_v47, %v10094_v29 }
 0x33c   : > { %8990 = vmatprep.mubr.msk.bf16.mxu0 %vm1549_vm0, %v7128_v41 }
 0x33d   : > { %v8194_v37 = vcombine.low %v3151_v33, %v3162_v32 }
 0x33f   : > { %v3274_v5 = vmul.bf16 %v8194_v37, %v2809_v28  ;;  %v6998_v55 = vpop.permute.xlu1 %6997 }
 0x340   : > { %v7006_v10 = vrot.slane %v6998_v55, %v10094_v29 }
 0x341   : > { %8791 = vmatmul.mubr.msk.bf16.gmra.mrb[28].mxu1 %vm1549_vm0, %v3274_v5 }
 0x343   : > { %v7009_v25 = vpop.permute.xlu1 %7008 }
 0x344   : > { %v7017_v30 = vrot.slane %v7009_v25, %v10094_v29 }
 0x346   : > { %v8390_v0 = vcombine.low %v7006_v10, %v7017_v30 }
 0x348   : > { %v7129_v14 = vmul.bf16 %v8390_v0, %v6664_v48 }
 0x34a   : > { %8991 = vmatmul.mubr.msk.bf16.gmra.mrb[28].mxu0 %vm1549_vm0, %v7129_v14 }
 0x36c   : > { %v8764_v26 = vpop.f32.mrb[0].mxu1 }
 0x36d   : > { %v3389_v21 = vpop.f32.mrb[1].mxu1 }
 0x36e   : > { %v8765_v38 = vpop.f32.mrb[2].mxu1 }
 0x36f   : > { %v3392_v58 = vpop.f32.mrb[3].mxu1 }
 0x375   : > { %v8964_v45 = vpop.f32.mrb[0].mxu0 }
 0x376   : > { %v9034_v4 = vadd.f32 %v8964_v45, %v8764_v26  ;;  %v7244_v16 = vpop.f32.mrb[1].mxu0 }
 0x377   : > { %v9035_v29 = vadd.f32 %v7244_v16, %v3389_v21  ;;  %v8965_v46 = vpop.f32.mrb[2].mxu0 }
 0x378   : > { %v9036_v60 = vadd.f32 %v8965_v46, %v8765_v38  ;;  %v7247_v56 = vpop.f32.mrb[3].mxu0  ;;  %v12049_v35 = vadd.f32 %v9034_v4, %v12043_v44 }
 0x379   : > { %v12046_v61 = vadd.f32 %v9035_v29, %v12043_v44  ;;  %v9037_v63 = vadd.f32 %v7247_v56, %v3392_v58 }
 0x37a   : > { %v12052_v62 = vadd.f32 %v9036_v60, %v12043_v44  ;;  %v7444_v2 = vmul.f32 %v12049_v35, %v12049_v35 }
 0x37b   : > { %v12055_v9 = vadd.f32 %v9037_v63, %v12043_v44  ;;  %v7442_v42 = vmul.f32 %v12046_v61, %v12046_v61 }
 0x37c   : > { %v7445_v6 = vmul.f32 %v12052_v62, %v12052_v62 }
 0x37d   : > { %v7443_v15 = vmul.f32 %v12055_v9, %v12055_v9 }
 0x37e   : > { %v7475_v36 = vpack.c.bf16 %v7445_v6, %v7444_v2 }
 0x37f   : > { %v7474_v1 = vpack.c.bf16 %v7443_v15, %v7442_v42 }
 0x381   : > { %9002 = vmatprep.mubr.msk.bf16.mxu1 %vm1549_vm0, %v7474_v1 }
 0x382   : > { %9003 = vmatmul.mubr.msk.bf16.vlgmr.msra.gmra.mrb[32].mxu1 %vm1549_vm0, %v7475_v36 }
 0x384   : > { %v8768_v22 = vpop.f32.mrb[4].mxu1 }
 0x385   : > { %v3405_v3 = vpop.f32.mrb[5].mxu1 }
 0x386   : > { %v8769_v12 = vpop.f32.mrb[6].mxu1 }
 0x387   : > { %v3408_v19 = vpop.f32.mrb[7].mxu1 }
 0x38d   : > { %v8968_v17 = vpop.f32.mrb[4].mxu0 }
 0x38e   : > { %v9038_v49 = vadd.f32 %v8968_v17, %v8768_v22  ;;  %v7260_v34 = vpop.f32.mrb[5].mxu0 }
 0x38f   : > { %v9039_v20 = vadd.f32 %v7260_v34, %v3405_v3  ;;  %v8969_v51 = vpop.f32.mrb[6].mxu0 }
 0x390   : > { %v9040_v40 = vadd.f32 %v8969_v51, %v8769_v12  ;;  %v7263_v54 = vpop.f32.mrb[7].mxu0  ;;  %v12071_v27 = vadd.f32 %v9038_v49, %v12043_v44 }
 0x391   : > { %v12068_v43 = vadd.f32 %v9039_v20, %v12043_v44  ;;  %v9041_v50 = vadd.f32 %v7263_v54, %v3408_v19 }
 0x392   : > { %v12074_v23 = vadd.f32 %v9040_v40, %v12043_v44  ;;  %v7448_v7 = vmul.f32 %v12071_v27, %v12071_v27 }
 0x393   : > { %v12077_v31 = vadd.f32 %v9041_v50, %v12043_v44  ;;  %v7446_v59 = vmul.f32 %v12068_v43, %v12068_v43 }
 0x394   : > { %v7449_v11 = vmul.f32 %v12074_v23, %v12074_v23 }
 0x395   : > { %v7447_v18 = vmul.f32 %v12077_v31, %v12077_v31 }
 0x396   : > { %v7477_v53 = vpack.c.bf16 %v7449_v11, %v7448_v7 }
 0x397   : > { %v7476_v52 = vpack.c.bf16 %v7447_v18, %v7446_v59 }
 0x399   : > { %9006 = vmatprep.mubr.msk.bf16.mxu1 %vm1549_vm0, %v7476_v52 }
 0x39a   : > { %9007 = vmatmul.mubr.msk.bf16.gmra.mrb[36].mxu1 %vm1549_vm0, %v7477_v53 }
 0x39c   : > { %v8772_v39 = vpop.f32.mrb[8].mxu1 }
 0x39d   : > { %v3421_v41 = vpop.f32.mrb[9].mxu1 }
 0x39e   : > { %v8773_v47 = vpop.f32.mrb[10].mxu1 }
 0x39f   : > { %v3424_v32 = vpop.f32.mrb[11].mxu1 }
 0x3a5   : > { %v8972_v33 = vpop.f32.mrb[8].mxu0 }
 0x3a6   : > { %v9042_v8 = vadd.f32 %v8972_v33, %v8772_v39  ;;  %v7276_v28 = vpop.f32.mrb[9].mxu0 }
 0x3a7   : > { %v9043_v37 = vadd.f32 %v7276_v28, %v3421_v41  ;;  %v8973_v24 = vpop.f32.mrb[10].mxu0 }
 0x3a8   : > { %v9044_v5 = vadd.f32 %v8973_v24, %v8773_v47  ;;  %v7279_v55 = vpop.f32.mrb[11].mxu0  ;;  %v12093_v10 = vadd.f32 %v9042_v8, %v12043_v44 }
 0x3a9   : > { %v12090_v57 = vadd.f32 %v9043_v37, %v12043_v44  ;;  %v9045_v25 = vadd.f32 %v7279_v55, %v3424_v32 }
 0x3aa   : > { %v12096_v30 = vadd.f32 %v9044_v5, %v12043_v44  ;;  %v7452_v26 = vmul.f32 %v12093_v10, %v12093_v10 }
 0x3ab   : > { %v12099_v13 = vadd.f32 %v9045_v25, %v12043_v44  ;;  %v7450_v0 = vmul.f32 %v12090_v57, %v12090_v57 }
 0x3ac   : > { %v7453_v48 = vmul.f32 %v12096_v30, %v12096_v30 }
 0x3ad   : > { %v7451_v14 = vmul.f32 %v12099_v13, %v12099_v13 }
 0x3ae   : > { %v7479_v38 = vpack.c.bf16 %v7453_v48, %v7452_v26 }
 0x3af   : > { %v7478_v21 = vpack.c.bf16 %v7451_v14, %v7450_v0 }
 0x3b1   : > { %9010 = vmatprep.mubr.msk.bf16.mxu1 %vm1549_vm0, %v7478_v21 }
 0x3b2   : > { %9011 = vmatmul.mubr.msk.bf16.gmra.mrb[40].mxu1 %vm1549_vm0, %v7479_v38 }
 0x3b4   : > { %v8776_v58 = vpop.f32.mrb[12].mxu1 }
 0x3b5   : > { %v3437_v45 = vpop.f32.mrb[13].mxu1 }
 0x3b6   : > { %v8777_v4 = vpop.f32.mrb[14].mxu1 }
 0x3b7   : > { %v3440_v16 = vpop.f32.mrb[15].mxu1 }
 0x3bd   : > { %v8976_v29 = vpop.f32.mrb[12].mxu0 }
 0x3be   : > { %v9046_v46 = vadd.f32 %v8976_v29, %v8776_v58  ;;  %v7292_v60 = vpop.f32.mrb[13].mxu0 }
 0x3bf   : > { %v9047_v56 = vadd.f32 %v7292_v60, %v3437_v45  ;;  %v8977_v63 = vpop.f32.mrb[14].mxu0 }
 0x3c0   : > { %v9048_v6 = vadd.f32 %v8977_v63, %v8777_v4  ;;  %v7295_v42 = vpop.f32.mrb[15].mxu0  ;;  %v12115_v1 = vadd.f32 %v9046_v46, %v12043_v44 }
 0x3c1   : > { %v12112_v15 = vadd.f32 %v9047_v56, %v12043_v44  ;;  %v9049_v2 = vadd.f32 %v7295_v42, %v3440_v16 }
 0x3c2   : > { %v12118_v36 = vadd.f32 %v9048_v6, %v12043_v44  ;;  %v7456_v17 = vmul.f32 %v12115_v1, %v12115_v1 }
 0x3c3   : > { %v12121_v22 = vadd.f32 %v9049_v2, %v12043_v44  ;;  %v7454_v12 = vmul.f32 %v12112_v15, %v12112_v15 }
 0x3c4   : > { %v7457_v3 = vmul.f32 %v12118_v36, %v12118_v36 }
 0x3c5   : > { %v7455_v19 = vmul.f32 %v12121_v22, %v12121_v22 }
 0x3c6   : > { %v7481_v34 = vpack.c.bf16 %v7457_v3, %v7456_v17 }
 0x3c7   : > { %v7480_v49 = vpack.c.bf16 %v7455_v19, %v7454_v12 }
 0x3c9   : > { %9014 = vmatprep.mubr.msk.bf16.mxu1 %vm1549_vm0, %v7480_v49 }
 0x3ca   : > { %9015 = vmatmul.mubr.msk.bf16.gmra.mrb[44].mxu1 %vm1549_vm0, %v7481_v34 }
 0x3cc   : > { %v8780_v20 = vpop.f32.mrb[16].mxu1 }
 0x3cd   : > { %v3453_v51 = vpop.f32.mrb[17].mxu1 }
 0x3ce   : > { %v8781_v40 = vpop.f32.mrb[18].mxu1 }
 0x3cf   : > { %v3456_v54 = vpop.f32.mrb[19].mxu1 }
 0x3d5   : > { %v8980_v50 = vpop.f32.mrb[16].mxu0 }
 0x3d6   : > { %v9050_v11 = vadd.f32 %v8980_v50, %v8780_v20  ;;  %v7308_v59 = vpop.f32.mrb[17].mxu0 }
 0x3d7   : > { %v9051_v18 = vadd.f32 %v7308_v59, %v3453_v51  ;;  %v8981_v7 = vpop.f32.mrb[18].mxu0 }
 0x3d8   : > { %v9052_v52 = vadd.f32 %v8981_v7, %v8781_v40  ;;  %v7311_v53 = vpop.f32.mrb[19].mxu0  ;;  %v12137_v47 = vadd.f32 %v9050_v11, %v12043_v44 }
 0x3d9   : > { %v12134_v39 = vadd.f32 %v9051_v18, %v12043_v44  ;;  %v9053_v41 = vadd.f32 %v7311_v53, %v3456_v54 }
 0x3da   : > { %v12140_v32 = vadd.f32 %v9052_v52, %v12043_v44  ;;  %v7460_v24 = vmul.f32 %v12137_v47, %v12137_v47 }
 0x3db   : > { %v12143_v33 = vadd.f32 %v9053_v41, %v12043_v44  ;;  %v7458_v28 = vmul.f32 %v12134_v39, %v12134_v39 }
 0x3dc   : > { %v7461_v8 = vmul.f32 %v12140_v32, %v12140_v32 }
 0x3dd   : > { %v7459_v37 = vmul.f32 %v12143_v33, %v12143_v33 }
 0x3de   : > { %v7483_v55 = vpack.c.bf16 %v7461_v8, %v7460_v24 }
 0x3df   : > { %v7482_v5 = vpack.c.bf16 %v7459_v37, %v7458_v28 }
 0x3e1   : > { %9018 = vmatprep.mubr.msk.bf16.mxu1 %vm1549_vm0, %v7482_v5 }
 0x3e2   : > { %9019 = vmatmul.mubr.msk.bf16.gmra.mrb[48].mxu1 %vm1549_vm0, %v7483_v55 }
 0x3e4   : > { %v8784_v25 = vpop.f32.mrb[20].mxu1 }
 0x3e5   : > { %v3469_v48 = vpop.f32.mrb[21].mxu1 }
 0x3e6   : > { %v8785_v0 = vpop.f32.mrb[22].mxu1 }
 0x3e7   : > { %v3472_v14 = vpop.f32.mrb[23].mxu1 }
 0x3ed   : > { %v8984_v26 = vpop.f32.mrb[20].mxu0 }
 0x3ee   : > { %v9054_v21 = vadd.f32 %v8984_v26, %v8784_v25  ;;  %v7324_v38 = vpop.f32.mrb[21].mxu0 }
 0x3ef   : > { %v9055_v58 = vadd.f32 %v7324_v38, %v3469_v48  ;;  %v8985_v45 = vpop.f32.mrb[22].mxu0 }
 0x3f0   : > { %v9056_v4 = vadd.f32 %v8985_v45, %v8785_v0  ;;  %v7327_v16 = vpop.f32.mrb[23].mxu0  ;;  %v12159_v60 = vadd.f32 %v9054_v21, %v12043_v44 }
 0x3f1   : > { %v12156_v29 = vadd.f32 %v9055_v58, %v12043_v44  ;;  %v9057_v46 = vadd.f32 %v7327_v16, %v3472_v14 }
 0x3f2   : > { %v12162_v56 = vadd.f32 %v9056_v4, %v12043_v44  ;;  %v7464_v3 = vmul.f32 %v12159_v60, %v12159_v60 }
 0x3f3   : > { %v12165_v63 = vadd.f32 %v9057_v46, %v12043_v44  ;;  %v7462_v42 = vmul.f32 %v12156_v29, %v12156_v29 }
 0x3f4   : > { %v7465_v6 = vmul.f32 %v12162_v56, %v12162_v56 }
 0x3f5   : > { %v7463_v2 = vmul.f32 %v12165_v63, %v12165_v63 }
 0x3f6   : > { %v7485_v19 = vpack.c.bf16 %v7465_v6, %v7464_v3 }
 0x3f7   : > { %v7484_v12 = vpack.c.bf16 %v7463_v2, %v7462_v42 }
 0x3f9   : > { %9022 = vmatprep.mubr.msk.bf16.mxu1 %vm1549_vm0, %v7484_v12 }
 0x3fa   : > { %9023 = vmatmul.mubr.msk.bf16.gmra.mrb[52].mxu1 %vm1549_vm0, %v7485_v19 }
 0x3fc   : > { %v8788_v17 = vpop.f32.mrb[24].mxu1 }
 0x3fd   : > { %v3485_v49 = vpop.f32.mrb[25].mxu1 }
 0x3fe   : > { %v8789_v34 = vpop.f32.mrb[26].mxu1 }
 0x3ff   : > { %v3488_v20 = vpop.f32.mrb[27].mxu1 }
 0x405   : > { %v8988_v51 = vpop.f32.mrb[24].mxu0 }
 0x406   : > { %v9058_v40 = vadd.f32 %v8988_v51, %v8788_v17  ;;  %v7340_v54 = vpop.f32.mrb[25].mxu0 }
 0x407   : > { %v9059_v50 = vadd.f32 %v7340_v54, %v3485_v49  ;;  %v8989_v11 = vpop.f32.mrb[26].mxu0 }
 0x408   : > { %v9060_v59 = vadd.f32 %v8989_v11, %v8789_v34  ;;  %v7343_v18 = vpop.f32.mrb[27].mxu0  ;;  %v12181_v53 = vadd.f32 %v9058_v40, %v12043_v44 }
 0x409   : > { %v12178_v7 = vadd.f32 %v9059_v50, %v12043_v44  ;;  %v9061_v52 = vadd.f32 %v7343_v18, %v3488_v20 }
 0x40a   : > { %v12184_v41 = vadd.f32 %v9060_v59, %v12043_v44  ;;  %v7468_v5 = vmul.f32 %v12181_v53, %v12181_v53 }
 0x40b   : > { %v12187_v8 = vadd.f32 %v9061_v52, %v12043_v44  ;;  %v7466_v37 = vmul.f32 %v12178_v7, %v12178_v7 }
 0x40c   : > { %v7469_v28 = vmul.f32 %v12184_v41, %v12184_v41 }
 0x40d   : > { %v7467_v24 = vmul.f32 %v12187_v8, %v12187_v8 }
 0x40e   : > { %v7487_v25 = vpack.c.bf16 %v7469_v28, %v7468_v5 }
 0x40f   : > { %v7486_v55 = vpack.c.bf16 %v7467_v24, %v7466_v37 }
 0x411   : > { %9026 = vmatprep.mubr.msk.bf16.mxu1 %vm1549_vm0, %v7486_v55 }
 0x412   : > { %9027 = vmatmul.mubr.msk.bf16.gmra.mrb[56].mxu1 %vm1549_vm0, %v7487_v25 }
 0x414   : > { %v8792_v48 = vpop.f32.mrb[28].mxu1 }
 0x415   : > { %v3501_v0 = vpop.f32.mrb[29].mxu1 }
 0x416   : > { %v8793_v14 = vpop.f32.mrb[30].mxu1 }
 0x417   : > { %v3504_v26 = vpop.f32.mrb[31].mxu1 }
 0x41d   : > { %v8992_v21 = vpop.f32.mrb[28].mxu0 }
 0x41e   : > { %v9062_v38 = vadd.f32 %v8992_v21, %v8792_v48  ;;  %v7356_v58 = vpop.f32.mrb[29].mxu0 }
 0x41f   : > { %v9063_v45 = vadd.f32 %v7356_v58, %v3501_v0  ;;  %v8993_v4 = vpop.f32.mrb[30].mxu0 }
 0x420   : > { %v9064_v16 = vadd.f32 %v8993_v4, %v8793_v14  ;;  %v7359_v46 = vpop.f32.mrb[31].mxu0  ;;  %v12203_v2 = vadd.f32 %v9062_v38, %v12043_v44 }
 0x421   : > { %v12200_v6 = vadd.f32 %v9063_v45, %v12043_v44  ;;  %v9065_v42 = vadd.f32 %v7359_v46, %v3504_v26 }
 0x422   : > { %v12206_v3 = vadd.f32 %v9064_v16, %v12043_v44  ;;  %v7472_v34 = vmul.f32 %v12203_v2, %v12203_v2 }
 0x423   : > { %v12209_v12 = vadd.f32 %v9065_v42, %v12043_v44  ;;  %v7470_v17 = vmul.f32 %v12200_v6, %v12200_v6 }
 0x424   : > { %v7473_v19 = vmul.f32 %v12206_v3, %v12206_v3 }
 0x425   : > { %v7471_v49 = vmul.f32 %v12209_v12, %v12209_v12 }
 0x426   : > { %v7489_v51 = vpack.c.bf16 %v7473_v19, %v7472_v34 }
 0x427   : > { %v7488_v20 = vpack.c.bf16 %v7471_v49, %v7470_v17 }
 0x429   : > { %9030 = vmatprep.mubr.msk.bf16.mxu1 %vm1549_vm0, %v7488_v20 }
 0x42a   : > { %9031 = vmatmul.mubr.msk.bf16.gmra.mrb[60].mxu1 %vm1549_vm0, %v7489_v51 }
 0x455   : > { %v9004_v44 = vpop.f32.mrb[32].mxu1 }
 0x456   : > { %v7733_v40 = vadd.f32 1.0, %v9004_v44  ;;  %v7604_v54 = vpop.f32.mrb[33].mxu1  ;;  %v7861_v50 = vadd.f32 1e-07, %v9004_v44 }
 0x457   : > { %v7731_v11 = vadd.f32 1.0, %v7604_v54  ;;  %v9005_v59 = vpop.f32.mrb[34].mxu1  ;;  %v7859_v28 = vadd.f32 1e-07, %v7604_v54 }
 0x458   : > { %9450 = vrcp.f32 %v7733_v40  ;;  %v7734_v18 = vadd.f32 1.0, %v9005_v59  ;;  %v7607_v52 = vpop.f32.mrb[35].mxu1  ;;  %v7862_v24 = vadd.f32 1e-07, %v9005_v59 }
 0x459   : > { %9452 = vrcp.f32 %v7731_v11  ;;  %v7732_v37 = vadd.f32 1.0, %v7607_v52  ;;  %v7860_v5 = vadd.f32 1e-07, %v7607_v52 }
 0x45a   : > { %9454 = vrsqrt.f32 %v7861_v50 }
 0x45b   : > { %9456 = vrcp.f32 %v7734_v18 }
 0x45c   : > { %9458 = vrsqrt.f32 %v7859_v28 }
 0x45d   : > { %9460 = vrcp.f32 %v7732_v37 }
 0x45e   : > { %9462 = vrsqrt.f32 %v7862_v24 }
 0x45f   : > { %9464 = vrsqrt.f32 %v7860_v5 }
 0x462   : > { %v9451_v55 = vpop.eup %9450 }
 0x463   : > { %v7768_v25 = vmul.f32 %v9451_v55, %v9004_v44  ;;  %v9453_v48 = vpop.eup %9452 }
 0x464   : > { %v9455_v0 = vpop.eup %9454  ;;  %v7764_v26 = vmul.f32 %v9453_v48, %v7604_v54 }
 0x465   : > { %v7829_v14 = vmul.f32 %v7768_v25, %v12049_v35  ;;  %v9457_v21 = vpop.eup %9456 }
 0x466   : > { %v9459_v38 = vpop.eup %9458  ;;  %v7827_v45 = vmul.f32 %v7764_v26, %v12046_v61  ;;  %v7770_v4 = vmul.f32 %v9457_v21, %v9005_v59 }
 0x467   : > { %v7925_v58 = vmul.f32 %v9455_v0, %v7829_v14  ;;  %v9461_v16 = vpop.eup %9460 }
 0x468   : > { %v7923_v35 = vmul.f32 %v9459_v38, %v7827_v45  ;;  %v7830_v46 = vmul.f32 %v7770_v4, %v12052_v62  ;;  %v7766_v42 = vmul.f32 %v9461_v16, %v7607_v52  ;;  %v9463_v19 = vpop.eup %9462 }
 0x469   : > { %7957 = vst.msk [vmem:[%s12226_s7 + $0x10] sm:$0xff] %vm1549_vm0, %v7925_v58  ;;  %v9465_v34 = vpop.eup %9464 }
 0x46a   : > { %7955 = vst.msk [vmem:[%s12226_s7] sm:$0xff] %vm1549_vm0, %v7923_v35  ;;  %v7926_v17 = vmul.f32 %v9463_v19, %v7830_v46  ;;  %v7828_v49 = vmul.f32 %v7766_v42, %v12055_v9 }
 0x46c   : > { %7958 = vst.msk [vmem:[%s12226_s7 + $0x18] sm:$0xff] %vm1549_vm0, %v7926_v17  ;;  %v7924_v20 = vmul.f32 %v9465_v34, %v7828_v49 }
 0x46d   : > { %v9008_v61 = vpop.f32.mrb[36].mxu1 }
 0x46e   : > { %v7737_v51 = vadd.f32 1.0, %v9008_v61  ;;  %v7620_v44 = vpop.f32.mrb[37].mxu1  ;;  %7956 = vst.msk [vmem:[%s12226_s7 + $0x8] sm:$0xff] %vm1549_vm0, %v7924_v20  ;;  %v7865_v40 = vadd.f32 1e-07, %v9008_v61 }
 0x46f   : > { %v7735_v54 = vadd.f32 1.0, %v7620_v44  ;;  %v9009_v50 = vpop.f32.mrb[38].mxu1  ;;  %v7863_v59 = vadd.f32 1e-07, %v7620_v44 }
 0x470   : > { %9466 = vrcp.f32 %v7737_v51  ;;  %v7738_v62 = vadd.f32 1.0, %v9009_v50  ;;  %v7623_v11 = vpop.f32.mrb[39].mxu1  ;;  %v7866_v9 = vadd.f32 1e-07, %v9009_v50 }
 0x471   : > { %9468 = vrcp.f32 %v7735_v54  ;;  %v7736_v18 = vadd.f32 1.0, %v7623_v11  ;;  %v7864_v52 = vadd.f32 1e-07, %v7623_v11 }
 0x472   : > { %9470 = vrsqrt.f32 %v7865_v40 }
 0x473   : > { %9472 = vrcp.f32 %v7738_v62 }
 0x474   : > { %9474 = vrsqrt.f32 %v7863_v59 }
 0x475   : > { %9476 = vrcp.f32 %v7736_v18 }
 0x476   : > { %9478 = vrsqrt.f32 %v7866_v9 }
 0x477   : > { %9480 = vrsqrt.f32 %v7864_v52 }
 0x47a   : > { %v9467_v28 = vpop.eup %9466 }
 0x47b   : > { %v7776_v37 = vmul.f32 %v9467_v28, %v9008_v61  ;;  %v9469_v24 = vpop.eup %9468 }
 0x47c   : > { %v9471_v5 = vpop.eup %9470  ;;  %v7772_v25 = vmul.f32 %v9469_v24, %v7620_v44 }
 0x47d   : > { %v7833_v55 = vmul.f32 %v7776_v37, %v12071_v27  ;;  %v9473_v48 = vpop.eup %9472 }
 0x47e   : > { %v9475_v0 = vpop.eup %9474  ;;  %v7831_v26 = vmul.f32 %v7772_v25, %v12068_v43  ;;  %v7778_v21 = vmul.f32 %v9473_v48, %v9009_v50 }
 0x47f   : > { %v7929_v14 = vmul.f32 %v9471_v5, %v7833_v55  ;;  %v9477_v38 = vpop.eup %9476 }
 0x480   : > { %v7927_v58 = vmul.f32 %v9475_v0, %v7831_v26  ;;  %v7834_v45 = vmul.f32 %v7778_v21, %v12074_v23  ;;  %v7774_v4 = vmul.f32 %v9477_v38, %v7623_v11  ;;  %v9479_v16 = vpop.eup %9478 }
 0x481   : > { %7961 = vst.msk [vmem:[%s12226_s7 + $0x30] sm:$0xff] %vm1549_vm0, %v7929_v14  ;;  %v9481_v46 = vpop.eup %9480 }
 0x482   : > { %7959 = vst.msk [vmem:[%s12226_s7 + $0x20] sm:$0xff] %vm1549_vm0, %v7927_v58  ;;  %v7930_v27 = vmul.f32 %v9479_v16, %v7834_v45  ;;  %v7832_v35 = vmul.f32 %v7774_v4, %v12077_v31 }
 0x484   : > { %7962 = vst.msk [vmem:[%s12226_s7 + $0x38] sm:$0xff] %vm1549_vm0, %v7930_v27  ;;  %v7928_v42 = vmul.f32 %v9481_v46, %v7832_v35 }
 0x485   : > { %v9012_v43 = vpop.f32.mrb[40].mxu1 }
 0x486   : > { %v7741_v19 = vadd.f32 1.0, %v9012_v43  ;;  %v7636_v17 = vpop.f32.mrb[41].mxu1  ;;  %7960 = vst.msk [vmem:[%s12226_s7 + $0x28] sm:$0xff] %vm1549_vm0, %v7928_v42  ;;  %v7869_v49 = vadd.f32 1e-07, %v9012_v43 }
 0x487   : > { %v7739_v34 = vadd.f32 1.0, %v7636_v17  ;;  %v9013_v20 = vpop.f32.mrb[42].mxu1  ;;  %v7867_v51 = vadd.f32 1e-07, %v7636_v17 }
 0x488   : > { %9482 = vrcp.f32 %v7741_v19  ;;  %v7742_v23 = vadd.f32 1.0, %v9013_v20  ;;  %v7639_v61 = vpop.f32.mrb[43].mxu1  ;;  %v7870_v31 = vadd.f32 1e-07, %v9013_v20 }
 0x489   : > { %9484 = vrcp.f32 %v7739_v34  ;;  %v7740_v44 = vadd.f32 1.0, %v7639_v61  ;;  %v7868_v40 = vadd.f32 1e-07, %v7639_v61 }
 0x48a   : > { %9486 = vrsqrt.f32 %v7869_v49 }
 0x48b   : > { %9488 = vrcp.f32 %v7742_v23 }
 0x48c   : > { %9490 = vrsqrt.f32 %v7867_v51 }
 0x48d   : > { %9492 = vrcp.f32 %v7740_v44 }
 0x48e   : > { %9494 = vrsqrt.f32 %v7870_v31 }
 0x48f   : > { %9496 = vrsqrt.f32 %v7868_v40 }
 0x492   : > { %v9483_v54 = vpop.eup %9482 }
 0x493   : > { %v7784_v50 = vmul.f32 %v9483_v54, %v9012_v43  ;;  %v9485_v62 = vpop.eup %9484 }
 0x494   : > { %v9487_v11 = vpop.eup %9486  ;;  %v7780_v18 = vmul.f32 %v9485_v62, %v7636_v17 }
 0x495   : > { %v7837_v59 = vmul.f32 %v7784_v50, %v12093_v10  ;;  %v9489_v9 = vpop.eup %9488 }
 0x496   : > { %v9491_v52 = vpop.eup %9490  ;;  %v7835_v37 = vmul.f32 %v7780_v18, %v12090_v57  ;;  %v7786_v24 = vmul.f32 %v9489_v9, %v9013_v20 }
 0x497   : > { %v7933_v28 = vmul.f32 %v9487_v11, %v7837_v59  ;;  %v9493_v5 = vpop.eup %9492 }
 0x498   : > { %v7931_v55 = vmul.f32 %v9491_v52, %v7835_v37  ;;  %v7838_v25 = vmul.f32 %v7786_v24, %v12096_v30  ;;  %v7782_v48 = vmul.f32 %v9493_v5, %v7639_v61  ;;  %v9495_v0 = vpop.eup %9494 }
 0x499   : > { %7965 = vst.msk [vmem:[%s12226_s7 + $0x50] sm:$0xff] %vm1549_vm0, %v7933_v28  ;;  %v9497_v26 = vpop.eup %9496 }
 0x49a   : > { %7963 = vst.msk [vmem:[%s12226_s7 + $0x40] sm:$0xff] %vm1549_vm0, %v7931_v55  ;;  %v7934_v10 = vmul.f32 %v9495_v0, %v7838_v25  ;;  %v7836_v14 = vmul.f32 %v7782_v48, %v12099_v13 }
 0x49c   : > { %7966 = vst.msk [vmem:[%s12226_s7 + $0x58] sm:$0xff] %vm1549_vm0, %v7934_v10  ;;  %v7932_v21 = vmul.f32 %v9497_v26, %v7836_v14 }
 0x49d   : > { %v9016_v57 = vpop.f32.mrb[44].mxu1 }
 0x49e   : > { %v7745_v38 = vadd.f32 1.0, %v9016_v57  ;;  %v7652_v58 = vpop.f32.mrb[45].mxu1  ;;  %7964 = vst.msk [vmem:[%s12226_s7 + $0x48] sm:$0xff] %vm1549_vm0, %v7932_v21  ;;  %v7873_v45 = vadd.f32 1e-07, %v9016_v57 }
 0x49f   : > { %v7743_v4 = vadd.f32 1.0, %v7652_v58  ;;  %v9017_v16 = vpop.f32.mrb[46].mxu1  ;;  %v7871_v35 = vadd.f32 1e-07, %v7652_v58 }
 0x4a0   : > { %9498 = vrcp.f32 %v7745_v38  ;;  %v7746_v30 = vadd.f32 1.0, %v9017_v16  ;;  %v7655_v27 = vpop.f32.mrb[47].mxu1  ;;  %v7874_v13 = vadd.f32 1e-07, %v9017_v16 }
 0x4a1   : > { %9500 = vrcp.f32 %v7743_v4  ;;  %v7744_v46 = vadd.f32 1.0, %v7655_v27  ;;  %v7872_v42 = vadd.f32 1e-07, %v7655_v27 }
 0x4a2   : > { %9502 = vrsqrt.f32 %v7873_v45 }
 0x4a3   : > { %9504 = vrcp.f32 %v7746_v30 }
 0x4a4   : > { %9506 = vrsqrt.f32 %v7871_v35 }
 0x4a5   : > { %9508 = vrcp.f32 %v7744_v46 }
 0x4a6   : > { %9510 = vrsqrt.f32 %v7874_v13 }
 0x4a7   : > { %9512 = vrsqrt.f32 %v7872_v42 }
 0x4aa   : > { %v9499_v43 = vpop.eup %9498 }
 0x4ab   : > { %v7792_v19 = vmul.f32 %v9499_v43, %v9016_v57  ;;  %v9501_v17 = vpop.eup %9500 }
 0x4ac   : > { %v9503_v49 = vpop.eup %9502  ;;  %v7788_v20 = vmul.f32 %v9501_v17, %v7652_v58 }
 0x4ad   : > { %v7841_v34 = vmul.f32 %v7792_v19, %v12115_v1  ;;  %v9505_v23 = vpop.eup %9504 }
 0x4ae   : > { %v9507_v61 = vpop.eup %9506  ;;  %v7839_v44 = vmul.f32 %v7788_v20, %v12112_v15  ;;  %v7794_v31 = vmul.f32 %v9505_v23, %v9017_v16 }
 0x4af   : > { %v7937_v51 = vmul.f32 %v9503_v49, %v7841_v34  ;;  %v9509_v40 = vpop.eup %9508 }
 0x4b0   : > { %v7935_v54 = vmul.f32 %v9507_v61, %v7839_v44  ;;  %v7842_v50 = vmul.f32 %v7794_v31, %v12118_v36  ;;  %v7790_v62 = vmul.f32 %v9509_v40, %v7655_v27  ;;  %v9511_v11 = vpop.eup %9510 }
 0x4b1   : > { %7969 = vst.msk [vmem:[%s12226_s7 + $0x70] sm:$0xff] %vm1549_vm0, %v7937_v51  ;;  %v9513_v18 = vpop.eup %9512 }
 0x4b2   : > { %7967 = vst.msk [vmem:[%s12226_s7 + $0x60] sm:$0xff] %vm1549_vm0, %v7935_v54  ;;  %v7938_v1 = vmul.f32 %v9511_v11, %v7842_v50  ;;  %v7840_v59 = vmul.f32 %v7790_v62, %v12121_v22 }
 0x4b4   : > { %7970 = vst.msk [vmem:[%s12226_s7 + $0x78] sm:$0xff] %vm1549_vm0, %v7938_v1  ;;  %v7936_v9 = vmul.f32 %v9513_v18, %v7840_v59 }
 0x4b5   : > { %v9020_v15 = vpop.f32.mrb[48].mxu1 }
 0x4b6   : > { %v7749_v52 = vadd.f32 1.0, %v9020_v15  ;;  %v7668_v28 = vpop.f32.mrb[49].mxu1  ;;  %7968 = vst.msk [vmem:[%s12226_s7 + $0x68] sm:$0xff] %vm1549_vm0, %v7936_v9  ;;  %v7877_v37 = vadd.f32 1e-07, %v9020_v15 }
 0x4b7   : > { %v7747_v24 = vadd.f32 1.0, %v7668_v28  ;;  %v9021_v5 = vpop.f32.mrb[50].mxu1  ;;  %v7875_v25 = vadd.f32 1e-07, %v7668_v28 }
 0x4b8   : > { %9514 = vrcp.f32 %v7749_v52  ;;  %v7750_v36 = vadd.f32 1.0, %v9021_v5  ;;  %v7671_v55 = vpop.f32.mrb[51].mxu1  ;;  %v7878_v22 = vadd.f32 1e-07, %v9021_v5 }
 0x4b9   : > { %9516 = vrcp.f32 %v7747_v24  ;;  %v7748_v48 = vadd.f32 1.0, %v7671_v55  ;;  %v7876_v0 = vadd.f32 1e-07, %v7671_v55 }
 0x4ba   : > { %9518 = vrsqrt.f32 %v7877_v37 }
 0x4bb   : > { %9520 = vrcp.f32 %v7750_v36 }
 0x4bc   : > { %9522 = vrsqrt.f32 %v7875_v25 }
 0x4bd   : > { %9524 = vrcp.f32 %v7748_v48 }
 0x4be   : > { %9526 = vrsqrt.f32 %v7878_v22 }
 0x4bf   : > { %9528 = vrsqrt.f32 %v7876_v0 }
 0x4c2   : > { %v9515_v10 = vpop.eup %9514 }
 0x4c3   : > { %v7800_v14 = vmul.f32 %v9515_v10, %v9020_v15  ;;  %v9517_v26 = vpop.eup %9516 }
 0x4c4   : > { %v9519_v21 = vpop.eup %9518  ;;  %v7796_v38 = vmul.f32 %v9517_v26, %v7668_v28 }
 0x4c5   : > { %v7845_v57 = vmul.f32 %v7800_v14, %v12137_v47  ;;  %v9521_v58 = vpop.eup %9520 }
 0x4c6   : > { %v9523_v45 = vpop.eup %9522  ;;  %v7843_v16 = vmul.f32 %v7796_v38, %v12134_v39  ;;  %v7802_v30 = vmul.f32 %v9521_v58, %v9021_v5 }
 0x4c7   : > { %v7941_v4 = vmul.f32 %v9519_v21, %v7845_v57  ;;  %v9525_v27 = vpop.eup %9524 }
 0x4c8   : > { %v7939_v35 = vmul.f32 %v9523_v45, %v7843_v16  ;;  %v7846_v46 = vmul.f32 %v7802_v30, %v12140_v32  ;;  %v7798_v13 = vmul.f32 %v9525_v27, %v7671_v55  ;;  %v9527_v42 = vpop.eup %9526 }
 0x4c9   : > { %7973 = vst.msk [vmem:[%s12226_s7 + $0x90] sm:$0xff] %vm1549_vm0, %v7941_v4  ;;  %v9529_v19 = vpop.eup %9528 }
 0x4ca   : > { %7971 = vst.msk [vmem:[%s12226_s7 + $0x80] sm:$0xff] %vm1549_vm0, %v7939_v35  ;;  %v7942_v47 = vmul.f32 %v9527_v42, %v7846_v46  ;;  %v7844_v43 = vmul.f32 %v7798_v13, %v12143_v33 }
 0x4cc   : > { %7974 = vst.msk [vmem:[%s12226_s7 + $0x98] sm:$0xff] %vm1549_vm0, %v7942_v47  ;;  %v7940_v17 = vmul.f32 %v9529_v19, %v7844_v43 }
 0x4cd   : > { %v9024_v39 = vpop.f32.mrb[52].mxu1 }
 0x4ce   : > { %v7753_v49 = vadd.f32 1.0, %v9024_v39  ;;  %v7684_v34 = vpop.f32.mrb[53].mxu1  ;;  %7972 = vst.msk [vmem:[%s12226_s7 + $0x88] sm:$0xff] %vm1549_vm0, %v7940_v17  ;;  %v7881_v20 = vadd.f32 1e-07, %v9024_v39 }
 0x4cf   : > { %v7751_v23 = vadd.f32 1.0, %v7684_v34  ;;  %v9025_v61 = vpop.f32.mrb[54].mxu1  ;;  %v7879_v44 = vadd.f32 1e-07, %v7684_v34 }
 0x4d0   : > { %9530 = vrcp.f32 %v7753_v49  ;;  %v7754_v32 = vadd.f32 1.0, %v9025_v61  ;;  %v7687_v51 = vpop.f32.mrb[55].mxu1  ;;  %v7882_v33 = vadd.f32 1e-07, %v9025_v61 }
 0x4d1   : > { %9532 = vrcp.f32 %v7751_v23  ;;  %v7752_v31 = vadd.f32 1.0, %v7687_v51  ;;  %v7880_v40 = vadd.f32 1e-07, %v7687_v51 }
 0x4d2   : > { %9534 = vrsqrt.f32 %v7881_v20 }
 0x4d3   : > { %9536 = vrcp.f32 %v7754_v32 }
 0x4d4   : > { %9538 = vrsqrt.f32 %v7879_v44 }
 0x4d5   : > { %9540 = vrcp.f32 %v7752_v31 }
 0x4d6   : > { %9542 = vrsqrt.f32 %v7882_v33 }
 0x4d7   : > { %9544 = vrsqrt.f32 %v7880_v40 }
 0x4da   : > { %v9531_v54 = vpop.eup %9530 }
 0x4db   : > { %v7808_v50 = vmul.f32 %v9531_v54, %v9024_v39  ;;  %v9533_v62 = vpop.eup %9532 }
 0x4dc   : > { %v9535_v11 = vpop.eup %9534  ;;  %v7804_v59 = vmul.f32 %v9533_v62, %v7684_v34 }
 0x4dd   : > { %v7849_v1 = vmul.f32 %v7808_v50, %v12159_v60  ;;  %v9537_v18 = vpop.eup %9536 }
 0x4de   : > { %v9539_v9 = vpop.eup %9538  ;;  %v7847_v52 = vmul.f32 %v7804_v59, %v12156_v29  ;;  %v7810_v28 = vmul.f32 %v9537_v18, %v9025_v61 }
 0x4df   : > { %v7945_v15 = vmul.f32 %v9535_v11, %v7849_v1  ;;  %v9541_v37 = vpop.eup %9540 }
 0x4e0   : > { %v7943_v24 = vmul.f32 %v9539_v9, %v7847_v52  ;;  %v7850_v5 = vmul.f32 %v7810_v28, %v12162_v56  ;;  %v7806_v36 = vmul.f32 %v9541_v37, %v7687_v51  ;;  %v9543_v55 = vpop.eup %9542 }
 0x4e1   : > { %7977 = vst.msk [vmem:[%s12226_s7 + $0xb0] sm:$0xff] %vm1549_vm0, %v7945_v15  ;;  %v9545_v48 = vpop.eup %9544 }
 0x4e2   : > { %7975 = vst.msk [vmem:[%s12226_s7 + $0xa0] sm:$0xff] %vm1549_vm0, %v7943_v24  ;;  %v7946_v60 = vmul.f32 %v9543_v55, %v7850_v5  ;;  %v7848_v25 = vmul.f32 %v7806_v36, %v12165_v63 }
 0x4e4   : > { %7978 = vst.msk [vmem:[%s12226_s7 + $0xb8] sm:$0xff] %vm1549_vm0, %v7946_v60  ;;  %v7944_v22 = vmul.f32 %v9545_v48, %v7848_v25 }
 0x4e5   : > { %v9028_v29 = vpop.f32.mrb[56].mxu1 }
 0x4e6   : > { %v7757_v0 = vadd.f32 1.0, %v9028_v29  ;;  %v7700_v10 = vpop.f32.mrb[57].mxu1  ;;  %7976 = vst.msk [vmem:[%s12226_s7 + $0xa8] sm:$0xff] %vm1549_vm0, %v7944_v22  ;;  %v7885_v14 = vadd.f32 1e-07, %v9028_v29 }
 0x4e7   : > { %v7755_v26 = vadd.f32 1.0, %v7700_v10  ;;  %v9029_v21 = vpop.f32.mrb[58].mxu1  ;;  %v7883_v38 = vadd.f32 1e-07, %v7700_v10 }
 0x4e8   : > { %9546 = vrcp.f32 %v7757_v0  ;;  %v7758_v56 = vadd.f32 1.0, %v9029_v21  ;;  %v7703_v57 = vpop.f32.mrb[59].mxu1  ;;  %v7886_v63 = vadd.f32 1e-07, %v9029_v21 }
 0x4e9   : > { %9548 = vrcp.f32 %v7755_v26  ;;  %v7756_v58 = vadd.f32 1.0, %v7703_v57  ;;  %v7884_v45 = vadd.f32 1e-07, %v7703_v57 }
 0x4ea   : > { %9550 = vrsqrt.f32 %v7885_v14 }
 0x4eb   : > { %9552 = vrcp.f32 %v7758_v56 }
 0x4ec   : > { %9554 = vrsqrt.f32 %v7883_v38 }
 0x4ed   : > { %9556 = vrcp.f32 %v7756_v58 }
 0x4ee   : > { %9558 = vrsqrt.f32 %v7886_v63 }
 0x4ef   : > { %9560 = vrsqrt.f32 %v7884_v45 }
 0x4f2   : > { %v9547_v4 = vpop.eup %9546 }
 0x4f3   : > { %v7816_v16 = vmul.f32 %v9547_v4, %v9028_v29  ;;  %v9549_v30 = vpop.eup %9548 }
 0x4f4   : > { %v9551_v27 = vpop.eup %9550  ;;  %v7812_v46 = vmul.f32 %v9549_v30, %v7700_v10 }
 0x4f5   : > { %v7853_v35 = vmul.f32 %v7816_v16, %v12181_v53  ;;  %v9553_v13 = vpop.eup %9552 }
 0x4f6   : > { %v9555_v42 = vpop.eup %9554  ;;  %v7851_v43 = vmul.f32 %v7812_v46, %v12178_v7  ;;  %v7818_v19 = vmul.f32 %v9553_v13, %v9029_v21 }
 0x4f7   : > { %v7949_v47 = vmul.f32 %v9551_v27, %v7853_v35  ;;  %v9557_v17 = vpop.eup %9556 }
 0x4f8   : > { %v7947_v39 = vmul.f32 %v9555_v42, %v7851_v43  ;;  %v7854_v49 = vmul.f32 %v7818_v19, %v12184_v41  ;;  %v7814_v34 = vmul.f32 %v9557_v17, %v7703_v57  ;;  %v9559_v20 = vpop.eup %9558 }
 0x4f9   : > { %7981 = vst.msk [vmem:[%s12226_s7 + $0xd0] sm:$0xff] %vm1549_vm0, %v7949_v47  ;;  %v9561_v61 = vpop.eup %9560 }
 0x4fa   : > { %7979 = vst.msk [vmem:[%s12226_s7 + $0xc0] sm:$0xff] %vm1549_vm0, %v7947_v39  ;;  %v7950_v53 = vmul.f32 %v9559_v20, %v7854_v49  ;;  %v7852_v23 = vmul.f32 %v7814_v34, %v12187_v8 }
 0x4fc   : > { %7982 = vst.msk [vmem:[%s12226_s7 + $0xd8] sm:$0xff] %vm1549_vm0, %v7950_v53  ;;  %v7948_v32 = vmul.f32 %v9561_v61, %v7852_v23 }
 0x4fd   : > { %v9032_v7 = vpop.f32.mrb[60].mxu1 }
 0x4fe   : > { %v7761_v51 = vadd.f32 1.0, %v9032_v7  ;;  %v7716_v44 = vpop.f32.mrb[61].mxu1  ;;  %7980 = vst.msk [vmem:[%s12226_s7 + $0xc8] sm:$0xff] %vm1549_vm0, %v7948_v32  ;;  %v7889_v31 = vadd.f32 1e-07, %v9032_v7 }
 0x4ff   : > { %v7759_v33 = vadd.f32 1.0, %v7716_v44  ;;  %v9033_v40 = vpop.f32.mrb[62].mxu1  ;;  %v7887_v50 = vadd.f32 1e-07, %v7716_v44 }
 0x500   : > { %9562 = vrcp.f32 %v7761_v51  ;;  %v7762_v41 = vadd.f32 1.0, %v9033_v40  ;;  %v7719_v54 = vpop.f32.mrb[63].mxu1  ;;  %v7890_v8 = vadd.f32 1e-07, %v9033_v40 }
 0x501   : > { %9564 = vrcp.f32 %v7759_v33  ;;  %v7760_v62 = vadd.f32 1.0, %v7719_v54  ;;  %v7888_v11 = vadd.f32 1e-07, %v7719_v54 }
 0x502   : > { %9566 = vrsqrt.f32 %v7889_v31 }
 0x503   : > { %9568 = vrcp.f32 %v7762_v41 }
 0x504   : > { %9570 = vrsqrt.f32 %v7887_v50 }
 0x505   : > { %9572 = vrcp.f32 %v7760_v62 }
 0x506   : > { %9574 = vrsqrt.f32 %v7890_v8 }
 0x507   : > { %9576 = vrsqrt.f32 %v7888_v11 }
 0x50a   : > { %v9563_v1 = vpop.eup %9562 }
 0x50b   : > { %v7824_v59 = vmul.f32 %v9563_v1, %v9032_v7  ;;  %v9565_v18 = vpop.eup %9564 }
 0x50c   : > { %v9567_v9 = vpop.eup %9566  ;;  %v7820_v52 = vmul.f32 %v9565_v18, %v7716_v44 }
 0x50d   : > { %v7857_v15 = vmul.f32 %v7824_v59, %v12203_v2  ;;  %v9569_v28 = vpop.eup %9568 }
 0x50e   : > { %v9571_v37 = vpop.eup %9570  ;;  %v7855_v5 = vmul.f32 %v7820_v52, %v12200_v6  ;;  %v7826_v36 = vmul.f32 %v9569_v28, %v9033_v40 }
 0x50f   : > { %v7953_v24 = vmul.f32 %v9567_v9, %v7857_v15  ;;  %v9573_v55 = vpop.eup %9572 }
 0x510   : > { %v7951_v60 = vmul.f32 %v9571_v37, %v7855_v5  ;;  %v7858_v25 = vmul.f32 %v7826_v36, %v12206_v3  ;;  %v7822_v48 = vmul.f32 %v9573_v55, %v7719_v54  ;;  %v9575_v22 = vpop.eup %9574 }
 0x511   : > { %7985 = vst.msk [vmem:[%s12226_s7 + $0xf0] sm:$0xff] %vm1549_vm0, %v7953_v24  ;;  %v9577_v0 = vpop.eup %9576 }
 0x512   : > { %7983 = vst.msk [vmem:[%s12226_s7 + $0xe0] sm:$0xff] %vm1549_vm0, %v7951_v60  ;;  %v7954_v2 = vmul.f32 %v9575_v22, %v7858_v25  ;;  %v7856_v29 = vmul.f32 %v7822_v48, %v12209_v12 }
 0x514   : > { %7986 = vst.msk [vmem:[%s12226_s7 + $0xf8] sm:$0xff] %vm1549_vm0, %v7954_v2  ;;  %v7952_v10 = vmul.f32 %v9577_v0, %v7856_v29 }
 0x516   : > { %7984 = vst.msk [vmem:[%s12226_s7 + $0xe8] sm:$0xff] %vm1549_vm0, %v7952_v10 }
 0x517 PF: > { %s15_s18 = sadd.s32 1, %s9681_s18  }
 0x518   : > { %p12_p4 = scmp.ge.s32.totalorder %s15_s18, 4  }
 0x51a   :  { %14 = sbr.rel (!%p12_p4) target bundleno = 1 (0x1), region = 70 }

</bundles_post_ra>
